<compile_context>
chip_gen: v7x
topology: tpu7x:2x2x1
jax: 0.10.0
libtpu: 0.0.40
codegen_flags: <defaults>
</compile_context>

<pallas_src>
import jax
import jax.numpy as jnp
from jax.experimental import pallas as pl
from jax.experimental.pallas import tpu as pltpu

_LANE = 128


def _module_head_kernel(x_ref, w_in_ref, b_in_ref, w1_ref, bias1_ref,
                        w2_ref, b2_ref, o_ref):
    """Fused ModuleHead for one batch element (NHWC, inference mode).

    x_ref:     (1, H+2, W+2, Cin)  spatially pre-padded input
    w_in_ref:  (Cin, M)            in_module 1x1 conv weights
    b_in_ref:  (1, M)              in_module 1x1 conv bias
    w1_ref:    (9*M, M)            3x3 conv weights, im2col layout, BN scale folded in
    bias1_ref: (1, M)              folded BN bias (includes 3x3 conv bias)
    w2_ref:    (M, Kp)             final 1x1 conv weights, zero-padded to Kp=128 lanes
    b2_ref:    (1, Kp)             final 1x1 conv bias, zero-padded
    o_ref:     (1, H, W, Kp)       lane-dense output
    """
    Hp2, Wp2 = x_ref.shape[1], x_ref.shape[2]
    H, W = Hp2 - 2, Wp2 - 2

    x = x_ref[0]                                             # (H+2, W+2, Cin)

    # in_module: 1x1 conv == channel matmul (contract over Cin) on the MXU.
    y = jax.lax.dot_general(x, w_in_ref[...],
                            (((2,), (0,)), ((), ())),
                            preferred_element_type=jnp.float32)
    y = y + b_in_ref[0]                                      # (H+2, W+2, M)

    # Zero the 1-pixel halo: the 3x3 conv's padding=1 zeros apply to the *module
    # output*, but conv1x1 over the zero-padded x leaves b_in on the border.
    ri = jax.lax.broadcasted_iota(jnp.int32, y.shape, 0)
    ci = jax.lax.broadcasted_iota(jnp.int32, y.shape, 1)
    interior = (ri >= 1) & (ri <= H) & (ci >= 1) & (ci <= W)
    y = jnp.where(interior, y, 0.0)

    # im2col: 9 shifted taps concatenated on the lane (channel) axis -> one deep
    # matmul (contraction = 9*M) instead of 9 shallow MXU passes.
    taps = [y[dy:dy + H, dx:dx + W, :] for dy in range(3) for dx in range(3)]
    patches = jnp.concatenate(taps, axis=-1)                 # (H, W, 9*M)

    acc = jax.lax.dot_general(patches, w1_ref[...],
                              (((2,), (0,)), ((), ())),
                              preferred_element_type=jnp.float32)   # (H, W, M)

    # Folded BatchNorm bias + ReLU.  Dropout2d(0.1) is identity at inference.
    h = jnp.maximum(acc + bias1_ref[0], 0.0)

    # Final 1x1 conv: lane-dense (Kp = 128) matmul + bias.
    out = jax.lax.dot_general(h, w2_ref[...],
                              (((2,), (0,)), ((), ())),
                              preferred_element_type=jnp.float32)   # (H, W, Kp)
    o_ref[0] = (out + b2_ref[0]).astype(o_ref.dtype)


@jax.jit
def module_head_forward(x_nchw, params):
    """Forward pass of ModuleHead (inference). Input/output are NCHW like PyTorch."""
    w_in, b_in = params["w_in"], params["b_in"]
    w1, b1 = params["w1"], params["b1"]
    gamma, beta, mean, var = (params["gamma"], params["beta"],
                              params["mean"], params["var"])
    w2, b2 = params["w2"], params["b2"]
    eps = 1e-5

    N, Cin, H, W = x_nchw.shape
    M = w_in.shape[0]                    # m_planes
    K = w2.shape[0]                      # num_classes
    Kp = max(_LANE, -(-K // _LANE) * _LANE)

    # NCHW -> NHWC (channels on lanes), 1-pixel spatial pre-pad so the kernel only
    # takes shifted slices for the 3x3 conv.  (Input is small-Cin; pad cost is minor.)
    x = jnp.transpose(x_nchw, (0, 2, 3, 1))
    x_pad = jnp.pad(x, ((0, 0), (1, 1), (1, 1), (0, 0)))

    # in_module 1x1 conv weights: (M, Cin, 1, 1) -> (Cin, M).
    w_in_cm = jnp.transpose(w_in.reshape(M, Cin), (1, 0))
    b_in_2d = b_in.reshape(1, M)

    # 3x3 conv: fold BN scale into the weights, build im2col layout (9*M, M).
    scale = gamma * jax.lax.rsqrt(var + eps)                  # (M,)
    bias1 = beta + (b1 - mean) * scale                        # (M,)
    w1_hwio = jnp.transpose(w1, (2, 3, 1, 0))                 # (3, 3, M, M) HWIO
    w1_folded = (w1_hwio * scale[None, None, None, :]).reshape(9 * M, M)
    bias1_2d = bias1.reshape(1, M)

    # Final 1x1 conv: pad output channels to a full 128-lane width so the last
    # matmul and all stores are lane-dense; slice back to K outside the kernel.
    w2_mk = jnp.transpose(w2.reshape(K, M), (1, 0))           # (M, K)
    w2_pad = jnp.zeros((M, Kp), jnp.float32).at[:, :K].set(w2_mk)
    b2_pad = jnp.zeros((1, Kp), jnp.float32).at[0, :K].set(b2)

    out = pl.pallas_call(
        _module_head_kernel,
        out_shape=jax.ShapeDtypeStruct((N, H, W, Kp), jnp.float32),
        grid_spec=pltpu.PrefetchScalarGridSpec(
            num_scalar_prefetch=0,
            grid=(N,),
            in_specs=[
                pl.BlockSpec((1, H + 2, W + 2, Cin), lambda n: (n, 0, 0, 0)),
                pl.BlockSpec((Cin, M), lambda n: (0, 0)),
                pl.BlockSpec((1, M), lambda n: (0, 0)),
                pl.BlockSpec((9 * M, M), lambda n: (0, 0)),
                pl.BlockSpec((1, M), lambda n: (0, 0)),
                pl.BlockSpec((M, Kp), lambda n: (0, 0)),
                pl.BlockSpec((1, Kp), lambda n: (0, 0)),
            ],
            out_specs=pl.BlockSpec((1, H, W, Kp), lambda n: (n, 0, 0, 0)),
        ),
        compiler_params=pltpu.CompilerParams(
            dimension_semantics=("parallel",),
            vmem_limit_bytes=32 * 1024 * 1024),
    )(x_pad, w_in_cm, b_in_2d, w1_folded, bias1_2d, w2_pad, b2_pad)

    # Drop the channel padding, NHWC -> NCHW.
    out = out[..., :K]
    return jnp.transpose(out, (0, 3, 1, 2))


def _reference_forward(x_nchw, params):
    """Pure-JAX reference (inference-mode semantics of ModuleHead, module=identity)."""
    eps = 1e-5
    y = jax.lax.conv_general_dilated(
        x_nchw, params["w_in"], window_strides=(1, 1), padding="VALID",
        dimension_numbers=("NCHW", "OIHW", "NCHW")) + params["b_in"][None, :, None, None]
    # module: identity
    z = jax.lax.conv_general_dilated(
        y, params["w1"], window_strides=(1, 1), padding=((1, 1), (1, 1)),
        dimension_numbers=("NCHW", "OIHW", "NCHW")) + params["b1"][None, :, None, None]
    scale = params["gamma"] * jax.lax.rsqrt(params["var"] + eps)
    z = (z - params["mean"][None, :, None, None]) * scale[None, :, None, None] \
        + params["beta"][None, :, None, None]
    z = jnp.maximum(z, 0.0)
    out = jax.lax.conv_general_dilated(
        z, params["w2"], window_strides=(1, 1), padding="VALID",
        dimension_numbers=("NCHW", "OIHW", "NCHW")) + params["b2"][None, :, None, None]
    return out


def init_params(key, in_planes, m_planes, num_classes):
    ks = jax.random.split(key, 10)
    return {
        "w_in": 0.05 * jax.random.normal(ks[0], (m_planes, in_planes, 1, 1), jnp.float32),
        "b_in": 0.01 * jax.random.normal(ks[1], (m_planes,), jnp.float32),
        "w1": 0.05 * jax.random.normal(ks[2], (m_planes, m_planes, 3, 3), jnp.float32),
        "b1": 0.01 * jax.random.normal(ks[3], (m_planes,), jnp.float32),
        "gamma": 1.0 + 0.1 * jax.random.normal(ks[4], (m_planes,), jnp.float32),
        "beta": 0.1 * jax.random.normal(ks[5], (m_planes,), jnp.float32),
        "mean": 0.1 * jax.random.normal(ks[6], (m_planes,), jnp.float32),
        "var": jnp.abs(1.0 + 0.1 * jax.random.normal(ks[7], (m_planes,), jnp.float32)),
        "w2": 0.05 * jax.random.normal(ks[8], (num_classes, m_planes, 1, 1), jnp.float32),
        "b2": 0.01 * jax.random.normal(ks[9], (num_classes,), jnp.float32),
    }


if __name__ == "__main__":
    key = jax.random.PRNGKey(0)
    k_x, k_p = jax.random.split(key)

    N, Cin, H, W = 2, 4, 16, 16
    m_planes = 32
    num_classes = 19

    x = jax.random.normal(k_x, (N, Cin, H, W), jnp.float32)
    params = init_params(k_p, Cin, m_planes, num_classes)

    out = jax.block_until_ready(module_head_forward(x, params))
    ref = _reference_forward(x, params)

    assert out.shape == (N, num_classes, H, W), out.shape
    max_err = float(jnp.max(jnp.abs(out - ref)))
    assert jnp.allclose(out, ref, atol=1e-4, rtol=1e-4), max_err

    print("KERNEL_OK")
</pallas_src>

<mosaic_0001>
module attributes {stable_mosaic.version = 11 : i64} {
  func.func @_module_head_kernel(%arg0: i32, %arg1: memref<1x18x18x4xf32, #tpu.memory_space<vmem>>, %arg2: memref<4x32xf32, #tpu.memory_space<vmem>>, %arg3: memref<1x32xf32, #tpu.memory_space<vmem>>, %arg4: memref<288x32xf32, #tpu.memory_space<vmem>>, %arg5: memref<1x32xf32, #tpu.memory_space<vmem>>, %arg6: memref<32x128xf32, #tpu.memory_space<vmem>>, %arg7: memref<1x128xf32, #tpu.memory_space<vmem>>, %arg8: memref<1x16x16x128xf32, #tpu.memory_space<vmem>>) attributes {dimension_semantics = [#tpu.dimension_semantics<parallel>], iteration_bounds = array<i64: 2>, scalar_prefetch = 0 : i64, scratch_operands = 0 : i64, tpu.core_type = #tpu.core_type<tc>, window_params = [{transform_indices = @transform_0, window_bounds = array<i64: 1, 18, 18, 4>}, {pipeline_mode = #tpu.pipeline_mode<synchronous>, transform_indices = @transform_1, window_bounds = array<i64: 4, 32>}, {pipeline_mode = #tpu.pipeline_mode<synchronous>, transform_indices = @transform_2, window_bounds = array<i64: 1, 32>}, {pipeline_mode = #tpu.pipeline_mode<synchronous>, transform_indices = @transform_3, window_bounds = array<i64: 288, 32>}, {pipeline_mode = #tpu.pipeline_mode<synchronous>, transform_indices = @transform_4, window_bounds = array<i64: 1, 32>}, {pipeline_mode = #tpu.pipeline_mode<synchronous>, transform_indices = @transform_5, window_bounds = array<i64: 32, 128>}, {pipeline_mode = #tpu.pipeline_mode<synchronous>, transform_indices = @transform_6, window_bounds = array<i64: 1, 128>}, {transform_indices = @transform_7, window_bounds = array<i64: 1, 16, 16, 128>}]} {
    %c0 = arith.constant 0 : index
    %c0_0 = arith.constant 0 : index
    %c0_1 = arith.constant 0 : index
    %c0_2 = arith.constant 0 : index
    %0 = vector.load %arg1[%c0, %c0_0, %c0_1, %c0_2] : memref<1x18x18x4xf32, #tpu.memory_space<vmem>>, vector<1x18x18x4xf32>
    %1 = vector.shape_cast %0 : vector<1x18x18x4xf32> to vector<18x18x4xf32>
    %c0_3 = arith.constant 0 : index
    %c0_4 = arith.constant 0 : index
    %2 = vector.load %arg2[%c0_3, %c0_4] : memref<4x32xf32, #tpu.memory_space<vmem>>, vector<4x32xf32>
    %cst = arith.constant dense<0.000000e+00> : vector<18x18x32xf32>
    %3 = tpu.matmul %1, %2, %cst {dimension_numbers = #tpu.dot_dimension_numbers<[2], [0], [0, 1], [1], [0, 0, 0, 1, 1, 1], [], []>} : vector<18x18x4xf32>, vector<4x32xf32>, vector<18x18x32xf32> -> vector<18x18x32xf32>
    %c0_5 = arith.constant 0 : index
    %c0_6 = arith.constant 0 : index
    %4 = vector.load %arg3[%c0_5, %c0_6] : memref<1x32xf32, #tpu.memory_space<vmem>>, vector<1x32xf32>
    %5 = vector.shape_cast %4 : vector<1x32xf32> to vector<32xf32>
    %6 = vector.shape_cast %5 : vector<32xf32> to vector<1x1x32xf32>
    %7 = vector.broadcast %6 : vector<1x1x32xf32> to vector<18x18x32xf32>
    %8 = arith.addf %3, %7 : vector<18x18x32xf32>
    %9 = tpu.iota {dimensions = array<i32: 0>} : vector<18x18x32xi32>
    %10 = tpu.iota {dimensions = array<i32: 1>} : vector<18x18x32xi32>
    %c1_i32 = arith.constant 1 : i32
    %11 = vector.broadcast %c1_i32 : i32 to vector<18x18x32xi32>
    %12 = arith.cmpi sge, %9, %11 : vector<18x18x32xi32>
    %c16_i32 = arith.constant 16 : i32
    %13 = vector.broadcast %c16_i32 : i32 to vector<18x18x32xi32>
    %14 = arith.cmpi sle, %9, %13 : vector<18x18x32xi32>
    %15 = arith.andi %12, %14 : vector<18x18x32xi1>
    %c1_i32_7 = arith.constant 1 : i32
    %16 = vector.broadcast %c1_i32_7 : i32 to vector<18x18x32xi32>
    %17 = arith.cmpi sge, %10, %16 : vector<18x18x32xi32>
    %18 = arith.andi %15, %17 : vector<18x18x32xi1>
    %c16_i32_8 = arith.constant 16 : i32
    %19 = vector.broadcast %c16_i32_8 : i32 to vector<18x18x32xi32>
    %20 = arith.cmpi sle, %10, %19 : vector<18x18x32xi32>
    %21 = arith.andi %18, %20 : vector<18x18x32xi1>
    %cst_9 = arith.constant 0.000000e+00 : f32
    %22 = vector.broadcast %cst_9 : f32 to vector<18x18x32xf32>
    %23 = arith.select %21, %8, %22 : vector<18x18x32xi1>, vector<18x18x32xf32>
    %24 = vector.extract_strided_slice %23 {offsets = [0, 0, 0], sizes = [16, 16, 32], strides = [1, 1, 1]} : vector<18x18x32xf32> to vector<16x16x32xf32>
    %25 = vector.extract_strided_slice %23 {offsets = [0, 1, 0], sizes = [16, 16, 32], strides = [1, 1, 1]} : vector<18x18x32xf32> to vector<16x16x32xf32>
    %26 = vector.extract_strided_slice %23 {offsets = [0, 2, 0], sizes = [16, 16, 32], strides = [1, 1, 1]} : vector<18x18x32xf32> to vector<16x16x32xf32>
    %27 = vector.extract_strided_slice %23 {offsets = [1, 0, 0], sizes = [16, 16, 32], strides = [1, 1, 1]} : vector<18x18x32xf32> to vector<16x16x32xf32>
    %28 = vector.extract_strided_slice %23 {offsets = [1, 1, 0], sizes = [16, 16, 32], strides = [1, 1, 1]} : vector<18x18x32xf32> to vector<16x16x32xf32>
    %29 = vector.extract_strided_slice %23 {offsets = [1, 2, 0], sizes = [16, 16, 32], strides = [1, 1, 1]} : vector<18x18x32xf32> to vector<16x16x32xf32>
    %30 = vector.extract_strided_slice %23 {offsets = [2, 0, 0], sizes = [16, 16, 32], strides = [1, 1, 1]} : vector<18x18x32xf32> to vector<16x16x32xf32>
    %31 = vector.extract_strided_slice %23 {offsets = [2, 1, 0], sizes = [16, 16, 32], strides = [1, 1, 1]} : vector<18x18x32xf32> to vector<16x16x32xf32>
    %32 = vector.extract_strided_slice %23 {offsets = [2, 2, 0], sizes = [16, 16, 32], strides = [1, 1, 1]} : vector<18x18x32xf32> to vector<16x16x32xf32>
    %33 = tpu.concatenate %24, %25, %26, %27, %28, %29, %30, %31, %32 in 2 : vector<16x16x32xf32>, vector<16x16x32xf32>, vector<16x16x32xf32>, vector<16x16x32xf32>, vector<16x16x32xf32>, vector<16x16x32xf32>, vector<16x16x32xf32>, vector<16x16x32xf32>, vector<16x16x32xf32> -> vector<16x16x288xf32>
    %c0_10 = arith.constant 0 : index
    %c0_11 = arith.constant 0 : index
    %34 = vector.load %arg4[%c0_10, %c0_11] : memref<288x32xf32, #tpu.memory_space<vmem>>, vector<288x32xf32>
    %cst_12 = arith.constant dense<0.000000e+00> : vector<16x16x32xf32>
    %35 = tpu.matmul %33, %34, %cst_12 {dimension_numbers = #tpu.dot_dimension_numbers<[2], [0], [0, 1], [1], [0, 0, 0, 1, 1, 1], [], []>} : vector<16x16x288xf32>, vector<288x32xf32>, vector<16x16x32xf32> -> vector<16x16x32xf32>
    %c0_13 = arith.constant 0 : index
    %c0_14 = arith.constant 0 : index
    %36 = vector.load %arg5[%c0_13, %c0_14] : memref<1x32xf32, #tpu.memory_space<vmem>>, vector<1x32xf32>
    %37 = vector.shape_cast %36 : vector<1x32xf32> to vector<32xf32>
    %38 = vector.shape_cast %37 : vector<32xf32> to vector<1x1x32xf32>
    %39 = vector.broadcast %38 : vector<1x1x32xf32> to vector<16x16x32xf32>
    %40 = arith.addf %35, %39 : vector<16x16x32xf32>
    %cst_15 = arith.constant 0.000000e+00 : f32
    %41 = vector.broadcast %cst_15 : f32 to vector<16x16x32xf32>
    %42 = arith.maximumf %40, %41 : vector<16x16x32xf32>
    %c0_16 = arith.constant 0 : index
    %c0_17 = arith.constant 0 : index
    %43 = vector.load %arg6[%c0_16, %c0_17] : memref<32x128xf32, #tpu.memory_space<vmem>>, vector<32x128xf32>
    %cst_18 = arith.constant dense<0.000000e+00> : vector<16x16x128xf32>
    %44 = tpu.matmul %42, %43, %cst_18 {dimension_numbers = #tpu.dot_dimension_numbers<[2], [0], [0, 1], [1], [0, 0, 0, 1, 1, 1], [], []>} : vector<16x16x32xf32>, vector<32x128xf32>, vector<16x16x128xf32> -> vector<16x16x128xf32>
    %c0_19 = arith.constant 0 : index
    %c0_20 = arith.constant 0 : index
    %45 = vector.load %arg7[%c0_19, %c0_20] : memref<1x128xf32, #tpu.memory_space<vmem>>, vector<1x128xf32>
    %46 = vector.shape_cast %45 : vector<1x128xf32> to vector<128xf32>
    %47 = vector.shape_cast %46 : vector<128xf32> to vector<1x1x128xf32>
    %48 = vector.broadcast %47 : vector<1x1x128xf32> to vector<16x16x128xf32>
    %49 = arith.addf %44, %48 : vector<16x16x128xf32>
    %c0_21 = arith.constant 0 : index
    %c0_22 = arith.constant 0 : index
    %c0_23 = arith.constant 0 : index
    %c0_24 = arith.constant 0 : index
    %50 = vector.load %arg8[%c0_21, %c0_22, %c0_23, %c0_24] : memref<1x16x16x128xf32, #tpu.memory_space<vmem>>, vector<1x16x16x128xf32>
    %51 = vector.shape_cast %50 : vector<1x16x16x128xf32> to vector<16x16x128xf32>
    %52 = vector.shape_cast %49 : vector<16x16x128xf32> to vector<1x16x16x128xf32>
    tpu.vector_store %arg8[%c0_21, %c0_22, %c0_23, %c0_24], %52 {strides = array<i32>} : memref<1x16x16x128xf32, #tpu.memory_space<vmem>>, vector<1x16x16x128xf32>,
    return
  }
  func.func @transform_0(%arg0: i32) -> (i32, i32, i32, i32) {
    %c0_i32 = arith.constant 0 : i32
    %c0_i32_0 = arith.constant 0 : i32
    %c0_i32_1 = arith.constant 0 : i32
    %c0_i32_2 = arith.constant 0 : i32
    return %arg0, %c0_i32, %c0_i32_0, %c0_i32_1 : i32, i32, i32, i32
  }
  func.func @transform_1(%arg0: i32) -> (i32, i32) {
    %c0_i32 = arith.constant 0 : i32
    %c0_i32_0 = arith.constant 0 : i32
    %c0_i32_1 = arith.constant 0 : i32
    return %c0_i32, %c0_i32_0 : i32, i32
  }
  func.func @transform_2(%arg0: i32) -> (i32, i32) {
    %c0_i32 = arith.constant 0 : i32
    %c0_i32_0 = arith.constant 0 : i32
    %c0_i32_1 = arith.constant 0 : i32
    return %c0_i32, %c0_i32_0 : i32, i32
  }
  func.func @transform_3(%arg0: i32) -> (i32, i32) {
    %c0_i32 = arith.constant 0 : i32
    %c0_i32_0 = arith.constant 0 : i32
    %c0_i32_1 = arith.constant 0 : i32
    return %c0_i32, %c0_i32_0 : i32, i32
  }
  func.func @transform_4(%arg0: i32) -> (i32, i32) {
    %c0_i32 = arith.constant 0 : i32
    %c0_i32_0 = arith.constant 0 : i32
    %c0_i32_1 = arith.constant 0 : i32
    return %c0_i32, %c0_i32_0 : i32, i32
  }
  func.func @transform_5(%arg0: i32) -> (i32, i32) {
    %c0_i32 = arith.constant 0 : i32
    %c0_i32_0 = arith.constant 0 : i32
    %c0_i32_1 = arith.constant 0 : i32
    return %c0_i32, %c0_i32_0 : i32, i32
  }
  func.func @transform_6(%arg0: i32) -> (i32, i32) {
    %c0_i32 = arith.constant 0 : i32
    %c0_i32_0 = arith.constant 0 : i32
    %c0_i32_1 = arith.constant 0 : i32
    return %c0_i32, %c0_i32_0 : i32, i32
  }
  func.func @transform_7(%arg0: i32) -> (i32, i32, i32, i32) {
    %c0_i32 = arith.constant 0 : i32
    %c0_i32_0 = arith.constant 0 : i32
    %c0_i32_1 = arith.constant 0 : i32
    %c0_i32_2 = arith.constant 0 : i32
    return %arg0, %c0_i32, %c0_i32_0, %c0_i32_1 : i32, i32, i32, i32
  }
}

</mosaic_0001>

<bundles_post_ra>
// kernel: module_head_forward.1
= control target key start
LH: loop header
LB: loop body
LE: loop exit
PB: predicated region body
PF: predicated region fallthrough
CT: control target
= control target key end

     0   :  { %s7065_s24 = smov 0   ;;  %s9364_s0 = inlined_call_operand.vmem [shape: f32[2,18,18,4], index: 0, kind: input, shape index: {}]   ;;  %s9365_s1 = inlined_call_operand.vmem [shape: f32[4,32], index: 1, kind: input, shape index: {}]   ;;  %s9366_s2 = inlined_call_operand.vmem [shape: f32[1,32], index: 2, kind: input, shape index: {}]   ;;  %s9367_s3 = inlined_call_operand.vmem [shape: f32[288,32], index: 3, kind: input, shape index: {}]   ;;  %s9368_s4 = inlined_call_operand.vmem [shape: f32[1,32], index: 4, kind: input, shape index: {}]   ;;  %s9369_s5 = inlined_call_operand.vmem [shape: f32[32,128], index: 5, kind: input, shape index: {}]   ;;  %s9370_s6 = inlined_call_operand.vmem [shape: f32[1,128], index: 6, kind: input, shape index: {}]   ;;  %s9371_s7 = inlined_call_operand.vmem [shape: f32[2,16,16,128], index: 7, kind: output, shape index: {}]  }
   0x1 LB: > { %s5893_s25 = sadd.s32 4294967295, %s7016_s24   ;;  %p5897_p0 = scmp.ge.s32.totalorder %s7016_s24, 1  ;;  %s7016_s24 = sphi %s7065_s24, %s17_s24  }
   0x2   : > { %p237_p1 = scmp.lt.s32.totalorder %s7016_s24, 3 }
   0x4   : > { %p238_p2 = pnand %p5897_p0, %p237_p1 }
   0x6   : > { %241 = sbr.rel (%p238_p2) target bundleno = 1043 (0x413), region = 48 }
   0xd   : > { %v333_v0 = vld [vmem:[%s9365_s1] sm:$0xf]  ;;  %vm1975_vm0 = vcmask 1043456   ;;  %p269_p3 = scmp.lt.s32.totalorder %s5893_s25, 1  ;;  %v398_v1 = vlaneseq  ;;  %v9375_v2 = vmov 0.0   ;;  %vm7019_vm1 = vmmov 0  }
   0xe   : > { %6145 = vmatprep.subr.mxu0 %v9375_v2  ;;  %6147 = vmatprep.mubr.msk.f32.mxu0 %vm7019_vm1, %v9375_v2  ;;  %v7020_v3 = vmov 1983009808   ;;  %vm1892_vm2 = vcmask 31744   ;;  %vm3894_vm5 = vcmask 1046528   ;;  %vm4071_vm6 = vcmask 1045504   ;;  %s7022_s15 = smov 32  }
   0xf   : > { %6146 = vmatpush3.msk.msra.mxu0 %vm1975_vm0, %v333_v0  ;;  %s9616_s25 = smov (!%p269_p3, %s5893_s25), 1  ;;  %v396_v4 = vunpack.c.l.s4 %v7020_v3  ;;  %v7081_v5 = vshrl.u32 %v398_v1, 7  ;;  %s7023_s16 = smov 64   ;;  %vm4690_vm7 = vcmask 261120   ;;  %vm4723_vm8 = vcmask 523264  }
  0x10   : > { %s6478_s28 = smul.u32 432, %s9616_s25  ;;  %s7024_s17 = smov 96   ;;  %vm4756_vm9 = vcmask 785408  }
  0x11   : > { %v397_v6 = vunpack.c.0.s8 %v396_v4  ;;  %vm2982_vm4 = vcmp.ge.s32.totalorder %v7081_v5, 1  ;;  %s6030_s18 = sshll.u32 %s9616_s25, 8 }
  0x12   : > { %s7087_s8 = scalar_lea.vmem %s9364_s0, %s6478_s28  ;;  %s9295_s22 = scalar_lea.vmem %s9371_s7, %s6030_s18 }
  0x13   : > { %v7090_v7 = vsub.s32 %v397_v6, %v7081_v5  ;;  %v279_v8 = vld [vmem:[%s7087_s8] sm:$0xff]  ;;  %v280_v9 = vld [vmem:[%s7087_s8 + $0x8] sm:$0xff]  ;;  %v282_v14 = vld [vmem:[%s7087_s8 + $0x18] sm:$0xff] }
  0x14   : > { %v394_v10 = vcombine.high %v279_v8, %v279_v8  ;;  %v411_v12 = vcombine.high %v280_v9, %v280_v9  ;;  %v283_v15 = vld [vmem:[%s7087_s8 + $0x20] sm:$0xff]  ;;  %v435_v16 = vcombine.high %v282_v14, %v282_v14  ;;  %v5902_v22 = vld.sshfl [vmem:[%s7087_s8 + $0x10] sm:$0x3 pattern:$0x76325410]  ;;  %v286_v45 = vld [vmem:[%s7087_s8 + $0x38] sm:$0xff] }
  0x15   : > { %v401_v11 = vrot.slane %v279_v8, %v7090_v7  ;;  %v418_v13 = vrot.slane %v280_v9, %v7090_v7  ;;  %v442_v17 = vrot.slane %v282_v14, %v7090_v7  ;;  %v452_v25 = vcombine.high %v283_v15, %v283_v15  ;;  %v285_v32 = vld [vmem:[%s7087_s8 + $0x30] sm:$0xff]  ;;  %v5903_v54 = vld.sshfl [vmem:[%s7087_s8 + $0x28] sm:$0x3 pattern:$0x76325410] }
  0x16   : > { %v408_v18 = vrot.slane %v394_v10, %v7090_v7  ;;  %v425_v20 = vrot.slane %v411_v12, %v7090_v7  ;;  %v449_v23 = vrot.slane %v435_v16, %v7090_v7  ;;  %v459_v26 = vrot.slane %v283_v15, %v7090_v7  ;;  %v288_v57 = vld [vmem:[%s7087_s8 + $0x48] sm:$0xff]  ;;  %v289_v6 = vld [vmem:[%s7087_s8 + $0x50] sm:$0xff] }
  0x17   : > { %v409_v19 = vcombine.high %v401_v11, %v401_v11  ;;  %v426_v21 = vcombine.high %v418_v13, %v418_v13  ;;  %v450_v24 = vcombine.high %v442_v17, %v442_v17  ;;  %v1183_v31 = vcombine.low %v5902_v22, %v442_v17 }
  0x18   : > { %v410_v27 = vcombine.high %v408_v18, %v408_v18  ;;  %v427_v29 = vcombine.high %v425_v20, %v425_v20  ;;  %v451_v38 = vcombine.high %v449_v23, %v449_v23  ;;  %v466_v39 = vrot.slane %v452_v25, %v7090_v7 }
  0x19   : > { %v1149_v28 = vcombine.low %v401_v11, %v409_v19  ;;  %v1166_v30 = vcombine.low %v418_v13, %v426_v21  ;;  %v1184_v36 = vcombine.low %v450_v24, %v449_v23  ;;  %v467_v40 = vcombine.high %v459_v26, %v459_v26  ;;  %v5904_v11 = vld.sshfl [vmem:[%s7087_s8 + $0x40] sm:$0x3 pattern:$0x76325410] }
  0x1a   : > { %v1150_v33 = vcombine.low %v408_v18, %v410_v27  ;;  %v1167_v35 = vcombine.low %v425_v20, %v427_v29  ;;  %v483_v43 = vrot.slane %v285_v32, %v7090_v7  ;;  %v476_v44 = vcombine.high %v285_v32, %v285_v32  ;;  %v291_v18 = vld [vmem:[%s7087_s8 + $0x60] sm:$0xff]  ;;  %v292_v29 = vld [vmem:[%s7087_s8 + $0x68] sm:$0xff] }
  0x1b   : > { %v1157_v34 = vrot.slane %v1149_v28, %v7090_v7  ;;  %v1174_v37 = vrot.slane %v1166_v30, %v7090_v7  ;;  %v1191_v47 = vrot.slane %v1183_v31, %v7090_v7  ;;  %v1198_v48 = vrot.slane %v1184_v36, %v7090_v7 }
  0x1c   : > { %v1164_v41 = vrot.slane %v1150_v33, %v7090_v7  ;;  %v1181_v42 = vrot.slane %v1167_v35, %v7090_v7  ;;  %v1200_v49 = vcombine.low %v451_v38, %v459_v26  ;;  %v1201_v50 = vcombine.low %v467_v40, %v466_v39  ;;  %v5905_v38 = vld.sshfl [vmem:[%s7087_s8 + $0x58] sm:$0x3 pattern:$0x76325410] }
  0x1d   : > { %v468_v51 = vcombine.high %v466_v39, %v466_v39  ;;  %v491_v52 = vcombine.high %v483_v43, %v483_v43  ;;  %v490_v55 = vrot.slane %v476_v44, %v7090_v7  ;;  %v500_v56 = vrot.slane %v286_v45, %v7090_v7 }
  0x1e   : > { %v1165_v46 = vcombine.low %v1157_v34, %v1164_v41  ;;  %v1182_v53 = vcombine.low %v1174_v37, %v1181_v42  ;;  %v493_v58 = vcombine.high %v286_v45, %v286_v45  ;;  %v1199_v59 = vcombine.low %v1191_v47, %v1198_v48 }
  0x1f   : > { %v1208_v60 = vrot.slane %v1200_v49, %v7090_v7  ;;  %v1217_v61 = vcombine.low %v468_v51, %v5903_v54  ;;  %v1218_v62 = vcombine.low %v483_v43, %v491_v52  ;;  %v517_v63 = vcombine.high %v288_v57, %v288_v57 }
  0x20   : > { %6148 = vmatmul.mubr.msk.f32.vlgmr.msra.gmra.mrb[0].mxu0 %vm1892_vm2, %v1165_v46  ;;  %v1215_v0 = vrot.slane %v1201_v50, %v7090_v7  ;;  %v492_v1 = vcombine.high %v490_v55, %v490_v55  ;;  %v508_v3 = vcombine.high %v500_v56, %v500_v56  ;;  %v507_v4 = vrot.slane %v493_v58, %v7090_v7  ;;  %v294_v50 = vld [vmem:[%s7087_s8 + $0x78] sm:$0xff] }
  0x21   : > { %6150 = vmatprep.mubr.msk.f32.mxu0 %vm7019_vm1, %v9375_v2  ;;  %v524_v8 = vrot.slane %v288_v57, %v7090_v7  ;;  %v1225_v9 = vrot.slane %v1217_v61, %v7090_v7  ;;  %v1232_v10 = vrot.slane %v1218_v62, %v7090_v7  ;;  %v531_v12 = vrot.slane %v517_v63, %v7090_v7  ;;  %v5906_v63 = vld.sshfl [vmem:[%s7087_s8 + $0x70] sm:$0x3 pattern:$0x76325410] }
  0x22   : > { %v534_v13 = vcombine.high %v289_v6, %v289_v6  ;;  %v1216_v14 = vcombine.low %v1208_v60, %v1215_v0  ;;  %v1234_v15 = vcombine.low %v490_v55, %v492_v1  ;;  %v1235_v16 = vcombine.low %v500_v56, %v508_v3  ;;  %v295_v56 = vld [vmem:[%s7087_s8 + $0x80] sm:$0xff] }
  0x23   : > { %v509_v17 = vcombine.high %v507_v4, %v507_v4  ;;  %v1252_v19 = vcombine.low %v5904_v11, %v524_v8  ;;  %v541_v20 = vrot.slane %v289_v6, %v7090_v7  ;;  %v1233_v21 = vcombine.low %v1225_v9, %v1232_v10  ;;  %v297_v10 = vld [vmem:[%s7087_s8 + $0x90] sm:$0xff] }
  0x24   : > { %6151 = vmatmul.mubr.msk.f32.gmra.mrb[2].mxu0 %vm1892_vm2, %v1182_v53  ;;  %v532_v22 = vcombine.high %v524_v8, %v524_v8  ;;  %v533_v23 = vcombine.high %v531_v12, %v531_v12  ;;  %v548_v24 = vrot.slane %v534_v13, %v7090_v7  ;;  %v1242_v25 = vrot.slane %v1234_v15, %v7090_v7 }
  0x25   : > { %6153 = vmatprep.mubr.msk.f32.mxu0 %vm7019_vm1, %v9375_v2  ;;  %v1249_v26 = vrot.slane %v1235_v16, %v7090_v7  ;;  %v1251_v27 = vcombine.low %v507_v4, %v509_v17  ;;  %v558_v28 = vcombine.high %v291_v18, %v291_v18  ;;  %v1266_v30 = vrot.slane %v1252_v19, %v7090_v7 }
  0x26   : > { %v549_v31 = vcombine.high %v541_v20, %v541_v20  ;;  %v1268_v32 = vcombine.low %v532_v22, %v531_v12  ;;  %v1269_v33 = vcombine.low %v533_v23, %v541_v20  ;;  %v550_v34 = vcombine.high %v548_v24, %v548_v24  ;;  %v298_v20 = vld [vmem:[%s7087_s8 + $0x98] sm:$0xff] }
  0x27   : > { %v565_v35 = vrot.slane %v291_v18, %v7090_v7  ;;  %v1250_v36 = vcombine.low %v1242_v25, %v1249_v26  ;;  %v1259_v37 = vrot.slane %v1251_v27, %v7090_v7  ;;  %v572_v39 = vrot.slane %v558_v28, %v7090_v7  ;;  %v5907_v27 = vld.sshfl [vmem:[%s7087_s8 + $0x88] sm:$0x3 pattern:$0x76325410] }
  0x28   : > { %6154 = vmatmul.mubr.msk.f32.gmra.mrb[4].mxu0 %vm1892_vm2, %v1199_v59  ;;  %v575_v40 = vcombine.high %v292_v29, %v292_v29  ;;  %v1285_v41 = vcombine.low %v549_v31, %v548_v24  ;;  %v1276_v42 = vrot.slane %v1268_v32, %v7090_v7  ;;  %v1283_v43 = vrot.slane %v1269_v33, %v7090_v7  ;;  %v300_v32 = vld [vmem:[%s7087_s8 + $0xa8] sm:$0xff] }
  0x29   : > { %6156 = vmatprep.mubr.msk.f32.mxu0 %vm7019_vm1, %v9375_v2  ;;  %v1286_v44 = vcombine.low %v550_v34, %v5905_v38  ;;  %v582_v45 = vrot.slane %v292_v29, %v7090_v7  ;;  %v1267_v46 = vcombine.low %v1259_v37, %v1266_v30  ;;  %v573_v47 = vcombine.high %v565_v35, %v565_v35 }
  0x2a   : > { %v574_v48 = vcombine.high %v572_v39, %v572_v39  ;;  %v589_v49 = vrot.slane %v575_v40, %v7090_v7  ;;  %v1293_v51 = vrot.slane %v1285_v41, %v7090_v7  ;;  %v1284_v52 = vcombine.low %v1276_v42, %v1283_v43  ;;  %v301_v43 = vld [vmem:[%s7087_s8 + $0xb0] sm:$0xff] }
  0x2b   : > { %v590_v53 = vcombine.high %v582_v45, %v582_v45  ;;  %v599_v54 = vcombine.high %v294_v50, %v294_v50  ;;  %v606_v55 = vrot.slane %v294_v50, %v7090_v7  ;;  %v1300_v57 = vrot.slane %v1286_v44, %v7090_v7 }
  0x2c   : > { %6157 = vmatmul.mubr.msk.f32.gmra.mrb[6].mxu0 %vm1892_vm2, %v1216_v14  ;;  %v1302_v58 = vcombine.low %v565_v35, %v573_v47  ;;  %v1303_v59 = vcombine.low %v572_v39, %v574_v48  ;;  %v591_v60 = vcombine.high %v589_v49, %v589_v49  ;;  %v616_v61 = vcombine.high %v295_v56, %v295_v56 }
  0x2d   : > { %6159 = vmatprep.mubr.msk.f32.mxu0 %vm7019_vm1, %v9375_v2  ;;  %v1319_v62 = vcombine.low %v582_v45, %v590_v53  ;;  %v613_v0 = vrot.slane %v599_v54, %v7090_v7  ;;  %v614_v1 = vcombine.high %v606_v55, %v606_v55  ;;  %v623_v3 = vrot.slane %v295_v56, %v7090_v7  ;;  %v303_v54 = vld [vmem:[%s7087_s8 + $0xc0] sm:$0xff] }
  0x2e   : > { %v1301_v4 = vcombine.low %v1293_v51, %v1300_v57  ;;  %v1310_v6 = vrot.slane %v1302_v58, %v7090_v7  ;;  %v1317_v8 = vrot.slane %v1303_v59, %v7090_v7  ;;  %v1320_v9 = vcombine.low %v589_v49, %v591_v60 }
  0x2f   : > { %v1336_v11 = vcombine.low %v5906_v63, %v606_v55  ;;  %v630_v12 = vrot.slane %v616_v61, %v7090_v7  ;;  %v1327_v13 = vrot.slane %v1319_v62, %v7090_v7  ;;  %v1337_v14 = vcombine.low %v614_v1, %v613_v0  ;;  %v304_v1 = vld [vmem:[%s7087_s8 + $0xc8] sm:$0xff] }
  0x30   : > { %6160 = vmatmul.mubr.msk.f32.gmra.mrb[8].mxu0 %vm1892_vm2, %v1233_v21  ;;  %v615_v15 = vcombine.high %v613_v0, %v613_v0  ;;  %v631_v16 = vcombine.high %v623_v3, %v623_v3  ;;  %v1318_v17 = vcombine.low %v1310_v6, %v1317_v8  ;;  %v1334_v18 = vrot.slane %v1320_v9, %v7090_v7 }
  0x31   : > { %6162 = vmatprep.mubr.msk.f32.mxu0 %vm7019_vm1, %v9375_v2  ;;  %v647_v19 = vrot.slane %v297_v10, %v7090_v7  ;;  %v640_v21 = vcombine.high %v297_v10, %v297_v10  ;;  %v1344_v22 = vrot.slane %v1336_v11, %v7090_v7  ;;  %v632_v23 = vcombine.high %v630_v12, %v630_v12 }
  0x32   : > { %v1351_v24 = vrot.slane %v1337_v14, %v7090_v7  ;;  %v1353_v25 = vcombine.low %v615_v15, %v623_v3  ;;  %v1354_v26 = vcombine.low %v631_v16, %v630_v12  ;;  %v664_v28 = vrot.slane %v298_v20, %v7090_v7 }
  0x33   : > { %v1335_v29 = vcombine.low %v1327_v13, %v1334_v18  ;;  %v655_v30 = vcombine.high %v647_v19, %v647_v19  ;;  %v654_v31 = vrot.slane %v640_v21, %v7090_v7  ;;  %v657_v33 = vcombine.high %v298_v20, %v298_v20  ;;  %v5909_v13 = vld.sshfl [vmem:[%s7087_s8 + $0xb8] sm:$0x3 pattern:$0x76325410] }
  0x34   : > { %6163 = vmatmul.mubr.msk.f32.gmra.mrb[10].mxu0 %vm1892_vm2, %v1250_v36  ;;  %v1370_v34 = vcombine.low %v632_v23, %v5907_v27  ;;  %v1352_v35 = vcombine.low %v1344_v22, %v1351_v24  ;;  %v1361_v36 = vrot.slane %v1353_v25, %v7090_v7  ;;  %v672_v37 = vcombine.high %v664_v28, %v664_v28  ;;  %v306_v25 = vld [vmem:[%s7087_s8 + $0xd8] sm:$0xff] }
  0x35   : > { %6165 = vmatprep.mubr.msk.f32.mxu0 %vm7019_vm1, %v9375_v2  ;;  %v681_v38 = vcombine.high %v300_v32, %v300_v32  ;;  %v1368_v39 = vrot.slane %v1354_v26, %v7090_v7  ;;  %v1371_v40 = vcombine.low %v647_v19, %v655_v30  ;;  %v656_v41 = vcombine.high %v654_v31, %v654_v31 }
  0x36   : > { %v671_v42 = vrot.slane %v657_v33, %v7090_v7  ;;  %v1378_v44 = vrot.slane %v1370_v34, %v7090_v7  ;;  %v1388_v45 = vcombine.low %v664_v28, %v672_v37  ;;  %v698_v48 = vcombine.high %v301_v43, %v301_v43 }
  0x37   : > { %v695_v47 = vrot.slane %v681_v38, %v7090_v7  ;;  %v1369_v49 = vcombine.low %v1361_v36, %v1368_v39  ;;  %v1385_v50 = vrot.slane %v1371_v40, %v7090_v7  ;;  %v1387_v51 = vcombine.low %v654_v31, %v656_v41  ;;  %v5910_v39 = vld.sshfl [vmem:[%s7087_s8 + $0xd0] sm:$0x3 pattern:$0x76325410] }
  0x38   : > { %6166 = vmatmul.mubr.msk.f32.gmra.mrb[12].mxu0 %vm1892_vm2, %v1267_v46  ;;  %v688_v46 = vrot.slane %v300_v32, %v7090_v7  ;;  %v673_v53 = vcombine.high %v671_v42, %v671_v42  ;;  %v705_v56 = vrot.slane %v301_v43, %v7090_v7  ;;  %v1402_v57 = vrot.slane %v1388_v45, %v7090_v7 }
  0x39   : > { %6168 = vmatprep.mubr.msk.f32.mxu0 %vm7019_vm1, %v9375_v2  ;;  %v697_v59 = vcombine.high %v695_v47, %v695_v47  ;;  %v712_v60 = vrot.slane %v698_v48, %v7090_v7  ;;  %v1386_v61 = vcombine.low %v1378_v44, %v1385_v50  ;;  %v1395_v62 = vrot.slane %v1387_v51, %v7090_v7 }
  0x3a   : > { %v696_v55 = vcombine.high %v688_v46, %v688_v46  ;;  %v1404_v63 = vcombine.low %v671_v42, %v673_v53  ;;  %v722_v0 = vcombine.high %v303_v54, %v303_v54  ;;  %v713_v9 = vcombine.high %v705_v56, %v705_v56 }
  0x3b   : > { %v1422_v8 = vcombine.low %v697_v59, %v705_v56  ;;  %v714_v10 = vcombine.high %v712_v60, %v712_v60  ;;  %v1403_v11 = vcombine.low %v1395_v62, %v1402_v57  ;;  %v739_v15 = vcombine.high %v304_v1, %v304_v1  ;;  %v310_v56 = vld [vmem:[%s7087_s8 + $0xf8] sm:$0xff] }
  0x3c   : > { %6169 = vmatmul.mubr.msk.f32.gmra.mrb[14].mxu0 %vm1892_vm2, %v1284_v52  ;;  %v5908_v52 = vld.sshfl [vmem:[%s7087_s8 + $0xa0] sm:$0x3 pattern:$0x76325410]  ;;  %v1421_v3 = vcombine.low %v696_v55, %v695_v47  ;;  %v1412_v12 = vrot.slane %v1404_v63, %v7090_v7  ;;  %v736_v14 = vrot.slane %v722_v0, %v7090_v7  ;;  %v1438_v19 = vcombine.low %v713_v9, %v712_v60 }
  0x3d   : > { %6171 = vmatprep.mubr.msk.f32.mxu0 %vm7019_vm1, %v9375_v2  ;;  %v1405_v58 = vcombine.low %v5908_v52, %v688_v46  ;;  %v1436_v18 = vrot.slane %v1422_v8, %v7090_v7  ;;  %v1439_v20 = vcombine.low %v714_v10, %v5909_v13  ;;  %v746_v21 = vrot.slane %v304_v1, %v7090_v7  ;;  %v309_v46 = vld [vmem:[%s7087_s8 + $0xf0] sm:$0xff]  ;;  %v312_v13 = vld [vmem:[%s7087_s8 + $0x108] sm:$0xff] }
  0x3e   : > { %v1429_v16 = vrot.slane %v1421_v3, %v7090_v7  ;;  %v738_v23 = vcombine.high %v736_v14, %v736_v14  ;;  %v753_v24 = vrot.slane %v739_v15, %v7090_v7  ;;  %v1446_v28 = vrot.slane %v1438_v19, %v7090_v7  ;;  %v5911_v3 = vld.sshfl [vmem:[%s7087_s8 + $0xe8] sm:$0x3 pattern:$0x76325410] }
  0x3f   : > { %v1419_v6 = vrot.slane %v1405_v58, %v7090_v7  ;;  %v754_v30 = vcombine.high %v746_v21, %v746_v21  ;;  %v763_v33 = vcombine.high %v306_v25, %v306_v25  ;;  %v770_v34 = vrot.slane %v306_v25, %v7090_v7 }
  0x40   : > { %6172 = vmatmul.mubr.msk.f32.gmra.mrb[16].mxu0 %vm1892_vm2, %v1301_v4  ;;  %v729_v4 = vrot.slane %v303_v54, %v7090_v7  ;;  %v1437_v27 = vcombine.low %v1429_v16, %v1436_v18  ;;  %v1456_v31 = vcombine.low %v736_v14, %v738_v23  ;;  %v755_v32 = vcombine.high %v753_v24, %v753_v24  ;;  %v5912_v23 = vld.sshfl [vmem:[%s7087_s8 + $0x100] sm:$0x3 pattern:$0x76325410] }
  0x41   : > { %6174 = vmatprep.mubr.msk.f32.mxu0 %vm7019_vm1, %v9375_v2  ;;  %v1420_v22 = vcombine.low %v1412_v12, %v1419_v6  ;;  %v1472_v38 = vcombine.low %v746_v21, %v754_v30  ;;  %v777_v44 = vrot.slane %v763_v33, %v7090_v7  ;;  %v778_v45 = vcombine.high %v770_v34, %v770_v34 }
  0x42   : > { %v1470_v42 = vrot.slane %v1456_v31, %v7090_v7  ;;  %v1473_v43 = vcombine.low %v753_v24, %v755_v32  ;;  %v1489_v47 = vcombine.low %v5910_v39, %v770_v34  ;;  %v811_v52 = vrot.slane %v309_v46, %v7090_v7  ;;  %v313_v24 = vld [vmem:[%s7087_s8 + $0x110] sm:$0xff] }
  0x43   : > { %v779_v48 = vcombine.high %v777_v44, %v777_v44  ;;  %v1490_v55 = vcombine.low %v778_v45, %v777_v44  ;;  %v804_v57 = vcombine.high %v309_v46, %v309_v46  ;;  %v828_v63 = vrot.slane %v310_v56, %v7090_v7 }
  0x44   : > { %6175 = vmatmul.mubr.msk.f32.gmra.mrb[18].mxu0 %vm1892_vm2, %v1318_v17  ;;  %v737_v17 = vcombine.high %v729_v4, %v729_v4  ;;  %v1487_v54 = vrot.slane %v1473_v43, %v7090_v7  ;;  %v1497_v58 = vrot.slane %v1489_v47, %v7090_v7  ;;  %v819_v62 = vcombine.high %v811_v52, %v811_v52 }
  0x45   : > { %6177 = vmatprep.mubr.msk.f32.mxu0 %vm7019_vm1, %v9375_v2  ;;  %v1504_v1 = vrot.slane %v1490_v55, %v7090_v7  ;;  %v821_v6 = vcombine.high %v310_v56, %v310_v56  ;;  %v836_v12 = vcombine.high %v828_v63, %v828_v63  ;;  %v852_v18 = vrot.slane %v312_v13, %v7090_v7 }
  0x46   : > { %v1455_v26 = vcombine.low %v729_v4, %v737_v17  ;;  %v818_v4 = vrot.slane %v804_v57, %v7090_v7  ;;  %v845_v17 = vcombine.high %v312_v13, %v312_v13  ;;  %v869_v34 = vrot.slane %v313_v24, %v7090_v7  ;;  %v318_v57 = vld [vmem:[%s7087_s8 + $0x138] sm:$0xff] }
  0x47   : > { %v1505_v14 = vcombine.low %v1497_v58, %v1504_v1  ;;  %v835_v16 = vrot.slane %v821_v6, %v7090_v7  ;;  %v1558_v30 = vcombine.low %v5912_v23, %v852_v18  ;;  %v860_v31 = vcombine.high %v852_v18, %v852_v18 }
  0x48   : > { %6178 = vmatmul.mubr.msk.f32.gmra.mrb[20].mxu0 %vm1892_vm2, %v1335_v29  ;;  %v1453_v29 = vrot.slane %v1439_v20, %v7090_v7  ;;  %v1463_v36 = vrot.slane %v1455_v26, %v7090_v7  ;;  %v820_v15 = vcombine.high %v818_v4, %v818_v4  ;;  %v877_v43 = vcombine.high %v869_v34, %v869_v34 }
  0x49   : > { %6180 = vmatprep.mubr.msk.f32.mxu0 %vm7019_vm1, %v9375_v2  ;;  %v837_v26 = vcombine.high %v835_v16, %v835_v16 }
  0x4a   : > { %v1454_v37 = vcombine.low %v1446_v28, %v1453_v29  ;;  %v1471_v53 = vcombine.low %v1463_v36, %v1470_v42  ;;  %v1540_v25 = vcombine.low %v818_v4, %v820_v15  ;;  %v862_v28 = vcombine.high %v313_v24, %v313_v24  ;;  %v315_v29 = vld [vmem:[%s7087_s8 + $0x120] sm:$0xff] }
  0x4b   : > { %v893_v44 = vrot.slane %v315_v29, %v7090_v7 }
  0x4c   : > { %6181 = vmatmul.mubr.msk.f32.gmra.mrb[22].mxu0 %vm1892_vm2, %v1352_v35  ;;  %v307_v35 = vld [vmem:[%s7087_s8 + $0xe0] sm:$0xff]  ;;  %v1548_v36 = vrot.slane %v1540_v25, %v7090_v7  ;;  %v876_v39 = vrot.slane %v862_v28, %v7090_v7 }
  0x4d   : > { %6183 = vmatprep.mubr.msk.f32.mxu0 %vm7019_vm1, %v9375_v2  ;;  %v780_v40 = vcombine.high %v307_v35, %v307_v35  ;;  %v787_v41 = vrot.slane %v307_v35, %v7090_v7  ;;  %v886_v35 = vcombine.high %v315_v29, %v315_v29 }
  0x4f   : > { %v794_v50 = vrot.slane %v780_v40, %v7090_v7  ;;  %v795_v51 = vcombine.high %v787_v41, %v787_v41  ;;  %v1506_v59 = vcombine.low %v779_v48, %v787_v41  ;;  %v316_v40 = vld [vmem:[%s7087_s8 + $0x128] sm:$0xff]  ;;  %v1572_v41 = vrot.slane %v1558_v30, %v7090_v7 }
  0x50   : > { %6184 = vmatmul.mubr.msk.f32.gmra.mrb[24].mxu0 %vm1892_vm2, %v1369_v49  ;;  %v1480_v49 = vrot.slane %v1472_v38, %v7090_v7  ;;  %v900_v45 = vrot.slane %v886_v35, %v7090_v7  ;;  %v903_v46 = vcombine.high %v316_v40, %v316_v40  ;;  %v910_v55 = vrot.slane %v316_v40, %v7090_v7 }
  0x51   : > { %6186 = vmatprep.mubr.msk.f32.mxu0 %vm7019_vm1, %v9375_v2  ;;  %v1507_v60 = vcombine.low %v795_v51, %v794_v50  ;;  %v1514_v8 = vrot.slane %v1506_v59, %v7090_v7  ;;  %v5913_v51 = vld.sshfl [vmem:[%s7087_s8 + $0x118] sm:$0x3 pattern:$0x76325410] }
  0x52   : > { %v1488_v0 = vcombine.low %v1480_v49, %v1487_v54  ;;  %v902_v54 = vcombine.high %v900_v45, %v900_v45  ;;  %v917_v56 = vrot.slane %v903_v46, %v7090_v7 }
  0x53   : > { %v1521_v9 = vrot.slane %v1507_v60, %v7090_v7  ;;  %v1591_v60 = vcombine.low %v877_v43, %v876_v39 }
  0x54   : > { %6187 = vmatmul.mubr.msk.f32.gmra.mrb[26].mxu0 %vm1892_vm2, %v1386_v61  ;;  %v796_v61 = vcombine.high %v794_v50, %v794_v50  ;;  %v878_v50 = vcombine.high %v876_v39, %v876_v39  ;;  %v1609_v1 = vcombine.low %v900_v45, %v902_v54  ;;  %v919_v4 = vcombine.high %v917_v56, %v917_v56  ;;  %v324_v45 = vld [vmem:[%s7087_s8 + $0x168] sm:$0xff]  ;;  %v325_v54 = vld [vmem:[%s7087_s8 + $0x170] sm:$0xff] }
  0x55   : > { %6189 = vmatprep.mubr.msk.f32.mxu0 %vm7019_vm1, %v9375_v2  ;;  %v1522_v19 = vcombine.low %v1514_v8, %v1521_v9  ;;  %v1599_v8 = vrot.slane %v1591_v60, %v7090_v7 }
  0x56   : > { %v1523_v10 = vcombine.low %v796_v61, %v5911_v3  ;;  %v1592_v61 = vcombine.low %v878_v50, %v5913_v51  ;;  %v918_v3 = vcombine.high %v910_v55, %v910_v55 }
  0x58   : > { %6190 = vmatmul.mubr.msk.f32.gmra.mrb[28].mxu0 %vm1892_vm2, %v1403_v11  ;;  %v1524_v11 = vcombine.low %v811_v52, %v819_v62  ;;  %v1531_v20 = vrot.slane %v1523_v10, %v7090_v7  ;;  %v927_v62 = vcombine.high %v318_v57, %v318_v57  ;;  %v1606_v9 = vrot.slane %v1592_v61, %v7090_v7  ;;  %v319_v10 = vld [vmem:[%s7087_s8 + $0x140] sm:$0xff] }
  0x59   : > { %6192 = vmatprep.mubr.msk.f32.mxu0 %vm7019_vm1, %v9375_v2  ;;  %v1625_v15 = vcombine.low %v910_v55, %v918_v3  ;;  %v1016_v55 = vrot.slane %v324_v45, %v7090_v7 }
  0x5a   : > { %v1538_v21 = vrot.slane %v1524_v11, %v7090_v7  ;;  %v941_v11 = vrot.slane %v927_v62, %v7090_v7  ;;  %v1607_v18 = vcombine.low %v1599_v8, %v1606_v9 }
  0x5b   : > { %v1633_v25 = vrot.slane %v1625_v15, %v7090_v7  ;;  %v328_v15 = vld [vmem:[%s7087_s8 + $0x188] sm:$0xff] }
  0x5c   : > { %6193 = vmatmul.mubr.msk.f32.gmra.mrb[30].mxu0 %vm1892_vm2, %v1420_v22  ;;  %v1541_v22 = vcombine.low %v828_v63, %v836_v12  ;;  %v1539_v32 = vcombine.low %v1531_v20, %v1538_v21  ;;  %v934_v63 = vrot.slane %v318_v57, %v7090_v7  ;;  %v951_v20 = vrot.slane %v319_v10, %v7090_v7  ;;  %v321_v21 = vld [vmem:[%s7087_s8 + $0x150] sm:$0xff] }
  0x5d   : > { %6195 = vmatprep.mubr.msk.f32.mxu0 %vm7019_vm1, %v9375_v2  ;;  %v943_v28 = vcombine.high %v941_v11, %v941_v11 }
  0x5e   : > { %v1555_v33 = vrot.slane %v1541_v22, %v7090_v7  ;;  %v942_v12 = vcombine.high %v934_v63, %v934_v63  ;;  %v959_v30 = vcombine.high %v951_v20, %v951_v20 }
  0x5f   : > { %v1659_v39 = vcombine.low %v943_v28, %v951_v20 }
  0x60   : > { %6196 = vmatmul.mubr.msk.f32.gmra.mrb[32].mxu0 %vm1892_vm2, %v1437_v27  ;;  %v859_v27 = vrot.slane %v845_v17, %v7090_v7  ;;  %v1556_v47 = vcombine.low %v1548_v36, %v1555_v33  ;;  %v5914_v17 = vld.sshfl [vmem:[%s7087_s8 + $0x130] sm:$0x3 pattern:$0x76325410]  ;;  %v1643_v23 = vcombine.low %v942_v12, %v941_v11 }
  0x61   : > { %6198 = vmatprep.mubr.msk.f32.mxu0 %vm7019_vm1, %v9375_v2  ;;  %v1642_v22 = vcombine.low %v5914_v17, %v934_v63  ;;  %v1667_v50 = vrot.slane %v1659_v39, %v7090_v7 }
  0x62   : > { %v861_v38 = vcombine.high %v859_v27, %v859_v27  ;;  %v1574_v42 = vcombine.low %v860_v31, %v859_v27  ;;  %v975_v27 = vrot.slane %v321_v21, %v7090_v7  ;;  %v968_v31 = vcombine.high %v321_v21, %v321_v21 }
  0x63   : > { %v1650_v33 = vrot.slane %v1642_v22, %v7090_v7 }
  0x64   : > { %6199 = vmatmul.mubr.msk.f32.gmra.mrb[34].mxu0 %vm1892_vm2, %v1454_v37  ;;  %v1557_v37 = vcombine.low %v835_v16, %v837_v26  ;;  %v1575_v49 = vcombine.low %v861_v38, %v869_v34  ;;  %v1582_v52 = vrot.slane %v1574_v42, %v7090_v7  ;;  %v1626_v16 = vcombine.low %v917_v56, %v919_v4 }
  0x65   : > { %6201 = vmatprep.mubr.msk.f32.mxu0 %vm7019_vm1, %v9375_v2  ;;  %v1657_v34 = vrot.slane %v1643_v23, %v7090_v7  ;;  %v982_v42 = vrot.slane %v968_v31, %v7090_v7  ;;  %v1024_v4 = vcombine.high %v1016_v55, %v1016_v55  ;;  %v1074_v31 = vrot.slane %v328_v15, %v7090_v7 }
  0x66   : > { %v1565_v48 = vrot.slane %v1557_v37, %v7090_v7  ;;  %v1589_v59 = vrot.slane %v1575_v49, %v7090_v7  ;;  %v1640_v26 = vrot.slane %v1626_v16, %v7090_v7  ;;  %v983_v37 = vcombine.high %v975_v27, %v975_v27 }
  0x67   : > { %v1009_v49 = vcombine.high %v324_v45, %v324_v45 }
  0x68   : > { %6202 = vmatmul.mubr.msk.f32.gmra.mrb[36].mxu0 %vm1892_vm2, %v1471_v53  ;;  %v901_v53 = vcombine.high %v893_v44, %v893_v44  ;;  %v1573_v58 = vcombine.low %v1565_v48, %v1572_v41  ;;  %v1590_v6 = vcombine.low %v1582_v52, %v1589_v59  ;;  %v1641_v35 = vcombine.low %v1633_v25, %v1640_v26  ;;  %v5915_v41 = vld.sshfl [vmem:[%s7087_s8 + $0x148] sm:$0x3 pattern:$0x76325410] }
  0x69   : > { %6204 = vmatprep.mubr.msk.f32.mxu0 %vm7019_vm1, %v9375_v2  ;;  %v984_v52 = vcombine.high %v982_v42, %v982_v42  ;;  %v1023_v60 = vrot.slane %v1009_v49, %v7090_v7  ;;  %v1067_v25 = vcombine.high %v328_v15, %v328_v15  ;;  %v5917_v26 = vld.sshfl [vmem:[%s7087_s8 + $0x178] sm:$0x3 pattern:$0x76325410]  ;;  %v4890_v15 = vld [vmem:[%s9367_s3 + $0x28] sm:$0xff] }
  0x6b   : > { %v1693_v62 = vcombine.low %v982_v42, %v984_v52  ;;  %v1025_v9 = vcombine.high %v1023_v60, %v1023_v60  ;;  %v1727_v17 = vcombine.low %v1024_v4, %v1023_v60  ;;  %v5918_v52 = vld.sshfl [vmem:[%s7087_s8 + $0x190] sm:$0x3 pattern:$0x76325410] }
  0x6c   : > { %6205 = vmatmul.mubr.msk.f32.gmra.mrb[38].mxu0 %vm1892_vm2, %v1488_v0  ;;  %v1608_v0 = vcombine.low %v893_v44, %v901_v53  ;;  %v1658_v44 = vcombine.low %v1650_v33, %v1657_v34 }
  0x6d   : > { %6207 = vmatprep.mubr.msk.f32.mxu0 %vm7019_vm1, %v9375_v2  ;;  %v1701_v11 = vrot.slane %v1693_v62, %v7090_v7 }
  0x6e   : > { %v1616_v13 = vrot.slane %v1608_v0, %v7090_v7  ;;  %v1026_v0 = vcombine.high %v325_v54, %v325_v54 }
  0x70   : > { %6208 = vmatmul.mubr.msk.f32.gmra.mrb[40].mxu0 %vm1892_vm2, %v1505_v14  ;;  %v1623_v14 = vrot.slane %v1609_v1, %v7090_v7  ;;  %v327_v1 = vld [vmem:[%s7087_s8 + $0x180] sm:$0xff] }
  0x71   : > { %6210 = vmatprep.mubr.msk.f32.mxu0 %vm7019_vm1, %v9375_v2  ;;  %v1057_v21 = vrot.slane %v327_v1, %v7090_v7 }
  0x72   : > { %v1624_v24 = vcombine.low %v1616_v13, %v1623_v14  ;;  %v1040_v13 = vrot.slane %v1026_v0, %v7090_v7  ;;  %v1050_v14 = vcombine.high %v327_v1, %v327_v1  ;;  %v4886_v0 = vld [vmem:[%s9367_s3 + $0x8] sm:$0xff]  ;;  %v5901_v1 = vld [vmem:[%s9366_s2] ss:$0 sm:$0xff] }
  0x74   : > { %6211 = vmatmul.mubr.msk.f32.gmra.mrb[42].mxu0 %vm1892_vm2, %v1522_v19  ;;  %v944_v19 = vcombine.high %v319_v10, %v319_v10  ;;  %v1033_v10 = vrot.slane %v325_v54, %v7090_v7  ;;  %v1042_v23 = vcombine.high %v1040_v13, %v1040_v13 }
  0x75   : > { %6213 = vmatprep.mubr.msk.f32.mxu0 %vm7019_vm1, %v9375_v2 }
  0x76   : > { %v958_v29 = vrot.slane %v944_v19, %v7090_v7  ;;  %v1728_v19 = vcombine.low %v1025_v9, %v1033_v10  ;;  %v1041_v20 = vcombine.high %v1033_v10, %v1033_v10  ;;  %v1745_v34 = vcombine.low %v1042_v23, %v5917_v26  ;;  %v4887_v9 = vld [vmem:[%s9367_s3 + $0x10] sm:$0xff]  ;;  %v4888_v10 = vld [vmem:[%s9367_s3 + $0x18] sm:$0xff] }
  0x78   : > { %6214 = vmatmul.mubr.msk.f32.gmra.mrb[44].mxu0 %vm1892_vm2, %v1539_v32  ;;  %v322_v32 = vld [vmem:[%s7087_s8 + $0x158] sm:$0xff]  ;;  %v960_v36 = vcombine.high %v958_v29, %v958_v29  ;;  %v1660_v40 = vcombine.low %v959_v30, %v958_v29  ;;  %v1742_v29 = vrot.slane %v1728_v19, %v7090_v7  ;;  %v1065_v30 = vcombine.high %v1057_v21, %v1057_v21 }
  0x79   : > { %6216 = vmatprep.mubr.msk.f32.mxu0 %vm7019_vm1, %v9375_v2  ;;  %v985_v38 = vcombine.high %v322_v32, %v322_v32  ;;  %v992_v43 = vrot.slane %v322_v32, %v7090_v7  ;;  %v330_v32 = vld [vmem:[%s7087_s8 + $0x198] sm:$0xff]  ;;  %v1744_v33 = vcombine.low %v1041_v20, %v1040_v13  ;;  %v4891_v20 = vld [vmem:[%s9367_s3 + $0x30] sm:$0xff] }
  0x7a   : > { %v1676_v46 = vcombine.low %v960_v36, %v5915_v41  ;;  %v1674_v51 = vrot.slane %v1660_v40, %v7090_v7  ;;  %v1081_v36 = vrot.slane %v1067_v25, %v7090_v7  ;;  %v1761_v39 = vcombine.low %v1057_v21, %v1065_v30  ;;  %v4892_v21 = vld [vmem:[%s9367_s3 + $0x38] sm:$0xff] }
  0x7b   : > { %v999_v48 = vrot.slane %v985_v38, %v7090_v7  ;;  %v1000_v53 = vcombine.high %v992_v43, %v992_v43  ;;  %v1082_v40 = vcombine.high %v1074_v31, %v1074_v31  ;;  %v1098_v41 = vrot.slane %v330_v32, %v7090_v7 }
  0x7c   : > { %6217 = vmatmul.mubr.msk.f32.gmra.mrb[46].mxu0 %vm1892_vm2, %v1556_v47  ;;  %v1677_v47 = vcombine.low %v975_v27, %v983_v37  ;;  %v1684_v56 = vrot.slane %v1676_v46, %v7090_v7  ;;  %v1675_v61 = vcombine.low %v1667_v50, %v1674_v51  ;;  %v1735_v27 = vrot.slane %v1727_v17, %v7090_v7 }
  0x7d   : > { %6219 = vmatprep.mubr.msk.f32.mxu0 %vm7019_vm1, %v9375_v2  ;;  %v1001_v59 = vcombine.high %v999_v48, %v999_v48  ;;  %v1694_v63 = vcombine.low %v992_v43, %v1000_v53  ;;  %v1091_v37 = vcombine.high %v330_v32, %v330_v32  ;;  %v1752_v42 = vrot.slane %v1744_v33, %v7090_v7 }
  0x7e   : > { %v1691_v57 = vrot.slane %v1677_v47, %v7090_v7  ;;  %v1743_v38 = vcombine.low %v1735_v27, %v1742_v29  ;;  %v1759_v43 = vrot.slane %v1745_v34, %v7090_v7  ;;  %v1083_v45 = vcombine.high %v1081_v36, %v1081_v36  ;;  %v4894_v29 = vld [vmem:[%s9367_s3 + $0x48] sm:$0xff] }
  0x7f   : > { %v1710_v8 = vcombine.low %v999_v48, %v1001_v59  ;;  %v1708_v12 = vrot.slane %v1694_v63, %v7090_v7  ;;  %v1769_v46 = vrot.slane %v1761_v39, %v7090_v7  ;;  %v1778_v47 = vcombine.low %v1074_v31, %v1082_v40  ;;  %v4885_v63 = vld [vmem:[%s9367_s3] sm:$0xff] }
  0x80   : > { %6220 = vmatmul.mubr.msk.f32.gmra.mrb[48].mxu0 %vm1892_vm2, %v1573_v58  ;;  %v5916_v58 = vld.sshfl [vmem:[%s7087_s8 + $0x160] sm:$0x3 pattern:$0x76325410]  ;;  %v7388_v48 = vrot.slane %v1091_v37, %v7090_v7  ;;  %v1760_v49 = vcombine.low %v1752_v42, %v1759_v43  ;;  %v1779_v51 = vcombine.low %v1081_v36, %v1083_v45  ;;  %v1106_v53 = vcombine.high %v1098_v41, %v1098_v41  ;;  %v4896_v36 = vld [vmem:[%s9367_s3 + $0x58] sm:$0xff]  ;;  %v4898_v45 = vld [vmem:[%s9367_s3 + $0x68] sm:$0xff] }
  0x81   : > { %6222 = vmatprep.mubr.msk.f32.mxu0 %vm7019_vm1, %v9375_v2  ;;  %v1711_v3 = vcombine.low %v5916_v58, %v1016_v55  ;;  %v1709_v22 = vcombine.low %v1701_v11, %v1708_v12  ;;  %v1795_v54 = vcombine.low %v5918_v52, %v1098_v41  ;;  %v6383_v4 = vpack.c.bf16 %v4886_v0, %v4885_v63 }
  0x82   : > { %9449 = vst [vmem:[#allocation2_spill] sm:$0xff] %v7388_v48  ;;  %v1796_v58 = vcombine.low %v1106_v53, %v7388_v48  ;;  %v6386_v11 = vpack.c.bf16 %v4888_v10, %v4887_v9 }
  0x83   : > { %v1725_v16 = vrot.slane %v1711_v3, %v7090_v7  ;;  %v1803_v60 = vrot.slane %v1795_v54, %v7090_v7  ;;  %v9372_v3 = vmov 0.0|0.0  }
  0x84   : > { %6223 = vmatmul.mubr.msk.f32.gmra.mrb[50].mxu0 %vm1892_vm2, %v1590_v6  ;;  %v1692_v6 = vcombine.low %v1684_v56, %v1691_v57  ;;  %v1786_v56 = vrot.slane %v1778_v47, %v7090_v7  ;;  %v1793_v57 = vrot.slane %v1779_v51, %v7090_v7  ;;  %6446 = vmatprep.subr.bf16.mxu1 %v9372_v3 }
  0x85   : > { %6225 = vmatprep.mubr.msk.f32.mxu0 %vm7019_vm1, %v9375_v2  ;;  %6382 = vmatprep.subr.bf16.mxu0 %v9372_v3 }
  0x86   : > { %v1794_v59 = vcombine.low %v1786_v56, %v1793_v57  ;;  %6462 = vmatpush1.bf16.msra.mxu1 %v6383_v4  ;;  %6384 = vmatpush1.bf16.msra.mxu0 %v6383_v4  ;;  %v4899_v57 = vld [vmem:[%s9367_s3 + $0x70] sm:$0xff] }
  0x87   : > { %6447 = vmatprep.subr.bf16.mxu1 %v9372_v3  ;;  %6385 = vmatprep.subr.bf16.mxu0 %v9372_v3 }
  0x88   : > { %6226 = vmatmul.mubr.msk.f32.gmra.mrb[52].mxu0 %vm1892_vm2, %v1607_v18  ;;  %v1718_v18 = vrot.slane %v1710_v8, %v7090_v7  ;;  %v1139_v8 = vrot.slane %v5901_v1, %v7090_v7 }
  0x89   : > { %6228 = vmatprep.mubr.msk.f32.mxu0 %vm7019_vm1, %v9375_v2 }
  0x8a   : > { %v1726_v28 = vcombine.low %v1718_v18, %v1725_v16  ;;  %v1147_v13 = vcombine.high %v1139_v8, %v1139_v8  ;;  %6463 = vmatpush1.bf16.msra.mxu1 %v6386_v11  ;;  %6387 = vmatpush1.bf16.msra.mxu0 %v6386_v11  ;;  %v1854_v17 = vcombine.low %v1139_v8, %v1139_v8  ;;  %v4901_v11 = vld [vmem:[%s9367_s3 + $0x80] sm:$0xff] }
  0x8b   : > { %6448 = vmatprep.subr.bf16.mxu1 %v9372_v3  ;;  %6388 = vmatprep.subr.bf16.mxu0 %v9372_v3 }
  0x8c   : > { %6229 = vmatmul.mubr.msk.f32.gmra.mrb[54].mxu0 %vm1892_vm2, %v1624_v24  ;;  %v1064_v24 = vrot.slane %v1050_v14, %v7090_v7  ;;  %v4889_v14 = vld [vmem:[%s9367_s3 + $0x20] sm:$0xff]  ;;  %v7455_v25 = vrot.slane %v1854_v17, %v7090_v7  ;;  %v1837_v37 = vcombine.low %v1139_v8, %v1147_v13 }
  0x8d   : > { %6231 = vmatprep.mubr.msk.f32.mxu0 %vm7019_vm1, %v9375_v2  ;;  %v6389_v16 = vpack.c.bf16 %v4890_v15, %v4889_v14 }
  0x8f   : > { %6464 = vmatpush1.bf16.msra.mxu1 %v6389_v16  ;;  %6390 = vmatpush1.bf16.msra.mxu0 %v6389_v16 }
  0x90   : > { %6232 = vmatmul.mubr.msk.f32.gmra.mrb[56].mxu0 %vm1892_vm2, %v1641_v35  ;;  %v1066_v35 = vcombine.high %v1064_v24, %v1064_v24  ;;  %6449 = vmatprep.subr.bf16.mxu1 %v9372_v3 }
  0x91   : > { %6234 = vmatprep.mubr.msk.f32.mxu0 %vm7019_vm1, %v9375_v2  ;;  %6391 = vmatprep.subr.bf16.mxu0 %v9372_v3 }
  0x94   : > { %6235 = vmatmul.mubr.msk.f32.gmra.mrb[58].mxu0 %vm1892_vm2, %v1658_v44  ;;  %v1762_v44 = vcombine.low %v1064_v24, %v1066_v35  ;;  %v4895_v35 = vld [vmem:[%s9367_s3 + $0x50] sm:$0xff] }
  0x95   : > { %6237 = vmatprep.mubr.msk.f32.mxu0 %vm7019_vm1, %v9375_v2 }
  0x96   : > { %v1776_v50 = vrot.slane %v1762_v44, %v7090_v7  ;;  %v4897_v44 = vld [vmem:[%s9367_s3 + $0x60] sm:$0xff] }
  0x97   : > { %v6401_v47 = vpack.c.bf16 %v4898_v45, %v4897_v44 }
  0x98   : > { %6238 = vmatmul.mubr.msk.f32.gmra.mrb[60].mxu0 %vm1892_vm2, %v1675_v61  ;;  %v1777_v55 = vcombine.low %v1769_v46, %v1776_v50  ;;  %v1810_v61 = vrot.slane %v1796_v58, %v7090_v7  ;;  %v7496_v46 = vrot.slane %v1837_v37, %v7090_v7  ;;  %v4900_v58 = vld [vmem:[%s9367_s3 + $0x78] sm:$0xff] }
  0x99   : > { %6240 = vmatprep.mubr.msk.f32.mxu0 %vm7019_vm1, %v9375_v2 }
  0x9a   : > { %v1811_v62 = vcombine.low %v1803_v60, %v1810_v61  ;;  %v6404_v60 = vpack.c.bf16 %v4900_v58, %v4899_v57 }
  0x9c   : > { %6241 = vmatmul.mubr.msk.f32.gmra.mrb[62].mxu0 %vm1892_vm2, %v1692_v6  ;;  %v1132_v6 = vcombine.high %v5901_v1, %v5901_v1 }
  0x9d   : > { %6243 = vmatprep.mubr.msk.f32.mxu0 %vm7019_vm1, %v9375_v2 }
  0x9e   : > { %v7433_v12 = vrot.slane %v1132_v6, %v7090_v7 }
  0xa0   : > { %6244 = vmatmul.mubr.msk.f32.gmra.mrb[64].mxu0 %vm1892_vm2, %v1709_v22  ;;  %v1855_v18 = vcombine.low %v1147_v13, %v7433_v12  ;;  %v1148_v19 = vcombine.high %v7433_v12, %v7433_v12  ;;  %v6392_v22 = vpack.c.bf16 %v4892_v21, %v4891_v20 }
  0xa1   : > { %6246 = vmatprep.mubr.msk.f32.mxu0 %vm7019_vm1, %v9375_v2 }
  0xa2   : > { %v7458_v26 = vrot.slane %v1855_v18, %v7090_v7  ;;  %v1871_v27 = vcombine.low %v1148_v19, %v1139_v8  ;;  %6465 = vmatpush1.bf16.msra.mxu1 %v6392_v22  ;;  %6393 = vmatpush1.bf16.msra.mxu0 %v6392_v22  ;;  %v1838_v43 = vcombine.low %v7433_v12, %v1148_v19  ;;  %v4902_v12 = vld [vmem:[%s9367_s3 + $0x88] sm:$0xff]  ;;  %v7534_v18 = vadd.s32 16, %v7081_v5 }
  0xa3   : > { %6450 = vmatprep.subr.bf16.mxu1 %v9372_v3  ;;  %6394 = vmatprep.subr.bf16.mxu0 %v9372_v3  ;;  %v6407_v14 = vpack.c.bf16 %v4902_v12, %v4901_v11 }
  0xa4   : > { %6247 = vmatmul.mubr.msk.f32.gmra.mrb[66].mxu0 %vm1892_vm2, %v1726_v28  ;;  %v4893_v28 = vld [vmem:[%s9367_s3 + $0x40] sm:$0xff]  ;;  %v7470_v33 = vcombine.low %v7455_v25, %v7458_v26  ;;  %v7473_v34 = vrot.slane %v1871_v27, %v7090_v7  ;;  %v7504_v56 = vrot.slane %v1838_v43, %v7090_v7  ;;  %vm2993_vm3 = vcmp.le.s32.totalorder %v7534_v18, 16 }
  0xa5   : > { %6249 = vmatprep.mubr.msk.f32.mxu0 %vm7019_vm1, %v9375_v2  ;;  %v6395_v31 = vpack.c.bf16 %v4894_v29, %v4893_v28  ;;  %v4903_v29 = vld [vmem:[%s9367_s3 + $0x90] sm:$0xff] }
  0xa6   : > { %v7486_v42 = vcombine.low %v7473_v34, %v7458_v26  ;;  %v7522_v10 = vcombine.low %v7504_v56, %v7496_v46  ;;  %v7544_v28 = vcombine.low %v7504_v56, %v7455_v25  ;;  %v7555_v37 = vcombine.low %v7458_v26, %v7473_v34 }
  0xa7   : > { %6466 = vmatpush1.bf16.msra.mxu1 %v6395_v31  ;;  %6396 = vmatpush1.bf16.msra.mxu0 %v6395_v31  ;;  %v7586_v12 = vcombine.low %v7496_v46, %v7504_v56 }
  0xa8   : > { %6250 = vmatmul.mubr.msk.f32.gmra.mrb[68].mxu0 %vm1892_vm2, %v1743_v38  ;;  %v6398_v38 = vpack.c.bf16 %v4896_v36, %v4895_v35  ;;  %6451 = vmatprep.subr.bf16.mxu1 %v9372_v3 }
  0xa9   : > { %6252 = vmatprep.mubr.msk.f32.mxu0 %vm7019_vm1, %v9375_v2  ;;  %6397 = vmatprep.subr.bf16.mxu0 %v9372_v3 }
  0xab   : > { %6467 = vmatpush1.bf16.msra.mxu1 %v6398_v38  ;;  %6399 = vmatpush1.bf16.msra.mxu0 %v6398_v38 }
  0xac   : > { %6253 = vmatmul.mubr.msk.f32.gmra.mrb[70].mxu0 %vm1892_vm2, %v1760_v49  ;;  %6452 = vmatprep.subr.bf16.mxu1 %v9372_v3 }
  0xad   : > { %6255 = vmatprep.mubr.msk.f32.mxu0 %vm7019_vm1, %v9375_v2  ;;  %6400 = vmatprep.subr.bf16.mxu0 %v9372_v3 }
  0xaf   : > { %6468 = vmatpush1.bf16.msra.mxu1 %v6401_v47  ;;  %6402 = vmatpush1.bf16.msra.mxu0 %v6401_v47 }
  0xb0   : > { %6256 = vmatmul.mubr.msk.f32.gmra.mrb[72].mxu0 %vm1892_vm2, %v1777_v55  ;;  %6453 = vmatprep.subr.bf16.mxu1 %v9372_v3 }
  0xb1   : > { %6258 = vmatprep.mubr.msk.f32.mxu0 %vm7019_vm1, %v9375_v2  ;;  %6403 = vmatprep.subr.bf16.mxu0 %v9372_v3 }
  0xb3   : > { %6469 = vmatpush1.bf16.msra.mxu1 %v6404_v60  ;;  %6405 = vmatpush1.bf16.msra.mxu0 %v6404_v60 }
  0xb4   : > { %6259 = vmatmul.mubr.msk.f32.gmra.mrb[74].mxu0 %vm1892_vm2, %v1794_v59  ;;  %v7514_v59 = vcombine.low %v7473_v34, %v7496_v46  ;;  %6454 = vmatprep.subr.bf16.mxu1 %v9372_v3 }
  0xb5   : > { %6261 = vmatprep.mubr.msk.f32.mxu0 %vm7019_vm1, %v9375_v2  ;;  %6406 = vmatprep.subr.bf16.mxu0 %v9372_v3 }
  0xb7   : > { %6470 = vmatpush1.bf16.msra.mxu1 %v6407_v14  ;;  %6408 = vmatpush1.bf16.msra.mxu0 %v6407_v14 }
  0xb8   : > { %6262 = vmatmul.mubr.msk.f32.gmra.mrb[76].mxu0 %vm1892_vm2, %v1811_v62  ;;  %6455 = vmatprep.subr.bf16.mxu1 %v9372_v3 }
  0xb9   : > { %6264 = vmatprep.mubr.msk.f32.mxu0 %vm7019_vm1, %v9375_v2  ;;  %6409 = vmatprep.subr.bf16.mxu0 %v9372_v3 }
  0xf3   : > { %v2045_v23 = vpop.f32.mrb[0].mxu0 }
  0xf4   : > { %v6149_v24 = vpop.f32.mrb[1].mxu0 }
  0xf7   : > { %v2050_v30 = vpop.f32.mrb[2].mxu0 }
  0xf8   : > { %v6152_v32 = vpop.f32.mrb[3].mxu0  ;;  %v4904_v30 = vld [vmem:[%s9367_s3 + $0x98] sm:$0xff] }
  0xf9   : > { %v6410_v36 = vpack.c.bf16 %v4904_v30, %v4903_v29 }
  0xfb   : > { %v2055_v39 = vpop.f32.mrb[4].mxu0  ;;  %6471 = vmatpush1.bf16.msra.mxu1 %v6410_v36  ;;  %6411 = vmatpush1.bf16.msra.mxu0 %v6410_v36 }
  0xfc   : > { %v2056_v40 = vadd.f32 %v2055_v39, %v7470_v33  ;;  %v6155_v41 = vpop.f32.mrb[5].mxu0  ;;  %6456 = vmatprep.subr.bf16.mxu1 %v9372_v3  ;;  %6412 = vmatprep.subr.bf16.mxu0 %v9372_v3 }
  0xfe   : > { %v2324_v49 = vcombine.high %v2056_v40, %v2056_v40  ;;  %v2331_v50 = vrot.slane %v2056_v40, %v7090_v7 }
  0xff   : > { %v2060_v51 = vpop.f32.mrb[6].mxu0 }
 0x100   : > { %v2338_v52 = vrot.slane %v2324_v49, %v7090_v7  ;;  %v2339_v53 = vcombine.high %v2331_v50, %v2331_v50  ;;  %v2061_v54 = vadd.f32 %v2060_v51, %v7486_v42  ;;  %v6158_v55 = vpop.f32.mrb[7].mxu0  ;;  %v4905_v49 = vld [vmem:[%s9367_s3 + $0xa0] sm:$0xff]  ;;  %v4906_v50 = vld [vmem:[%s9367_s3 + $0xa8] sm:$0xff] }
 0x102   : > { %v3041_v61 = vcombine.low %v2339_v53, %v2338_v52  ;;  %v2340_v62 = vcombine.high %v2338_v52, %v2338_v52  ;;  %v2341_v63 = vcombine.high %v2061_v54, %v2061_v54  ;;  %v2348_v0 = vrot.slane %v2061_v54, %v7090_v7 }
 0x103   : > { %v2065_v1 = vpop.f32.mrb[8].mxu0  ;;  %v6413_v54 = vpack.c.bf16 %v4906_v50, %v4905_v49 }
 0x104   : > { %v2355_v4 = vrot.slane %v2341_v63, %v7090_v7  ;;  %v2356_v6 = vcombine.high %v2348_v0, %v2348_v0  ;;  %v3042_v8 = vcombine.low %v2340_v62, %v2348_v0  ;;  %v6161_v9 = vpop.f32.mrb[9].mxu0  ;;  %v2066_v13 = vadd.f32 %v2065_v1, %v7514_v59 }
 0x105   : > { %v3049_v15 = vrot.slane %v3041_v61, %v7090_v7  ;;  %6472 = vmatpush1.bf16.msra.mxu1 %v6413_v54  ;;  %6414 = vmatpush1.bf16.msra.mxu0 %v6413_v54 }
 0x106   : > { %v3056_v16 = vrot.slane %v3042_v8, %v7090_v7  ;;  %v2357_v17 = vcombine.high %v2355_v4, %v2355_v4  ;;  %v3058_v19 = vcombine.low %v2356_v6, %v2355_v4  ;;  %v2358_v20 = vcombine.high %v2066_v13, %v2066_v13  ;;  %6457 = vmatprep.subr.bf16.mxu1 %v9372_v3 }
 0x107   : > { %v2365_v21 = vrot.slane %v2066_v13, %v7090_v7  ;;  %v2070_v22 = vpop.f32.mrb[10].mxu0  ;;  %6415 = vmatprep.subr.bf16.mxu0 %v9372_v3 }
 0x108   : > { %v7539_v23 = vcombine.low %v3049_v15, %v3056_v16  ;;  %v2071_v24 = vadd.f32 %v2070_v22, %v7522_v10  ;;  %v6164_v27 = vpop.f32.mrb[11].mxu0  ;;  %v2372_v31 = vrot.slane %v2358_v20, %v7090_v7  ;;  %v3066_v39 = vrot.slane %v3058_v19, %v7090_v7 }
 0x109   : > { %v2373_v32 = vcombine.high %v2365_v21, %v2365_v21  ;;  %v3059_v35 = vcombine.low %v2357_v17, %v2365_v21 }
 0x10a   : > { %v2375_v25 = vcombine.high %v2071_v24, %v2071_v24  ;;  %v2382_v38 = vrot.slane %v2071_v24, %v7090_v7  ;;  %v2374_v40 = vcombine.high %v2372_v31, %v2372_v31 }
 0x10b   : > { %v3073_v41 = vrot.slane %v3059_v35, %v7090_v7  ;;  %v3081_v43 = vrot.slane %v2373_v32, %v7090_v7  ;;  %v2075_v44 = vpop.f32.mrb[12].mxu0 }
 0x10c   : > { %v2389_v26 = vrot.slane %v2375_v25, %v7090_v7  ;;  %v2390_v34 = vcombine.high %v2382_v38, %v2382_v38  ;;  %v2076_v45 = vadd.f32 %v2075_v44, %v7544_v28  ;;  %v6167_v47 = vpop.f32.mrb[13].mxu0  ;;  %v3082_v52 = vcombine.low %v2372_v31, %v2374_v40 }
 0x10d   : > { %v7573_v51 = vcombine.low %v3066_v39, %v3073_v41  ;;  %v3797_v53 = vsel %vm2993_vm3, %v3081_v43, 0.0 }
 0x10e   : > { %v2391_v55 = vcombine.high %v2389_v26, %v2389_v26  ;;  %v3083_v57 = vcombine.low %v2382_v38, %v2390_v34  ;;  %v2392_v58 = vcombine.high %v2076_v45, %v2076_v45  ;;  %v2399_v60 = vrot.slane %v2076_v45, %v7090_v7 }
 0x10f   : > { %v3090_v61 = vrot.slane %v3082_v52, %v7090_v7  ;;  %v2080_v62 = vpop.f32.mrb[14].mxu0  ;;  %v9374_v63 = vrot.slane %v7573_v51, 1  ;;  %v3903_v0 = vrot.slane %v3797_v53, 1  ;;  %v4080_v1 = vrot.slane %v3797_v53, 2 }
 0x110   : > { %v3097_v4 = vrot.slane %v3083_v57, %v7090_v7  ;;  %v3099_v6 = vcombine.low %v2389_v26, %v2391_v55  ;;  %v2406_v8 = vrot.slane %v2392_v58, %v7090_v7  ;;  %v2407_v9 = vcombine.high %v2399_v60, %v2399_v60  ;;  %v6170_v11 = vpop.f32.mrb[15].mxu0 }
 0x111   : > { %v2081_v13 = vadd.f32 %v2080_v62, %v7555_v37  ;;  %v9377_v14 = vrot.slane %v7573_v51, 2  ;;  %v7594_v19 = vsel %vm3894_vm5, %v9374_v63, %v3903_v0 }
 0x112   : > { %v3098_v15 = vcombine.low %v3090_v61, %v3097_v4  ;;  %v3100_v16 = vcombine.low %v2399_v60, %v2407_v9  ;;  %v3122_v17 = vrot.slane %v2406_v8, %v7090_v7  ;;  %9450 = vst [vmem:[#allocation3_spill] sm:$0xff] %v7594_v19  ;;  %v3107_v46 = vrot.slane %v3099_v6, %v7090_v7 }
 0x113   : > { %v2408_v56 = vcombine.high %v2406_v8, %v2406_v8  ;;  %v2409_v20 = vcombine.high %v2081_v13, %v2081_v13  ;;  %v2416_v21 = vrot.slane %v2081_v13, %v7090_v7  ;;  %v2085_v22 = vpop.f32.mrb[16].mxu0  ;;  %v7606_v31 = vsel %vm4071_vm6, %v9377_v14, %v4080_v1 }
 0x114   : > { %v3114_v24 = vrot.slane %v3100_v16, %v7090_v7  ;;  %v3800_v27 = vsel %vm2993_vm3, %v3122_v17, 0.0  ;;  %v2086_v29 = vadd.f32 %v2085_v22, %v7555_v37  ;;  %v6173_v30 = vpop.f32.mrb[17].mxu0  ;;  %v7611_v32 = vsel %vm2982_vm4, %v3098_v15, 0.0 }
 0x115   : > { %v2423_v35 = vrot.slane %v2409_v20, %v7090_v7  ;;  %v2424_v36 = vcombine.high %v2416_v21, %v2416_v21  ;;  %v3123_v25 = vcombine.low %v2408_v56, %v2416_v21  ;;  %v3908_v39 = vrot.slane %v3800_v27, 1 }
 0x116   : > { %v7614_v38 = vcombine.low %v3107_v46, %v3114_v24  ;;  %v2426_v40 = vcombine.high %v2086_v29, %v2086_v29  ;;  %v2433_v41 = vrot.slane %v2086_v29, %v7090_v7  ;;  %v4085_v45 = vrot.slane %v3800_v27, 2 }
 0x117   : > { %v3124_v43 = vcombine.low %v2424_v36, %v2423_v35  ;;  %v3131_v44 = vrot.slane %v3123_v25, %v7090_v7  ;;  %v2425_v26 = vcombine.high %v2423_v35, %v2423_v35  ;;  %v2090_v34 = vpop.f32.mrb[18].mxu0  ;;  %v3905_v58 = vrot.slane %v7611_v32, 1 }
 0x118   : > { %v2440_v47 = vrot.slane %v2426_v40, %v7090_v7  ;;  %v2441_v49 = vcombine.high %v2433_v41, %v2433_v41  ;;  %v2091_v50 = vadd.f32 %v2090_v34, %v7586_v12  ;;  %v6176_v52 = vpop.f32.mrb[19].mxu0  ;;  %v4083_v53 = vrot.slane %v7614_v38, 2 }
 0x119   : > { %v3138_v54 = vrot.slane %v3124_v43, %v7090_v7  ;;  %v3140_v55 = vcombine.low %v2425_v26, %v2433_v41  ;;  %v3906_v57 = vrot.slane %v7614_v38, 1  ;;  %v4082_v9 = vrot.slane %v7611_v32, 2 }
 0x11a   : > { %v2442_v60 = vcombine.high %v2440_v47, %v2440_v47  ;;  %v3141_v61 = vcombine.low %v2441_v49, %v2440_v47  ;;  %v2443_v62 = vcombine.high %v2091_v50, %v2091_v50  ;;  %v2450_v0 = vrot.slane %v2091_v50, %v7090_v7 }
 0x11b   : > { %v3139_v1 = vcombine.low %v3131_v44, %v3138_v54  ;;  %v3148_v4 = vrot.slane %v3140_v55, %v7090_v7  ;;  %v2095_v6 = vpop.f32.mrb[20].mxu0  ;;  %v7629_v8 = vsel %vm4071_vm6, %v4083_v53, %v4085_v45  ;;  %v7643_v21 = vsel %vm3894_vm5, %v3906_v57, %v3908_v39 }
 0x11c   : > { %9451 = vst [vmem:[#allocation4_spill] sm:$0xff] %v7629_v8  ;;  %v3155_v11 = vrot.slane %v3141_v61, %v7090_v7  ;;  %v3163_v13 = vrot.slane %v2442_v60, %v7090_v7  ;;  %v2457_v15 = vrot.slane %v2443_v62, %v7090_v7  ;;  %v2458_v16 = vcombine.high %v2450_v0, %v2450_v0  ;;  %v6179_v17 = vpop.f32.mrb[21].mxu0 }
 0x11d   : > { %v7637_v46 = vsel %vm2982_vm4, %v3139_v1, 0.0  ;;  %v2096_v56 = vadd.f32 %v2095_v6, %v7586_v12  ;;  %v6494_v20 = vpack.i.bf16 %v7594_v19, %v7629_v8  ;;  %v7655_v26 = vsel %vm3894_vm5, %v3905_v58, %v3906_v57 }
 0x11e   : > { %9452 = vst [vmem:[#allocation5_spill] sm:$0xff] %v7637_v46  ;;  %v7645_v22 = vcombine.low %v3148_v4, %v3155_v11  ;;  %v2459_v24 = vcombine.high %v2457_v15, %v2457_v15  ;;  %v3164_v27 = vcombine.low %v2450_v0, %v2458_v16  ;;  %v3803_v29 = vsel %vm2993_vm3, %v3163_v13, 0.0  ;;  %9454 = vst [vmem:[#allocation7_spill] sm:$0xff] %v7655_v26 }
 0x11f   : > { %v2460_v30 = vcombine.high %v2096_v56, %v2096_v56  ;;  %v2467_v35 = vrot.slane %v2096_v56, %v7090_v7  ;;  %6495 = vrot.lane.b32.xlu0 %v6494_v20, %s7022_s15  ;;  %v2100_v36 = vpop.f32.mrb[22].mxu0  ;;  %v3913_v25 = vrot.slane %v3803_v29, 1  ;;  %v4090_v40 = vrot.slane %v3803_v29, 2 }
 0x120   : > { %9453 = vst [vmem:[#allocation6_spill] sm:$0xff] %v7645_v22  ;;  %v3165_v41 = vcombine.low %v2457_v15, %v2459_v24  ;;  %v2101_v39 = vadd.f32 %v2100_v36, %v7470_v33  ;;  %v6499_v43 = vpack.i.bf16 %v7606_v31, %v7645_v22  ;;  %v6182_v44 = vpop.f32.mrb[23].mxu0  ;;  %v3911_v47 = vrot.slane %v7645_v22, 1 }
 0x121   : > { %v2474_v34 = vrot.slane %v2460_v30, %v7090_v7  ;;  %v2475_v45 = vcombine.high %v2467_v35, %v2467_v35  ;;  %v4088_v49 = vrot.slane %v7645_v22, 2  ;;  %v3172_v50 = vrot.slane %v3164_v27, %v7090_v7 }
 0x122   : > { %v3179_v52 = vrot.slane %v3165_v41, %v7090_v7  ;;  %v2477_v54 = vcombine.high %v2101_v39, %v2101_v39  ;;  %v2484_v55 = vrot.slane %v2101_v39, %v7090_v7  ;;  %v7667_v58 = vsel %vm3894_vm5, %v3911_v47, %v3913_v25 }
 0x123   : > { %v2476_v60 = vcombine.high %v2474_v34, %v2474_v34  ;;  %v3181_v61 = vcombine.low %v2467_v35, %v2475_v45  ;;  %6500 = vrot.lane.b32.xlu0 %v6499_v43, %s7023_s16  ;;  %v2105_v57 = vpop.f32.mrb[24].mxu0  ;;  %v7670_v62 = vsel %vm4071_vm6, %v4088_v49, %v4090_v40  ;;  %v4087_v11 = vrot.slane %v7637_v46, 2 }
 0x124   : > { %9455 = vst [vmem:[#allocation8_spill] sm:$0xff] %v7670_v62  ;;  %v2491_v0 = vrot.slane %v2477_v54, %v7090_v7  ;;  %v2492_v1 = vcombine.high %v2484_v55, %v2484_v55  ;;  %v3204_v4 = vrot.slane %v2484_v55, %v7090_v7  ;;  %v6185_v6 = vpop.f32.mrb[25].mxu0  ;;  %v3180_v13 = vcombine.low %v3172_v50, %v3179_v52 }
 0x125   : > { %v3182_v15 = vcombine.low %v2474_v34, %v2476_v60  ;;  %v2106_v16 = vadd.f32 %v2105_v57, %v7486_v42  ;;  %v6504_v17 = vpack.i.bf16 %v7614_v38, %v7667_v58  ;;  %v6514_v27 = vpack.i.bf16 %v7643_v21, %v7670_v62 }
 0x126   : > { %v3205_v56 = vcombine.low %v2492_v1, %v2491_v0  ;;  %v7680_v20 = vsel %vm2993_vm3, %v3204_v4, 0.0  ;;  %v2493_v24 = vcombine.high %v2491_v0, %v2491_v0  ;;  %v3189_v29 = vrot.slane %v3181_v61, %v7090_v7 }
 0x127   : > { %v3196_v30 = vrot.slane %v3182_v15, %v7090_v7  ;;  %v3918_v35 = vrot.slane %v7680_v20, 1  ;;  %v2494_v36 = vcombine.high %v2106_v16, %v2106_v16  ;;  %6505 = vrot.lane.b32.xlu1 %v6504_v17, %s7024_s17  ;;  %v2110_v25 = vpop.f32.mrb[26].mxu0  ;;  %v2501_v41 = vrot.slane %v2106_v16, %v7090_v7  ;;  %6515 = vrot.lane.b32.xlu0 %v6514_v27, %s7022_s15 }
 0x128   : > { %v3213_v40 = vrot.slane %v3205_v56, %v7090_v7  ;;  %v2111_v39 = vadd.f32 %v2110_v25, %v7514_v59  ;;  %v7693_v43 = vsel %vm4071_vm6, %v4087_v11, %v4088_v49  ;;  %v6188_v44 = vpop.f32.mrb[27].mxu0  ;;  %v7702_v52 = vsel %vm2982_vm4, %v3180_v13, 0.0 }
 0x129   : > { %9456 = vst [vmem:[#allocation9_spill] sm:$0xff] %v7693_v43  ;;  %v7695_v34 = vcombine.low %v3189_v29, %v3196_v30  ;;  %v2508_v45 = vrot.slane %v2494_v36, %v7090_v7  ;;  %v6509_v50 = vpack.i.bf16 %v7655_v26, %v7693_v43  ;;  %9458 = vst [vmem:[#allocation11_spill] sm:$0xff] %v7702_v52 }
 0x12a   : > { %v2509_v54 = vcombine.high %v2501_v41, %v2501_v41  ;;  %v3206_v55 = vcombine.low %v2493_v24, %v2501_v41  ;;  %v2511_v60 = vcombine.high %v2111_v39, %v2111_v39  ;;  %v2518_v61 = vrot.slane %v2111_v39, %v7090_v7 }
 0x12b   : > { %9457 = vst [vmem:[#allocation10_spill] sm:$0xff] %v7695_v34  ;;  %v2510_v57 = vcombine.high %v2508_v45, %v2508_v45  ;;  %6510 = vrot.lane.b32.xlu1 %v6509_v50, %s7022_s15  ;;  %v7711_v49 = vsel %vm4071_vm6, %v4082_v9, %v4083_v53  ;;  %v2115_v0 = vpop.f32.mrb[28].mxu0  ;;  %v6524_v1 = vpack.i.bf16 %v7629_v8, %v7695_v34  ;;  %v3916_v4 = vrot.slane %v7695_v34, 1 }
 0x12c   : > { %9459 = vst [vmem:[#allocation12_spill] sm:$0xff] %v7711_v49  ;;  %v3220_v6 = vrot.slane %v3206_v55, %v7090_v7  ;;  %v3222_v11 = vcombine.low %v2509_v54, %v2508_v45  ;;  %v2525_v13 = vrot.slane %v2511_v60, %v7090_v7  ;;  %v2526_v15 = vcombine.high %v2518_v61, %v2518_v61  ;;  %v6191_v16 = vpop.f32.mrb[29].mxu0 }
 0x12d   : > { %v3223_v17 = vcombine.low %v2510_v57, %v2518_v61  ;;  %v6519_v56 = vpack.i.bf16 %v7711_v49, %v7702_v52  ;;  %v2116_v53 = vadd.f32 %v2115_v0, %v7522_v10  ;;  %v7722_v9 = vsel %vm3894_vm5, %v3916_v4, %v3918_v35 }
 0x12e   : > { %9460 = vst [vmem:[#allocation13_spill] sm:$0xff] %v7722_v9  ;;  %v3221_v24 = vcombine.low %v3213_v40, %v3220_v6  ;;  %v3230_v27 = vrot.slane %v3222_v11, %v7090_v7  ;;  %v2527_v29 = vcombine.high %v2525_v13, %v2525_v13  ;;  %v4095_v39 = vrot.slane %v7680_v20, 2 }
 0x12f   : > { %v3237_v30 = vrot.slane %v3223_v17, %v7090_v7  ;;  %6520 = vrot.lane.b32.xlu0 %v6519_v56, %s7023_s16  ;;  %v2528_v36 = vcombine.high %v2116_v53, %v2116_v53  ;;  %v2535_v25 = vrot.slane %v2116_v53, %v7090_v7  ;;  %6525 = vrot.lane.b32.xlu1 %v6524_v1, %s7023_s16  ;;  %v2120_v41 = vpop.f32.mrb[30].mxu0  ;;  %v3915_v60 = vrot.slane %v7702_v52, 1 }
 0x130   : > { %v3246_v44 = vcombine.low %v2525_v13, %v2527_v29  ;;  %v6534_v35 = vpack.i.bf16 %v7645_v22, %v7722_v9  ;;  %v2121_v40 = vadd.f32 %v2120_v41, %v7544_v28  ;;  %v6194_v45 = vpop.f32.mrb[31].mxu0  ;;  %v3245_v54 = vrot.slane %v2526_v15, %v7090_v7 }
 0x131   : > { %v7733_v50 = vcombine.low %v3230_v27, %v3237_v30  ;;  %v2542_v55 = vrot.slane %v2528_v36, %v7090_v7  ;;  %v2543_v61 = vcombine.high %v2535_v25, %v2535_v25  ;;  %v7742_v6 = vsel %vm3894_vm5, %v3915_v60, %v3916_v4 }
 0x132   : > { %v2545_v57 = vcombine.high %v2121_v40, %v2121_v40  ;;  %v2552_v0 = vrot.slane %v2121_v40, %v7090_v7  ;;  %v3254_v20 = vrot.slane %v3246_v44, %v7090_v7  ;;  %9462 = vst [vmem:[#allocation15_spill] sm:$0xff] %v7742_v6  ;;  %v4093_v11 = vrot.slane %v7695_v34, 2 }
 0x133   : > { %9461 = vst [vmem:[#allocation14_spill] sm:$0xff] %v7733_v50  ;;  %v2544_v1 = vcombine.high %v2542_v55, %v2542_v55  ;;  %6535 = vrot.lane.b32.xlu0 %v6534_v35, %s7024_s17  ;;  %v2125_v13 = vpop.f32.mrb[32].mxu0  ;;  %v3247_v15 = vcombine.low %v2535_v25, %v2543_v61  ;;  %v6529_v56 = vpack.i.bf16 %v7637_v46, %v7742_v6  ;;  %v7752_v27 = vsel %vm2993_vm3, %v3245_v54, 0.0 }
 0x134   : > { %v7746_v16 = vrot.slane %v2545_v57, %v7090_v7  ;;  %v2560_v17 = vcombine.high %v2552_v0, %v2552_v0  ;;  %v6197_v53 = vpop.f32.mrb[33].mxu0  ;;  %v7755_v4 = vsel %vm4071_vm6, %v4093_v11, %v4095_v39  ;;  %v2126_v30 = vadd.f32 %v2125_v13, %v7555_v37 }
 0x135   : > { %v3263_v29 = vcombine.low %v2542_v55, %v2544_v1  ;;  %9463 = vst [vmem:[#allocation16_spill] sm:$0xff] %v7755_v4  ;;  %v3261_v36 = vrot.slane %v3247_v15, %v7090_v7  ;;  %6530 = vrot.lane.b32.xlu1 %v6529_v56, %s7024_s17  ;;  %v6544_v41 = vpack.i.bf16 %v7667_v58, %v7755_v4  ;;  %v3910_v44 = vrot.slane %v7637_v46, 1 }
 0x136   : > { %v3264_v25 = vcombine.low %v2552_v0, %v2560_v17  ;;  %v2561_v40 = vcombine.high %v7746_v16, %v7746_v16  ;;  %v2562_v45 = vcombine.high %v2126_v30, %v2126_v30  ;;  %v2569_v39 = vrot.slane %v2126_v30, %v7090_v7 }
 0x137   : > { %v3271_v35 = vrot.slane %v3263_v29, %v7090_v7  ;;  %v2130_v54 = vpop.f32.mrb[34].mxu0  ;;  %v3923_v55 = vrot.slane %v7752_v27, 1  ;;  %v7768_v60 = vcombine.low %v3254_v20, %v3261_v36  ;;  %6545 = vrot.lane.b32.xlu0 %v6544_v41, %s7022_s15  ;;  %v4092_v57 = vrot.slane %v7702_v52, 2 }
 0x138   : > { %v3278_v61 = vrot.slane %v3264_v25, %v7090_v7  ;;  %v6200_v0 = vpop.f32.mrb[35].mxu0  ;;  %v4100_v1 = vrot.slane %v7752_v27, 2  ;;  %v2576_v13 = vrot.slane %v2562_v45, %v7090_v7  ;;  %v2577_v15 = vcombine.high %v2569_v39, %v2569_v39 }
 0x139   : > { %v7778_v17 = vsel %vm3894_vm5, %v3910_v44, %v3911_v47  ;;  %v3287_v20 = vcombine.low %v2561_v40, %v2569_v39  ;;  %v7783_v53 = vsel %vm4071_vm6, %v4092_v57, %v4093_v11  ;;  %v7787_v29 = vsel %vm2982_vm4, %v3221_v24, 0.0 }
 0x13a   : > { %v7780_v56 = vcombine.low %v3271_v35, %v3278_v61  ;;  %9465 = vst [vmem:[#allocation18_spill] sm:$0xff] %v7783_v53  ;;  %9466 = vst [vmem:[#allocation19_spill] sm:$0xff] %v7787_v29  ;;  %v3288_v30 = vcombine.low %v2577_v15, %v2576_v13  ;;  %v6539_v27 = vpack.i.bf16 %v7778_v17, %v7783_v53  ;;  %v3921_v35 = vrot.slane %v7733_v50, 1 }
 0x13b   : > { %v6549_v36 = vpack.i.bf16 %v7693_v43, %v7787_v29  ;;  %v2131_v47 = vadd.f32 %v2130_v54, %v7555_v37  ;;  %v2135_v25 = vpop.f32.mrb[36].mxu0  ;;  %v3286_v41 = vrot.slane %v7746_v16, %v7090_v7  ;;  %v3295_v11 = vrot.slane %v3287_v20, %v7090_v7 }
 0x13c   : > { %9464 = vst [vmem:[#allocation17_spill] sm:$0xff] %v7780_v56  ;;  %v2578_v44 = vcombine.high %v2576_v13, %v2576_v13  ;;  %v6203_v24 = vpop.f32.mrb[37].mxu0  ;;  %v3302_v40 = vrot.slane %v3288_v30, %v7090_v7  ;;  %6540 = vrot.lane.b32.xlu1 %v6539_v27, %s7022_s15  ;;  %v3920_v54 = vrot.slane %v7787_v29, 1  ;;  %v6554_v16 = vpack.i.bf16 %v7670_v62, %v7733_v50 }
 0x13d   : > { %6550 = vrot.lane.b32.xlu0 %v6549_v36, %s7023_s16  ;;  %v2579_v45 = vcombine.high %v2131_v47, %v2131_v47  ;;  %v2586_v39 = vrot.slane %v2131_v47, %v7090_v7  ;;  %v7806_v61 = vsel %vm3894_vm5, %v3921_v35, %v3923_v55  ;;  %v2136_v57 = vadd.f32 %v2135_v25, %v7586_v12 }
 0x13e   : > { %9467 = vst [vmem:[#allocation20_spill] sm:$0xff] %v7806_v61  ;;  %v4098_v0 = vrot.slane %v7733_v50, 2  ;;  %v7810_v13 = vcombine.low %v3295_v11, %v3302_v40  ;;  %v6564_v36 = vpack.i.bf16 %v7695_v34, %v7806_v61  ;;  %v7816_v24 = vsel %vm3894_vm5, %v3920_v54, %v3921_v35 }
 0x13f   : > { %v2593_v15 = vrot.slane %v2579_v45, %v7090_v7  ;;  %v2594_v20 = vcombine.high %v2586_v39, %v2586_v39  ;;  %v3304_v30 = vcombine.low %v2578_v44, %v2586_v39  ;;  %v2140_v27 = vpop.f32.mrb[38].mxu0  ;;  %v2596_v47 = vcombine.high %v2136_v57, %v2136_v57  ;;  %9468 = vst [vmem:[#allocation21_spill] sm:$0xff] %v7816_v24 }
 0x140   : > { %v4097_v55 = vrot.slane %v7787_v29, 2  ;;  %v6206_v3 = vpop.f32.mrb[39].mxu0  ;;  %6555 = vrot.lane.b32.xlu1 %v6554_v16, %s7023_s16  ;;  %v2603_v11 = vrot.slane %v2136_v57, %v7090_v7  ;;  %v7824_v44 = vsel %vm2993_vm3, %v3286_v41, 0.0  ;;  %v7828_v35 = vsel %vm4071_vm6, %v4098_v0, %v4100_v1 }
 0x141   : > { %v3305_v25 = vcombine.low %v2594_v20, %v2593_v15  ;;  %v3312_v63 = vrot.slane %v3304_v30, %v7090_v7  ;;  %v2595_v40 = vcombine.high %v2593_v15, %v2593_v15  ;;  %6565 = vrot.lane.b32.xlu0 %v6564_v36, %s7024_s17  ;;  %9469 = vst [vmem:[#allocation22_spill] sm:$0xff] %v7828_v35  ;;  %v3928_v1 = vrot.slane %v7824_v44, 1 }
 0x142   : > { %v2141_v45 = vadd.f32 %v2140_v27, %v7586_v12  ;;  %v6559_v39 = vpack.i.bf16 %v7702_v52, %v7816_v24  ;;  %v2610_v16 = vrot.slane %v2596_v47, %v7090_v7  ;;  %v6574_v41 = vpack.i.bf16 %v7722_v9, %v7828_v35 }
 0x143   : > { %v3319_v3 = vrot.slane %v3305_v25, %v7090_v7  ;;  %v2145_v54 = vpop.f32.mrb[40].mxu0  ;;  %v7838_v57 = vsel %vm4071_vm6, %v4097_v55, %v4098_v0  ;;  %v2611_v30 = vcombine.high %v2603_v11, %v2603_v11  ;;  %v7847_v27 = vsel %vm2982_vm4, %v7768_v60, 0.0 }
 0x144   : > { %9470 = vst [vmem:[#allocation23_spill] sm:$0xff] %v7838_v57  ;;  %v6209_v15 = vpop.f32.mrb[41].mxu0  ;;  %6560 = vrot.lane.b32.xlu1 %v6559_v39, %s7024_s17  ;;  %9472 = vst [vmem:[#allocation25_spill] sm:$0xff] %v7847_v27  ;;  %v3327_v36 = vrot.slane %v2595_v40, %v7090_v7  ;;  %v2613_v47 = vcombine.high %v2141_v45, %v2141_v45  ;;  %v7852_v0 = vrot.slane %v9375_v2, 1  ;;  %v7855_v55 = vrot.slane %v9375_v2, 2 }
 0x145   : > { %v7841_v20 = vcombine.low %v3312_v63, %v3319_v3  ;;  %6575 = vrot.lane.b32.xlu0 %v6574_v41, %s7022_s15  ;;  %v7860_v63 = vsel %vm2982_vm4, %v7539_v23, 0.0  ;;  %v6569_v60 = vpack.i.bf16 %v7742_v6, %v7838_v57  ;;  %v2146_v25 = vadd.f32 %v2145_v54, %v7470_v33 }
 0x146   : > { %9473 = vst [vmem:[#allocation26_spill] sm:$0xff] %v7852_v0  ;;  %9474 = vst [vmem:[#allocation27_spill] sm:$0xff] %v7855_v55  ;;  %v3926_v40 = vrot.slane %v7780_v56, 1  ;;  %v4105_v39 = vrot.slane %v7824_v44, 2  ;;  %v2612_v41 = vcombine.high %v2610_v16, %v2610_v16  ;;  %v6579_v15 = vpack.i.bf16 %v7783_v53, %v7847_v27 }
 0x147   : > { %9471 = vst [vmem:[#allocation24_spill] sm:$0xff] %v7841_v20  ;;  %9475 = vst [vmem:[#allocation28_spill] sm:$0xff] %v7860_v63  ;;  %v2150_v3 = vpop.f32.mrb[42].mxu0  ;;  %v7870_v62 = vcombine.low %v2603_v11, %v2611_v30  ;;  %v2630_v23 = vcombine.high %v2146_v25, %v2146_v25  ;;  %v7874_v43 = vrot.slane %v2146_v25, %v7090_v7  ;;  %v7881_v44 = vsel %vm2993_vm3, %v3327_v36, 0.0 }
 0x148   : > { %v2151_v2 = vadd.f32 %v2150_v3, %v7486_v42  ;;  %v6212_v14 = vpop.f32.mrb[43].mxu0  ;;  %6570 = vrot.lane.b32.xlu1 %v6569_v60, %s7022_s15  ;;  %v7877_v54 = vsel %vm3894_vm5, %v3926_v40, %v3928_v1  ;;  %v2620_v53 = vrot.slane %v2141_v45, %v7090_v7  ;;  %v2627_v3 = vrot.slane %v2613_v47, %v7090_v7 }
 0x149   : > { %9476 = vst [vmem:[#allocation29_spill] sm:$0xff] %v7877_v54  ;;  %6580 = vrot.lane.b32.xlu0 %v6579_v15, %s7023_s16  ;;  %v3925_v14 = vrot.slane %v7847_v27, 1  ;;  %v2644_v11 = vrot.slane %v2630_v23, %v7090_v7  ;;  %v2645_v30 = vcombine.high %v7874_v43, %v7874_v43  ;;  %v6584_v1 = vpack.i.bf16 %v7755_v4, %v7780_v56 }
 0x14a   : > { %v2647_v60 = vcombine.high %v2151_v2, %v2151_v2  ;;  %v6594_v36 = vpack.i.bf16 %v7733_v50, %v7877_v54  ;;  %v2654_v45 = vrot.slane %v2151_v2, %v7090_v7  ;;  %v4103_v15 = vrot.slane %v7780_v56, 2 }
 0x14b   : > { %v2155_v25 = vpop.f32.mrb[44].mxu0  ;;  %v7896_v47 = vsel %vm3894_vm5, %v3925_v14, %v3926_v40  ;;  %v7899_v23 = vcombine.low %v2610_v16, %v2612_v41  ;;  %v3369_v19 = vcombine.low %v2645_v30, %v2644_v11  ;;  %v2646_v34 = vcombine.high %v2644_v11, %v2644_v11 }
 0x14c   : > { %9477 = vst [vmem:[#allocation30_spill] sm:$0xff] %v7896_v47  ;;  %v6215_v8 = vpop.f32.mrb[45].mxu0  ;;  %6585 = vrot.lane.b32.xlu1 %v6584_v1, %s7023_s16  ;;  %v2661_v4 = vrot.slane %v2647_v60, %v7090_v7  ;;  %v2628_v50 = vcombine.high %v2620_v53, %v2620_v53  ;;  %v2629_v48 = vcombine.high %v2627_v3, %v2627_v3 }
 0x14d   : > { %6595 = vrot.lane.b32.xlu0 %v6594_v36, %s7024_s17  ;;  %v2662_v2 = vcombine.high %v2654_v45, %v2654_v45  ;;  %v3377_v40 = vrot.slane %v3369_v19, %v7090_v7  ;;  %v3370_v14 = vcombine.low %v2646_v34, %v2654_v45  ;;  %v6589_v8 = vpack.i.bf16 %v7787_v29, %v7896_v47 }
 0x14e   : > { %v7910_v16 = vsel %vm4071_vm6, %v4103_v15, %v4105_v39  ;;  %v2156_v1 = vadd.f32 %v2155_v25, %v7514_v59  ;;  %v2663_v60 = vcombine.high %v2661_v4, %v2661_v4  ;;  %v4102_v19 = vrot.slane %v7847_v27, 2 }
 0x14f   : > { %9478 = vst [vmem:[#allocation31_spill] sm:$0xff] %v7910_v16  ;;  %v2160_v41 = vpop.f32.mrb[46].mxu0  ;;  %v3386_v11 = vcombine.low %v2662_v2, %v2661_v4  ;;  %v6604_v30 = vpack.i.bf16 %v7806_v61, %v7910_v16  ;;  %v3384_v36 = vrot.slane %v3370_v14, %v7090_v7  ;;  %v7921_v34 = vsel %vm2982_vm4, %v7810_v13, 0.0 }
 0x150   : > { %v6218_v52 = vpop.f32.mrb[47].mxu0  ;;  %6590 = vrot.lane.b32.xlu1 %v6589_v8, %s7024_s17  ;;  %9479 = vst [vmem:[#allocation32_spill] sm:$0xff] %v7921_v34  ;;  %v2161_v39 = vadd.f32 %v2160_v41, %v7522_v10  ;;  %v3345_v45 = vcombine.low %v2620_v53, %v2628_v50  ;;  %v2664_v4 = vcombine.high %v2156_v1, %v2156_v1 }
 0x151   : > { %v3394_v2 = vrot.slane %v3386_v11, %v7090_v7  ;;  %6605 = vrot.lane.b32.xlu0 %v6604_v30, %s7022_s15  ;;  %v7927_v52 = vrot.slane %v2156_v1, %v7090_v7  ;;  %v7929_v25 = vcombine.low %v3377_v40, %v3384_v36  ;;  %v7932_v14 = vsel %vm4071_vm6, %v4102_v19, %v4103_v15 }
 0x152   : > { %9480 = vst [vmem:[#allocation33_spill] sm:$0xff] %v7932_v14  ;;  %v2681_v8 = vcombine.high %v2161_v39, %v2161_v39  ;;  %v2688_v13 = vrot.slane %v2161_v39, %v7090_v7  ;;  %v2678_v41 = vrot.slane %v2664_v4, %v7090_v7  ;;  %v6599_v53 = vpack.i.bf16 %v7816_v24, %v7932_v14 }
 0x153   : > { %v2165_v29 = vpop.f32.mrb[48].mxu0  ;;  %v3387_v50 = vcombine.low %v2663_v60, %v7927_v52  ;;  %v6619_v11 = vpack.i.bf16 %v7838_v57, %v7921_v34  ;;  %v3346_v40 = vcombine.low %v2627_v3, %v2629_v48  ;;  %v3343_v19 = vrot.slane %v7899_v23, %v7090_v7 }
 0x154   : > { %v6221_v30 = vpop.f32.mrb[49].mxu0  ;;  %v2695_v1 = vrot.slane %v2681_v8, %v7090_v7  ;;  %v2696_v15 = vcombine.high %v2688_v13, %v2688_v13  ;;  %v2680_v39 = vcombine.high %v2678_v41, %v2678_v41  ;;  %6600 = vrot.lane.b32.xlu1 %v6599_v53, %s7022_s15  ;;  %v3933_v60 = vrot.slane %v7881_v44, 1 }
 0x155   : > { %v3401_v4 = vrot.slane %v3387_v50, %v7090_v7  ;;  %6620 = vrot.lane.b32.xlu0 %v6619_v11, %s7023_s16  ;;  %v3353_v30 = vrot.slane %v3345_v45, %v7090_v7  ;;  %v2166_v8 = vadd.f32 %v2165_v29, %v7544_v28  ;;  %v6609_v23 = vpack.i.bf16 %v7877_v54, %v7852_v0 }
 0x156   : > { %v2697_v48 = vcombine.high %v2695_v1, %v2695_v1  ;;  %v3411_v3 = vcombine.low %v2688_v13, %v2696_v15  ;;  %v3410_v61 = vcombine.low %v2678_v41, %v2680_v39  ;;  %v9482_v50 = vrot.slane %v7841_v20, 1 }
 0x157   : > { %v2170_v57 = vpop.f32.mrb[50].mxu0  ;;  %v7951_v36 = vcombine.low %v3394_v2, %v3401_v4  ;;  %v3360_v24 = vrot.slane %v3346_v40, %v7090_v7  ;;  %v3368_v45 = vrot.slane %v7874_v43, %v7090_v7  ;;  %v2698_v15 = vcombine.high %v2166_v8, %v2166_v8 }
 0x158   : > { %v7958_v53 = vsel %vm3894_vm5, %v9482_v50, %v3933_v60  ;;  %v6224_v11 = vpop.f32.mrb[51].mxu0  ;;  %v3425_v29 = vrot.slane %v3411_v3, %v7090_v7  ;;  %v3427_v13 = vcombine.low %v2695_v1, %v2697_v48  ;;  %v3418_v2 = vrot.slane %v3410_v61, %v7090_v7  ;;  %6610 = vrot.lane.b32.xlu1 %v6609_v23, %s7022_s15 }
 0x159   : > { %9481 = vst [vmem:[#allocation34_spill] sm:$0xff] %v7951_v36  ;;  %9483 = vst [vmem:[#allocation35_spill] sm:$0xff] %v7958_v53  ;;  %v6639_v41 = vpack.i.bf16 %v7780_v56, %v7958_v53  ;;  %v2705_v39 = vrot.slane %v2166_v8, %v7090_v7  ;;  %v9484_v4 = vrot.slane %v7870_v62, %v7090_v7  ;;  %v4077_v60 = vrot.slane %v7860_v63, 2 }
 0x15a   : > { %v9392_v43 = vrot.slane %v7841_v20, 2  ;;  %v4110_v1 = vrot.slane %v7881_v44, 2  ;;  %v7975_v61 = vcombine.low %v3418_v2, %v3425_v29  ;;  %v7979_v3 = vrot.slane %v2698_v15, %v7090_v7 }
 0x15b   : > { %v3344_v40 = vcombine.low %v9484_v4, %v3343_v19  ;;  %v2175_v48 = vpop.f32.mrb[52].mxu0  ;;  %6640 = vrot.lane.b32.xlu0 %v6639_v41, %s7024_s17  ;;  %v2713_v23 = vcombine.high %v2705_v39, %v2705_v39  ;;  %v6614_v8 = vpack.i.bf16 %v7910_v16, %v7855_v55  ;;  %v7985_v19 = vsel %vm2993_vm3, %v3368_v45, 0.0 }
 0x15c   : > { %v6227_v62 = vpop.f32.mrb[53].mxu0  ;;  %v9485_v50 = vrot.slane %v7573_v51, 2  ;;  %v7993_v11 = vsel %vm4071_vm6, %v9392_v43, %v4110_v1  ;;  %v2171_v29 = vadd.f32 %v2170_v57, %v7555_v37  ;;  %v7996_v2 = vcombine.low %v3353_v30, %v3360_v24 }
 0x15d   : > { %9486 = vst [vmem:[#allocation36_spill] sm:$0xff] %v7993_v11  ;;  %v3435_v41 = vrot.slane %v3427_v13, %v7090_v7  ;;  %v3428_v15 = vcombine.low %v2705_v39, %v2713_v23  ;;  %6615 = vrot.lane.b32.xlu1 %v6614_v8, %s7023_s16  ;;  %v8005_v4 = vsel %vm2982_vm4, %v3344_v40, 0.0  ;;  %v2679_v30 = vcombine.high %v7927_v52, %v7927_v52 }
 0x15e   : > { %v4079_v44 = vsel %vm4071_vm6, %v4077_v60, %v9485_v50  ;;  %9487 = vst [vmem:[#allocation37_spill] sm:$0xff] %v7996_v2  ;;  %9488 = vst [vmem:[#allocation38_spill] sm:$0xff] %v8005_v4  ;;  %v2714_v60 = vcombine.high %v7979_v3, %v7979_v3  ;;  %v2715_v1 = vcombine.high %v2171_v29, %v2171_v29  ;;  %v3938_v23 = vrot.slane %v7985_v19, 1 }
 0x15f   : > { %v8001_v45 = vpack.i.bf16 %v7993_v11, %v4079_v44  ;;  %v2722_v57 = vrot.slane %v2171_v29, %v7090_v7  ;;  %v2180_v24 = vpop.f32.mrb[54].mxu0  ;;  %v3442_v13 = vrot.slane %v3428_v15, %v7090_v7  ;;  %v6624_v39 = vpack.i.bf16 %v7828_v35, %v7841_v20 }
 0x160   : > { %v6230_v40 = vpop.f32.mrb[55].mxu0  ;;  %v2729_v8 = vrot.slane %v2715_v1, %v7090_v7  ;;  %v3930_v50 = vrot.slane %v7921_v34, 1  ;;  %v6674_v52 = vpack.i.bf16 %v7932_v14, %v8005_v4  ;;  %v9396_v15 = vrot.slane %v7996_v2, 1 }
 0x161   : > { %6650 = vrot.lane.b32.xlu0 %v8001_v45, %s7022_s15  ;;  %v2730_v62 = vcombine.high %v2722_v57, %v2722_v57  ;;  %v8020_v44 = vcombine.low %v3435_v41, %v3442_v13  ;;  %6625 = vrot.lane.b32.xlu1 %v6624_v39, %s7023_s16  ;;  %v3451_v29 = vcombine.low %v2714_v60, %v2722_v57  ;;  %v9490_v16 = vrot.slane %v7841_v20, 1 }
 0x162   : > { %v3409_v40 = vrot.slane %v2679_v30, %v7090_v7  ;;  %v6629_v1 = vpack.i.bf16 %v7841_v20, %v7860_v63  ;;  %v4107_v57 = vrot.slane %v7921_v34, 2  ;;  %v8042_v30 = vpack.i.bf16 %v7996_v2, %v7611_v32 }
 0x163   : > { %9489 = vst [vmem:[#allocation39_spill] sm:$0xff] %v8020_v44  ;;  %v3452_v43 = vcombine.low %v2730_v62, %v2729_v8  ;;  %v2185_v11 = vpop.f32.mrb[56].mxu0  ;;  %v3459_v41 = vrot.slane %v3451_v29, %v7090_v7  ;;  %v8035_v60 = vsel %vm3894_vm5, %v3930_v50, %v9490_v16  ;;  %v2176_v62 = vadd.f32 %v2175_v48, %v7555_v37 }
 0x164   : > { %v6233_v13 = vpop.f32.mrb[57].mxu0  ;;  %9491 = vst [vmem:[#allocation40_spill] sm:$0xff] %v8035_v60  ;;  %v2731_v29 = vcombine.high %v2729_v8, %v2729_v8  ;;  %v4113_v50 = vrot.slane %v7996_v2, 2  ;;  %v3450_v14 = vrot.slane %v7979_v3, %v7090_v7  ;;  %v4115_v3 = vrot.slane %v7985_v19, 2 }
 0x165   : > { %6675 = vrot.lane.b32.xlu0 %v6674_v52, %s7023_s16  ;;  %v3466_v39 = vrot.slane %v3452_v43, %v7090_v7  ;;  %6630 = vrot.lane.b32.xlu1 %v6629_v1, %s7024_s17  ;;  %v8047_v52 = vsel %vm3894_vm5, %v9396_v15, %v3938_v23  ;;  %v4112_v43 = vrot.slane %v8005_v4, 2  ;;  %v2732_v13 = vcombine.high %v2176_v62, %v2176_v62 }
 0x166   : > { %v2739_v48 = vrot.slane %v2176_v62, %v7090_v7  ;;  %v6634_v23 = vpack.i.bf16 %v7847_v27, %v8035_v60  ;;  %v2181_v15 = vadd.f32 %v2180_v24, %v7586_v12  ;;  %v6699_v27 = vpack.i.bf16 %v8047_v52, %v7655_v26 }
 0x167   : > { %v8050_v16 = vcombine.low %v3459_v41, %v3466_v39  ;;  %v2190_v1 = vpop.f32.mrb[58].mxu0  ;;  %v9492_v41 = vrot.slane %v7841_v20, 2  ;;  %v8067_v62 = vrot.slane %v2732_v13, %v7090_v7  ;;  %v8075_v24 = vsel %vm2993_vm3, %v3409_v40, 0.0 }
 0x168   : > { %v6236_v8 = vpop.f32.mrb[59].mxu0  ;;  %v2747_v35 = vcombine.high %v2739_v48, %v2739_v48  ;;  %v3468_v56 = vcombine.low %v2731_v29, %v2739_v48  ;;  %v2749_v54 = vcombine.high %v2181_v15, %v2181_v15  ;;  %v2756_v48 = vrot.slane %v2181_v15, %v7090_v7 }
 0x169   : > { %6685 = vrot.lane.b32.xlu0 %v8042_v30, %s7023_s16  ;;  %v8064_v39 = vsel %vm4071_vm6, %v4107_v57, %v9492_v41  ;;  %6635 = vrot.lane.b32.xlu1 %v6634_v23, %s7024_s17  ;;  %v8078_v57 = vsel %vm4071_vm6, %v4112_v43, %v4113_v50  ;;  %v3900_v40 = vrot.slane %v7860_v63, 1  ;;  %v8090_v43 = vsel %vm2993_vm3, %v3450_v14, 0.0 }
 0x16a   : > { %9493 = vst [vmem:[#allocation41_spill] sm:$0xff] %v8064_v39  ;;  %9494 = vst [vmem:[#allocation42_spill] sm:$0xff] %v8078_v57  ;;  %v3469_v13 = vcombine.low %v2747_v35, %v8067_v62  ;;  %v3476_v8 = vrot.slane %v3468_v56, %v7090_v7  ;;  %v6644_v19 = vpack.i.bf16 %v7896_v47, %v8064_v39  ;;  %v8107_v14 = vsel %vm2982_vm4, %v7975_v61, 0.0 }
 0x16b   : > { %v2195_v29 = vpop.f32.mrb[60].mxu0  ;;  %v2763_v23 = vrot.slane %v2749_v54, %v7090_v7  ;;  %v2186_v56 = vadd.f32 %v2185_v11, %v7586_v12  ;;  %v6704_v15 = vpack.i.bf16 %v8078_v57, %v7606_v31  ;;  %v9495_v54 = vrot.slane %v7573_v51, 1  ;;  %9497 = vst [vmem:[#allocation44_spill] sm:$0xff] %v8107_v14 }
 0x16c   : > { %v6239_v41 = vpop.f32.mrb[61].mxu0  ;;  %v3483_v35 = vrot.slane %v3469_v13, %v7090_v7  ;;  %v8112_v13 = vsel %vm4071_vm6, %v4113_v50, %v4115_v3  ;;  %v8122_v61 = vsel %vm2982_vm4, %v7929_v25, 0.0  ;;  %v2191_v3 = vadd.f32 %v2190_v1, %v7470_v33 }
 0x16d   : > { %6700 = vrot.lane.b32.xlu0 %v6699_v27, %s7024_s17  ;;  %v3943_v27 = vrot.slane %v8075_v24, 1  ;;  %6645 = vrot.lane.b32.xlu1 %v6644_v19, %s7022_s15  ;;  %v8101_v20 = vsel %vm3894_vm5, %v3900_v40, %v9495_v54  ;;  %9499 = vst [vmem:[#allocation46_spill] sm:$0xff] %v8112_v13  ;;  %v6654_v40 = vpack.i.bf16 %v8035_v60, %v7852_v0 }
 0x16e   : > { %9496 = vst [vmem:[#allocation43_spill] sm:$0xff] %v8101_v20  ;;  %v8109_v11 = vcombine.low %v3476_v8, %v3483_v35  ;;  %v2764_v54 = vcombine.high %v2756_v48, %v2756_v48  ;;  %v2765_v41 = vcombine.high %v2763_v23, %v2763_v23  ;;  %v2766_v50 = vcombine.high %v2186_v56, %v2186_v56 }
 0x16f   : > { %v2200_v19 = vpop.f32.mrb[62].mxu0  ;;  %v6709_v8 = vpack.i.bf16 %v8112_v13, %v7711_v49  ;;  %v2773_v35 = vrot.slane %v2186_v56, %v7090_v7  ;;  %v2748_v26 = vcombine.high %v8067_v62, %v8067_v62  ;;  %v6659_v25 = vpack.i.bf16 %v8064_v39, %v7855_v55 }
 0x170   : > { %9498 = vst [vmem:[#allocation45_spill] sm:$0xff] %v8109_v11  ;;  %v6242_v63 = vpop.f32.mrb[63].mxu0  ;;  %v2783_v31 = vcombine.high %v2191_v3, %v2191_v3  ;;  %v8136_v1 = vrot.slane %v2191_v3, %v7090_v7  ;;  %v3492_v49 = vcombine.low %v2756_v48, %v2764_v54  ;;  %v3493_v60 = vcombine.low %v2763_v23, %v2765_v41 }
 0x171   : > { %6705 = vrot.lane.b32.xlu0 %v6704_v15, %s7022_s15  ;;  %6655 = vrot.lane.b32.xlu1 %v6654_v40, %s7022_s15  ;;  %v3940_v15 = vrot.slane %v8122_v61, 1  ;;  %v3941_v63 = vrot.slane %v7951_v36, 1  ;;  %v6714_v56 = vpack.i.bf16 %v8122_v61, %v7614_v38  ;;  %v6664_v0 = vpack.i.bf16 %v7958_v53, %v8101_v20 }
 0x172   : > { %v6719_v62 = vpack.i.bf16 %v7951_v36, %v7637_v46  ;;  %v2780_v55 = vrot.slane %v2766_v50, %v7090_v7  ;;  %v2797_v3 = vrot.slane %v2783_v31, %v7090_v7  ;;  %v2798_v39 = vcombine.high %v8136_v1, %v8136_v1 }
 0x173   : > { %v2205_v40 = vpop.f32.mrb[64].mxu0  ;;  %v2781_v48 = vcombine.high %v2773_v35, %v2773_v35  ;;  %v8151_v23 = vsel %vm3894_vm5, %v3940_v15, %v3941_v63  ;;  %v2196_v41 = vadd.f32 %v2195_v29, %v7486_v42  ;;  %v8158_v54 = vsel %vm3894_vm5, %v3941_v63, %v3943_v27  ;;  %v4907_v63 = vld [vmem:[%s9367_s3 + $0xb0] sm:$0xff] }
 0x174   : > { %v6245_v47 = vpop.f32.mrb[65].mxu0  ;;  %v3533_v50 = vcombine.low %v2798_v39, %v2797_v3  ;;  %v3500_v53 = vrot.slane %v3492_v49, %v7090_v7  ;;  %v6679_v15 = vpack.i.bf16 %v8005_v4, %v7573_v51  ;;  %v6724_v27 = vpack.i.bf16 %v8151_v23, %v7643_v21  ;;  %v4908_v49 = vld [vmem:[%s9367_s3 + $0xb8] sm:$0xff] }
 0x175   : > { %6710 = vrot.lane.b32.xlu0 %v6709_v8, %s7022_s15  ;;  %6660 = vrot.lane.b32.xlu1 %v6659_v25, %s7023_s16  ;;  %v8155_v47 = vrot.slane %v2748_v26, %v7090_v7  ;;  %v2799_v8 = vcombine.high %v2797_v3, %v2797_v3  ;;  %v3507_v25 = vrot.slane %v3493_v60, %v7090_v7  ;;  %v3935_v3 = vrot.slane %v8005_v4, 1 }
 0x176   : > { %v2800_v42 = vcombine.high %v2196_v41, %v2196_v41  ;;  %v2782_v26 = vcombine.high %v2780_v55, %v2780_v55  ;;  %v2807_v39 = vrot.slane %v2196_v41, %v7090_v7  ;;  %v8177_v60 = vcombine.low %v2773_v35, %v2781_v48 }
 0x177   : > { %v8160_v31 = vpop.f32.mrb[66].mxu0  ;;  %v3541_v41 = vrot.slane %v3533_v50, %v7090_v7  ;;  %v2201_v6 = vadd.f32 %v2200_v19, %v7514_v59  ;;  %v8187_v9 = vcombine.low %v3500_v53, %v3507_v25  ;;  %v6416_v48 = vpack.c.bf16 %v4908_v49, %v4907_v63  ;;  %v4910_v50 = vld [vmem:[%s9367_s3 + $0xc8] sm:$0xff] }
 0x178   : > { %v6248_v29 = vpop.f32.mrb[67].mxu0  ;;  %v2815_v20 = vcombine.high %v2807_v39, %v2807_v39  ;;  %v3534_v46 = vcombine.low %v2799_v8, %v2807_v39  ;;  %v4118_v59 = vrot.slane %v7951_v36, 2  ;;  %v8206_v39 = vcombine.low %v2780_v55, %v2782_v26 }
 0x179   : > { %6715 = vrot.lane.b32.xlu0 %v6714_v56, %s7023_s16  ;;  %6665 = vrot.lane.b32.xlu1 %v6664_v0, %s7022_s15  ;;  %v6729_v56 = vpack.i.bf16 %v8158_v54, %v7778_v17  ;;  %v2814_v29 = vrot.slane %v2800_v42, %v7090_v7  ;;  %v4117_v0 = vrot.slane %v8122_v61, 2  ;;  %v4909_v42 = vld [vmem:[%s9367_s3 + $0xc0] sm:$0xff]  ;;  %v2817_v25 = vcombine.high %v2201_v6, %v2201_v6 }
 0x17a   : > { %v3548_v53 = vrot.slane %v3534_v46, %v7090_v7  ;;  %v8209_v63 = vrot.slane %v2201_v6, %v7090_v7  ;;  %6473 = vmatpush1.bf16.msra.mxu1 %v6416_v48  ;;  %v2206_v49 = vadd.f32 %v2205_v40, %v7522_v10  ;;  %v3532_v6 = vrot.slane %v8136_v1, %v7090_v7 }
 0x17b   : > { %v8185_v22 = vpop.f32.mrb[68].mxu0  ;;  %v2816_v35 = vcombine.high %v2814_v29, %v2814_v29  ;;  %v3550_v19 = vcombine.low %v2815_v20, %v2814_v29  ;;  %v2831_v29 = vrot.slane %v2817_v25, %v7090_v7  ;;  %v9502_v26 = vrot.slane %v7996_v2, 1  ;;  %6417 = vmatpush1.bf16.msra.mxu0 %v6416_v48  ;;  %v4912_v48 = vld [vmem:[%s9367_s3 + $0xd8] sm:$0xff] }
 0x17c   : > { %v6251_v8 = vpop.f32.mrb[69].mxu0  ;;  %v8214_v20 = vcombine.low %v3541_v41, %v3548_v53  ;;  %v3945_v1 = vrot.slane %v8107_v14, 1  ;;  %v4122_v25 = vrot.slane %v8107_v14, 2  ;;  %v8263_v46 = vsel %vm2993_vm3, %v3532_v6, 0.0 }
 0x17d   : > { %6720 = vrot.lane.b32.xlu0 %v6719_v62, %s7023_s16  ;;  %v8202_v62 = vsel %vm2982_vm4, %v8050_v16, 0.0  ;;  %6670 = vrot.lane.b32.xlu1 %v8001_v45, %s7023_s16  ;;  %v9501_v16 = vmov 0.0|0.0   ;;  %v6419_v8 = vpack.c.bf16 %v4910_v50, %v4909_v42  ;;  %v3558_v55 = vrot.slane %v3550_v19, %v7090_v7 }
 0x17e   : > { %9500 = vst [vmem:[#allocation47_spill] sm:$0xff] %v8202_v62  ;;  %6458 = vmatprep.subr.bf16.mxu1 %v9501_v16  ;;  %v3551_v10 = vcombine.low %v2816_v35, %v8209_v63  ;;  %v2834_v45 = vcombine.high %v2206_v49, %v2206_v49  ;;  %v8228_v41 = vsel %vm3894_vm5, %v3935_v3, %v9502_v26 }
 0x17f   : > { %v8218_v4 = vpop.f32.mrb[70].mxu0  ;;  %v8231_v42 = vsel %vm4071_vm6, %v4117_v0, %v4118_v59  ;;  %v2833_v50 = vcombine.high %v2831_v29, %v2831_v29  ;;  %6474 = vmatpush1.bf16.msra.mxu1 %v6419_v8  ;;  %6418 = vmatprep.subr.bf16.mxu0 %v9501_v16  ;;  %v6694_v6 = vpack.i.bf16 %v7921_v34, %v8228_v41 }
 0x180   : > { %v6254_v40 = vpop.f32.mrb[71].mxu0  ;;  %9503 = vst [vmem:[#allocation48_spill] sm:$0xff] %v8231_v42  ;;  %v3565_v53 = vrot.slane %v3551_v10, %v7090_v7  ;;  %v2848_v19 = vrot.slane %v2834_v45, %v7090_v7  ;;  %6459 = vmatprep.subr.bf16.mxu1 %v9501_v16  ;;  %v3524_v10 = vrot.slane %v8206_v39, %v7090_v7  ;;  %v4914_v39 = vld [vmem:[%s9367_s3 + $0xe8] sm:$0xff] }
 0x181   : > { %6725 = vrot.lane.b32.xlu0 %v6724_v27, %s7024_s17  ;;  %v2841_v27 = vrot.slane %v2206_v49, %v7090_v7  ;;  %6680 = vrot.lane.b32.xlu1 %v6679_v15, %s7024_s17  ;;  %v3574_v3 = vcombine.low %v2831_v29, %v2833_v50  ;;  %v4911_v15 = vld [vmem:[%s9367_s3 + $0xd0] sm:$0xff]  ;;  %v8253_v29 = vsel %vm2993_vm3, %v8155_v47, 0.0  ;;  %v6734_v0 = vpack.i.bf16 %v8228_v41, %v8231_v42 }
 0x182   : > { %v8258_v45 = vcombine.low %v3558_v55, %v3565_v53  ;;  %v2850_v26 = vcombine.high %v2848_v19, %v2848_v19  ;;  %6420 = vmatpush1.bf16.msra.mxu0 %v6419_v8  ;;  %v9505_v55 = vrot.slane %v8075_v24, 2  ;;  %v9508_v8 = vrot.slane %v8020_v44, 2 }
 0x183   : > { %v2849_v40 = vcombine.high %v2841_v27, %v2841_v27  ;;  %v8248_v49 = vpop.f32.mrb[72].mxu0  ;;  %v3582_v47 = vrot.slane %v3574_v3, %v7090_v7  ;;  %v6422_v3 = vpack.c.bf16 %v4912_v48, %v4911_v15  ;;  %6421 = vmatprep.subr.bf16.mxu0 %v9501_v16  ;;  %v6749_v48 = vpack.i.bf16 %v8112_v13, %v8020_v44 }
 0x184   : > { %9504 = vst [vmem:[#allocation49_spill] sm:$0xff] %v8258_v45  ;;  %v6257_v50 = vpop.f32.mrb[73].mxu0  ;;  %v8281_v53 = vsel %vm4071_vm6, %v4118_v59, %v9505_v55  ;;  %v3591_v24 = vcombine.low %v2848_v19, %v2850_v26  ;;  %v4916_v26 = vld [vmem:[%s9367_s3 + $0xf8] sm:$0xff] }
 0x185   : > { %6730 = vrot.lane.b32.xlu0 %v6729_v56, %s7024_s17  ;;  %v3575_v35 = vcombine.low %v2841_v27, %v2849_v40  ;;  %v4913_v56 = vld [vmem:[%s9367_s3 + $0xe0] sm:$0xff]  ;;  %6690 = vrot.lane.b32.xlu1 %v8042_v30, %s7024_s17  ;;  %9506 = vst [vmem:[#allocation50_spill] sm:$0xff] %v8281_v53  ;;  %v2211_v27 = vadd.f32 %v8160_v31, %v7544_v28  ;;  %v9507_v40 = vrot.slane %v8020_v44, 1  ;;  %v8302_v28 = vsel %vm2982_vm4, %v8187_v9, 0.0 }
 0x186   : > { %v8293_v30 = vsel %vm4071_vm6, %v4122_v25, %v9508_v8  ;;  %9510 = vst [vmem:[#allocation52_spill] sm:$0xff] %v8302_v28  ;;  %6475 = vmatpush1.bf16.msra.mxu1 %v6422_v3  ;;  %6423 = vmatpush1.bf16.msra.mxu0 %v6422_v3 }
 0x187   : > { %v8288_v50 = vsel %vm3894_vm5, %v3945_v1, %v9507_v40  ;;  %9509 = vst [vmem:[#allocation51_spill] sm:$0xff] %v8293_v30  ;;  %v3589_v2 = vrot.slane %v3575_v35, %v7090_v7  ;;  %v8296_v34 = vpop.f32.mrb[74].mxu0  ;;  %v2851_v31 = vcombine.high %v2211_v27, %v2211_v27  ;;  %v2858_v59 = vrot.slane %v2211_v27, %v7090_v7 }
 0x188   : > { %v6425_v1 = vpack.c.bf16 %v4914_v39, %v4913_v56  ;;  %v6260_v25 = vpop.f32.mrb[75].mxu0  ;;  %v9511_v35 = vrot.slane %v8177_v60, %v7090_v7  ;;  %6460 = vmatprep.subr.bf16.mxu1 %v9501_v16  ;;  %v6739_v60 = vpack.i.bf16 %v8047_v52, %v8281_v53  ;;  %v6754_v56 = vpack.i.bf16 %v8122_v61, %v8288_v50 }
 0x189   : > { %6735 = vrot.lane.b32.xlu0 %v6734_v0, %s7022_s15  ;;  %v8314_v9 = vcombine.low %v3582_v47, %v3589_v2  ;;  %v4915_v0 = vld [vmem:[%s9367_s3 + $0xf0] sm:$0xff]  ;;  %6695 = vrot.lane.b32.xlu1 %v6694_v6, %s7024_s17  ;;  %v2832_v2 = vcombine.high %v8209_v63, %v8209_v63  ;;  %v2866_v47 = vcombine.high %v2858_v59, %v2858_v59  ;;  %v3950_v40 = vrot.slane %v8202_v62, 1 }
 0x18a   : > { %v8309_v19 = vcombine.low %v9511_v35, %v3524_v10  ;;  %v8329_v10 = vrot.slane %v2851_v31, %v7090_v7  ;;  %v6744_v39 = vpack.i.bf16 %v8078_v57, %v8107_v14  ;;  %v6764_v55 = vpack.i.bf16 %v8151_v23, %v8293_v30  ;;  %6424 = vmatprep.subr.bf16.mxu0 %v9501_v16 }
 0x18b   : > { %v2216_v6 = vadd.f32 %v8185_v22, %v7555_v37  ;;  %v8339_v27 = vpop.f32.mrb[76].mxu0  ;;  %v3599_v63 = vrot.slane %v3591_v24, %v7090_v7  ;;  %v3592_v3 = vcombine.low %v2858_v59, %v2866_v47  ;;  %6476 = vmatpush1.bf16.msra.mxu1 %v6425_v1  ;;  %v6428_v8 = vpack.c.bf16 %v4916_v26, %v4915_v0 }
 0x18c   : > { %9512 = vst [vmem:[#allocation53_spill] sm:$0xff] %v8309_v19  ;;  %v6263_v31 = vpop.f32.mrb[77].mxu0  ;;  %6461 = vmatprep.subr.bf16.mxu1 %v9501_v16  ;;  %v2867_v22 = vcombine.high %v8329_v10, %v8329_v10  ;;  %v3573_v24 = vrot.slane %v2832_v2, %v7090_v7  ;;  %v9513_v59 = vrot.slane %v8090_v43, 1  ;;  %v9514_v0 = vrot.slane %v8020_v44, 1  ;;  %6426 = vmatpush1.bf16.msra.mxu0 %v6425_v1 }
 0x18d   : > { %6750 = vrot.lane.b32.xlu0 %v6749_v48, %s7023_s16  ;;  %v2868_v35 = vcombine.high %v2216_v6, %v2216_v6  ;;  %v2875_v15 = vrot.slane %v2216_v6, %v7090_v7  ;;  %6740 = vrot.lane.b32.xlu1 %v6739_v60, %s7022_s15  ;;  %v3606_v47 = vrot.slane %v3592_v3, %v7090_v7  ;;  %v9516_v6 = vrot.slane %v8090_v43, 2 }
 0x18e   : > { %v8358_v26 = vsel %vm3894_vm5, %v9514_v0, %v9513_v59  ;;  %v6779_v31 = vpack.i.bf16 %v8281_v53, %v8109_v11  ;;  %v9517_v48 = vrot.slane %v8020_v44, 2  ;;  %6427 = vmatprep.subr.bf16.mxu0 %v9501_v16  ;;  %v4127_v1 = vrot.slane %v8202_v62, 2 }
 0x18f   : > { %9515 = vst [vmem:[#allocation54_spill] sm:$0xff] %v8358_v26  ;;  %v2882_v2 = vrot.slane %v2868_v35, %v7090_v7  ;;  %v2883_v25 = vcombine.high %v2875_v15, %v2875_v15  ;;  %v8373_v59 = vcombine.low %v3599_v63, %v3606_v47  ;;  %v9423_v3 = vrot.slane %v8109_v11, 2  ;;  %6477 = vmatpush1.bf16.msra.mxu1 %v6428_v8 }
 0x190   : > { %v8368_v60 = vsel %vm4071_vm6, %v9517_v48, %v9516_v6  ;;  %v3615_v43 = vcombine.low %v2867_v22, %v2875_v15  ;;  %v9520_v53 = vrot.slane %v8109_v11, 1  ;;  %v2221_v16 = vadd.f32 %v8218_v4, %v7555_v37  ;;  %6429 = vmatpush1.bf16.msra.mxu0 %v6428_v8 }
 0x191   : > { %9518 = vst [vmem:[#allocation55_spill] sm:$0xff] %v8368_v60  ;;  %6755 = vrot.lane.b32.xlu0 %v6754_v56, %s7024_s17  ;;  %9519 = vst [vmem:[#allocation56_spill] sm:$0xff] %v8373_v59  ;;  %v6496_v0 = vpop.permute.xlu0 %6495  ;;  %v3616_v35 = vcombine.low %v2883_v25, %v2882_v2  ;;  %v2884_v6 = vcombine.high %v2882_v2, %v2882_v2  ;;  %v8386_v56 = vsel %vm2993_vm3, %v3573_v24, 0.0  ;;  %6745 = vrot.lane.b32.xlu1 %v6744_v39, %s7023_s16 }
 0x192   : > { %v8380_v48 = vsel %vm3894_vm5, %v3950_v40, %v9520_v53  ;;  %v6759_v15 = vpack.i.bf16 %v7951_v36, %v8358_v26  ;;  %v6769_v63 = vpack.i.bf16 %v8158_v54, %v8368_v60  ;;  %v3623_v53 = vrot.slane %v3615_v43, %v7090_v7 }
 0x193   : > { %9521 = vst [vmem:[#allocation57_spill] sm:$0xff] %v8380_v48  ;;  %v6774_v40 = vpack.i.bf16 %v8231_v42, %v8202_v62  ;;  %v3630_v37 = vrot.slane %v3616_v35, %v7090_v7  ;;  %v2885_v4 = vcombine.high %v2221_v16, %v2221_v16  ;;  %v2892_v25 = vrot.slane %v2221_v16, %v7090_v7 }
 0x194   : > { %v6497_v39 = vunpack.i.l.bf16 %v6496_v0  ;;  %v6784_v22 = vpack.i.bf16 %v8107_v14, %v8380_v48  ;;  %v8404_v24 = vsel %vm4071_vm6, %v4127_v1, %v9423_v3  ;;  %v3953_v8 = vrot.slane %v8253_v29, 1 }
 0x195   : > { %6765 = vrot.lane.b32.xlu0 %v6764_v55, %s7022_s15  ;;  %v6501_v47 = vpop.permute.xlu0 %6500  ;;  %v8407_v2 = vcombine.low %v3623_v53, %v3630_v37  ;;  %v8410_v43 = vrot.slane %v2885_v4, %v7090_v7  ;;  %v2900_v35 = vcombine.high %v2892_v25, %v2892_v25  ;;  %v3632_v16 = vcombine.low %v2884_v6, %v2892_v25 }
 0x196   : > { %6760 = vrot.lane.b32.xlu1 %v6759_v15, %s7024_s17  ;;  %v6498_v55 = vunpack.i.h.bf16 %v6496_v0  ;;  %v3614_v14 = vrot.slane %v8329_v10, %v7090_v7  ;;  %v2226_v1 = vadd.f32 %v8248_v49, %v7586_v12  ;;  %v6503_v3 = vunpack.i.h.bf16 %v6501_v47 }
 0x197   : > { %v6502_v42 = vunpack.i.l.bf16 %v6501_v47  ;;  %v3633_v53 = vcombine.low %v2900_v35, %v8410_v43  ;;  %v3640_v37 = vrot.slane %v3632_v16, %v7090_v7  ;;  %v4130_v6 = vrot.slane %v8253_v29, 2 }
 0x198   : > { %v2902_v0 = vcombine.high %v2226_v1, %v2226_v1  ;;  %v4792_v10 = vsel %vm4690_vm7, %v7643_v21, %v6497_v39  ;;  %v3955_v49 = vrot.slane %v8302_v28, 1  ;;  %v2909_v25 = vrot.slane %v2226_v1, %v7090_v7 }
 0x199   : > { %6780 = vrot.lane.b32.xlu0 %v6779_v31, %s7023_s16  ;;  %v6506_v15 = vpop.permute.xlu1 %6505  ;;  %v3647_v4 = vrot.slane %v3633_v53, %v7090_v7  ;;  %v4694_v31 = vsel %vm4690_vm7, %v7573_v51, %v6498_v55  ;;  %v8430_v16 = vpop.permute.xlu0 %6515  ;;  %v4824_v36 = vsel %vm4723_vm8, %v4792_v10, %v6502_v42  ;;  %v3956_v53 = vrot.slane %v8309_v19, 1 }
 0x19a   : > { %6770 = vrot.lane.b32.xlu1 %v6769_v63, %s7022_s15  ;;  %v6508_v47 = vunpack.i.h.bf16 %v6506_v15  ;;  %v6507_v35 = vunpack.i.l.bf16 %v6506_v15  ;;  %v2916_v29 = vrot.slane %v2902_v0, %v7090_v7  ;;  %v4727_v21 = vsel %vm4723_vm8, %v4694_v31, %v6503_v3 }
 0x19b   : > { %v8434_v39 = vcombine.low %v3640_v37, %v3647_v4  ;;  %v2917_v15 = vcombine.high %v2909_v25, %v2909_v25  ;;  %v8443_v55 = vsel %vm2982_vm4, %v8214_v20, 0.0  ;;  %v9524_v3 = vrot.slane %v8109_v11, 1 }
 0x19c   : > { %v4856_v63 = vsel %vm4756_vm9, %v4824_v36, %v6507_v35  ;;  %v4760_v1 = vsel %vm4756_vm9, %v4727_v21, %v6508_v47  ;;  %v2918_v51 = vcombine.high %v2916_v29, %v2916_v29  ;;  %9523 = vst [vmem:[#allocation59_spill] sm:$0xff] %v8443_v55  ;;  %v2231_v36 = vadd.f32 %v8296_v34, %v7586_v12 }
 0x19d   : > { %9522 = vst [vmem:[#allocation58_spill] sm:$0xff] %v8434_v39  ;;  %6785 = vrot.lane.b32.xlu0 %v6784_v22, %s7024_s17  ;;  %v8449_v37 = vsel %vm3894_vm5, %v9524_v3, %v3953_v8  ;;  %v6511_v0 = vpop.permute.xlu1 %6510  ;;  %5071 = vmatprep.mubr.f32.mxu1 %v4856_v63  ;;  %v8456_v10 = vsel %vm2993_vm3, %v3614_v14, 0.0  ;;  %v6794_v20 = vpack.i.bf16 %v8288_v50, %v8404_v24  ;;  %v9525_v8 = vrot.slane %v8109_v11, 2 }
 0x19e   : > { %6775 = vrot.lane.b32.xlu1 %v6774_v40, %s7023_s16  ;;  %5072 = vmatmul.mubr.f32.vlgmr.msra.gmra.mrb[0].mxu1 %v4760_v1  ;;  %v8467_v47 = vsel %vm3894_vm5, %v3955_v49, %v3956_v53  ;;  %v4132_v12 = vrot.slane %v8302_v28, 2  ;;  %v4133_v34 = vrot.slane %v8309_v19, 2  ;;  %v2919_v14 = vcombine.high %v2231_v36, %v2231_v36 }
 0x19f   : > { %v8464_v4 = vsel %vm4071_vm6, %v9525_v8, %v4130_v6  ;;  %v6789_v40 = vpack.i.bf16 %v8020_v44, %v8449_v37  ;;  %v3656_v35 = vcombine.low %v2909_v25, %v2917_v15  ;;  %v3657_v31 = vcombine.low %v2916_v29, %v2918_v51 }
 0x1a0   : > { %v2926_v21 = vrot.slane %v2231_v36, %v7090_v7  ;;  %v8478_v6 = vsel %vm2982_vm4, %v8314_v9, 0.0  ;;  %v2901_v1 = vcombine.high %v8410_v43, %v8410_v43  ;;  %v2933_v3 = vrot.slane %v2919_v14, %v7090_v7 }
 0x1a1   : > { %6795 = vrot.lane.b32.xlu0 %v6794_v20, %s7022_s15  ;;  %9526 = vst [vmem:[#allocation60_spill] sm:$0xff] %v8478_v6  ;;  %v6521_v63 = vpop.permute.xlu0 %6520  ;;  %v6512_v20 = vunpack.i.l.bf16 %v6511_v0  ;;  %v6809_v25 = vpack.i.bf16 %v8368_v60, %v8309_v19  ;;  %v6799_v29 = vpack.i.bf16 %v8358_v26, %v8464_v4  ;;  %v6526_v15 = vpop.permute.xlu1 %6525  ;;  %v6814_v9 = vpack.i.bf16 %v8202_v62, %v8467_v47 }
 0x1a2   : > { %6790 = vrot.lane.b32.xlu1 %v6789_v40, %s7024_s17  ;;  %v6517_v51 = vunpack.i.l.bf16 %v8430_v16  ;;  %v6513_v36 = vunpack.i.h.bf16 %v6511_v0  ;;  %v8493_v43 = vsel %vm4071_vm6, %v4132_v12, %v4133_v34  ;;  %v9527_v8 = vrot.slane %v8263_v46, 1 }
 0x1a3   : > { %v3664_v40 = vrot.slane %v3656_v35, %v7090_v7  ;;  %v3671_v49 = vrot.slane %v3657_v31, %v7090_v7  ;;  %v2934_v22 = vcombine.high %v2926_v21, %v2926_v21  ;;  %v2935_v42 = vcombine.high %v2933_v3, %v2933_v3 }
 0x1a4   : > { %v8498_v14 = vsel %vm3894_vm5, %v3956_v53, %v9527_v8  ;;  %v6518_v62 = vunpack.i.h.bf16 %v8430_v16  ;;  %v6522_v44 = vunpack.i.l.bf16 %v6521_v63  ;;  %v3655_v0 = vrot.slane %v2901_v1, %v7090_v7 }
 0x1a5   : > { %6810 = vrot.lane.b32.xlu0 %v6809_v25, %s7023_s16  ;;  %v6536_v12 = vpop.permute.xlu0 %6535  ;;  %v6804_v60 = vpack.i.bf16 %v8293_v30, %v8302_v28  ;;  %v6523_v13 = vunpack.i.h.bf16 %v6521_v63  ;;  %v6527_v53 = vunpack.i.l.bf16 %v6526_v15  ;;  %v6819_v35 = vpack.i.bf16 %v8109_v11, %v8498_v14 }
 0x1a6   : > { %6800 = vrot.lane.b32.xlu1 %v6799_v29, %s7022_s15  ;;  %v4793_v31 = vsel %vm4690_vm7, %v7778_v17, %v6512_v20  ;;  %v6528_v25 = vunpack.i.h.bf16 %v6526_v15  ;;  %v6824_v16 = vpack.i.bf16 %v8380_v48, %v8493_v43  ;;  %v4695_v1 = vsel %vm4690_vm7, %v7611_v32, %v6513_v36 }
 0x1a7   : > { %v4794_v8 = vsel %vm4690_vm7, %v7667_v58, %v6517_v51  ;;  %v3672_v63 = vcombine.low %v3664_v40, %v3671_v49  ;;  %v6531_v29 = vpop.permute.xlu1 %6530  ;;  %v3673_v30 = vcombine.low %v2926_v21, %v2934_v22  ;;  %v3674_v26 = vcombine.low %v2933_v3, %v2935_v42 }
 0x1a8   : > { %v9528_v11 = vrot.slane %v8263_v46, 2  ;;  %v6537_v20 = vunpack.i.l.bf16 %v6536_v12  ;;  %v6533_v15 = vunpack.i.h.bf16 %v6531_v29  ;;  %v6532_v48 = vunpack.i.l.bf16 %v6531_v29 }
 0x1a9   : > { %6815 = vrot.lane.b32.xlu0 %v6814_v9, %s7024_s17  ;;  %v4825_v57 = vsel %vm4723_vm8, %v4793_v31, %v6522_v44  ;;  %v6546_v32 = vpop.permute.xlu0 %6545  ;;  %v4728_v58 = vsel %vm4723_vm8, %v4695_v1, %v6523_v13  ;;  %v4826_v49 = vsel %vm4723_vm8, %v4794_v8, %v6527_v53  ;;  %v3960_v22 = vrot.slane %v8443_v55, 1 }
 0x1aa   : > { %v8522_v17 = vsel %vm4071_vm6, %v4133_v34, %v9528_v11  ;;  %6805 = vrot.lane.b32.xlu1 %v6804_v60, %s7023_s16  ;;  %v3961_v42 = vrot.slane %v8258_v45, 1  ;;  %v4857_v46 = vsel %vm4756_vm9, %v4825_v57, %v6532_v48  ;;  %v4761_v11 = vsel %vm4756_vm9, %v4728_v58, %v6533_v15 }
 0x1ab   : > { %v4137_v34 = vrot.slane %v8443_v55, 2  ;;  %v4138_v21 = vrot.slane %v8258_v45, 2  ;;  %v6538_v44 = vunpack.i.h.bf16 %v6536_v12  ;;  %v3681_v60 = vrot.slane %v3673_v30, %v7090_v7  ;;  %5076 = vmatprep.mubr.f32.mxu1 %v4857_v46 }
 0x1ac   : > { %v3688_v13 = vrot.slane %v3674_v26, %v7090_v7  ;;  %v4696_v3 = vsel %vm4690_vm7, %v7614_v38, %v6518_v62  ;;  %v4145_v9 = vrot.slane %v8456_v10, 2  ;;  %v8543_v57 = vsel %vm2982_vm4, %v8407_v2, 0.0  ;;  %5077 = vmatmul.mubr.f32.gmra.mrb[2].mxu1 %v4761_v11 }
 0x1ad   : > { %6825 = vrot.lane.b32.xlu0 %v6824_v16, %s7022_s15  ;;  %9529 = vst [vmem:[#allocation61_spill] sm:$0xff] %v8543_v57  ;;  %v4858_v48 = vsel %vm4756_vm9, %v4826_v49, %v6537_v20  ;;  %v4729_v51 = vsel %vm4723_vm8, %v4696_v3, %v6528_v25  ;;  %v8549_v30 = vsel %vm2993_vm3, %v3655_v0, 0.0  ;;  %v6839_v38 = vpack.i.bf16 %v8464_v4, %v8258_v45 }
 0x1ae   : > { %6820 = vrot.lane.b32.xlu1 %v6819_v35, %s7024_s17  ;;  %5081 = vmatprep.mubr.f32.mxu1 %v4858_v48  ;;  %v8555_v62 = vsel %vm3894_vm5, %v3960_v22, %v3961_v42  ;;  %v2236_v26 = vadd.f32 %v8339_v27, %v7470_v33  ;;  %v8561_v2 = vsel %vm2982_vm4, %v3672_v63, 0.0  ;;  %v6541_v36 = vpop.permute.xlu1 %6540  ;;  %v6829_v0 = vpack.i.bf16 %v8449_v37, %v8522_v17 }
 0x1af   : > { %v6551_v40 = vpop.permute.xlu0 %6550  ;;  %v6834_v12 = vpack.i.bf16 %v8404_v24, %v8443_v55  ;;  %v8568_v53 = vsel %vm4071_vm6, %v4137_v34, %v4138_v21  ;;  %v6548_v35 = vunpack.i.h.bf16 %v6546_v32  ;;  %v6547_v31 = vunpack.i.l.bf16 %v6546_v32  ;;  %v9533_v34 = vld [vmem:[#allocation13_spill] sm:$0xff] }
 0x1b0   : > { %v8570_v25 = vcombine.low %v3681_v60, %v3688_v13  ;;  %v4762_v5 = vsel %vm4756_vm9, %v4729_v51, %v6538_v44  ;;  %v6844_v33 = vpack.i.bf16 %v8302_v28, %v8555_v62  ;;  %v9530_v27 = vrot.slane %v8386_v56, 1  ;;  %v9534_v60 = vld [vmem:[#allocation6_spill] sm:$0xff] }
 0x1b1   : > { %6840 = vrot.lane.b32.xlu0 %v6839_v38, %s7023_s16  ;;  %5082 = vmatmul.mubr.f32.gmra.mrb[4].mxu1 %v4762_v5  ;;  %v6869_v1 = vpack.i.bf16 %v8522_v17, %v8373_v59  ;;  %v9532_v8 = vrot.slane %v8386_v56, 2  ;;  %v6543_v29 = vunpack.i.h.bf16 %v6541_v36  ;;  %v6542_v20 = vunpack.i.l.bf16 %v6541_v36 }
 0x1b2   : > { %v8579_v16 = vsel %vm3894_vm5, %v3961_v42, %v9530_v27  ;;  %6830 = vrot.lane.b32.xlu1 %v6829_v0, %s7022_s15  ;;  %v6854_v15 = vpack.i.bf16 %v8467_v47, %v8568_v53  ;;  %v2943_v32 = vrot.slane %v2236_v26, %v7090_v7  ;;  %v6556_v58 = vpop.permute.xlu1 %6555  ;;  %v3965_v49 = vrot.slane %v8478_v6, 1  ;;  %v9535_v26 = vld [vmem:[#allocation15_spill] sm:$0xff]  ;;  %v9536_v0 = vld [vmem:[#allocation5_spill] sm:$0xff] }
 0x1b3   : > { %9531 = vst [vmem:[#allocation62_spill] sm:$0xff] %v8579_v16  ;;  %v8586_v63 = vsel %vm4071_vm6, %v4138_v21, %v9532_v8  ;;  %v3966_v22 = vrot.slane %v8373_v59, 1  ;;  %v4142_v42 = vrot.slane %v8478_v6, 2  ;;  %v4143_v56 = vrot.slane %v8373_v59, 2  ;;  %v6566_v46 = vpop.permute.xlu0 %6565 }
 0x1b4   : > { %v6849_v11 = vpack.i.bf16 %v8309_v19, %v8579_v16  ;;  %v4796_v21 = vsel %vm4690_vm7, %v9533_v34, %v6547_v31  ;;  %v6859_v44 = vpack.i.bf16 %v8498_v14, %v8586_v63  ;;  %v4698_v13 = vsel %vm4690_vm7, %v9534_v60, %v6548_v35 }
 0x1b5   : > { %6845 = vrot.lane.b32.xlu0 %v6844_v33, %s7024_s17  ;;  %v6553_v3 = vunpack.i.h.bf16 %v6551_v40  ;;  %v6552_v48 = vunpack.i.l.bf16 %v6551_v40  ;;  %v6557_v51 = vunpack.i.l.bf16 %v6556_v58  ;;  %v6864_v38 = vpack.i.bf16 %v8493_v43, %v8478_v6 }
 0x1b6   : > { %6835 = vrot.lane.b32.xlu1 %v6834_v12, %s7023_s16  ;;  %v4795_v36 = vsel %vm4690_vm7, %v9535_v26, %v6542_v20  ;;  %v4697_v31 = vsel %vm4690_vm7, %v9536_v0, %v6543_v29  ;;  %v3696_v5 = vrot.slane %v2943_v32, %v7090_v7  ;;  %v6561_v35 = vpop.permute.xlu1 %6560  ;;  %v8616_v40 = vsel %vm3894_vm5, %v3965_v49, %v3966_v22 }
 0x1b7   : > { %9537 = vst [vmem:[#allocation13_spill] sm:$0xff] %v8616_v40  ;;  %v8619_v27 = vsel %vm4071_vm6, %v4142_v42, %v4143_v56  ;;  %v9538_v12 = vrot.slane %v8456_v10, 1  ;;  %v6558_v29 = vunpack.i.h.bf16 %v6556_v58  ;;  %v6567_v34 = vunpack.i.l.bf16 %v6566_v46  ;;  %v8628_v26 = vpop.permute.xlu0 %6575 }
 0x1b8   : > { %v6563_v32 = vunpack.i.h.bf16 %v6561_v35  ;;  %v6562_v60 = vunpack.i.l.bf16 %v6561_v35  ;;  %v4827_v49 = vsel %vm4723_vm8, %v4795_v36, %v6552_v48  ;;  %v4730_v42 = vsel %vm4723_vm8, %v4697_v31, %v6553_v3  ;;  %v331_v31 = vld [vmem:[%s7087_s8 + $0x1a0] sm:$0xff] }
 0x1b9   : > { %v8624_v8 = vsel %vm3894_vm5, %v3966_v22, %v9538_v12  ;;  %6855 = vrot.lane.b32.xlu0 %v6854_v15, %s7022_s15  ;;  %v4828_v0 = vsel %vm4723_vm8, %v4796_v21, %v6557_v51  ;;  %v8636_v22 = vsel %vm4071_vm6, %v4143_v56, %v4145_v9  ;;  %v8643_v15 = vsel %vm2993_vm3, %v3696_v5, 0.0 }
 0x1ba   : > { %9539 = vst [vmem:[#allocation6_spill] sm:$0xff] %v8624_v8  ;;  %6850 = vrot.lane.b32.xlu1 %v6849_v11, %s7024_s17  ;;  %v4859_v58 = vsel %vm4756_vm9, %v4827_v49, %v6562_v60  ;;  %v4763_v35 = vsel %vm4756_vm9, %v4730_v42, %v6563_v32  ;;  %v6874_v3 = vpack.i.bf16 %v8443_v55, %v8616_v40  ;;  %v6568_v21 = vunpack.i.h.bf16 %v6566_v46  ;;  %v6571_v48 = vpop.permute.xlu1 %6570 }
 0x1bb   : > { %5086 = vmatprep.mubr.f32.mxu1 %v4859_v58  ;;  %v6884_v10 = vpack.i.bf16 %v8555_v62, %v8619_v27  ;;  %v6879_v9 = vpack.i.bf16 %v8258_v45, %v8624_v8  ;;  %v4347_v56 = vrot.slane %v8561_v2, 1  ;;  %v4860_v18 = vsel %vm4756_vm9, %v4828_v0, %v6567_v34  ;;  %v6581_v11 = vpop.permute.xlu0 %6580 }
 0x1bc   : > { %5087 = vmatmul.mubr.f32.gmra.mrb[6].mxu1 %v4763_v35  ;;  %v4731_v51 = vsel %vm4723_vm8, %v4698_v13, %v6558_v29  ;;  %v4348_v36 = vrot.slane %v8570_v25, 1  ;;  %v4350_v5 = vrot.slane %v8643_v15, 1  ;;  %v6573_v60 = vunpack.i.h.bf16 %v6571_v48  ;;  %v9541_v29 = vld [vmem:[#allocation2_spill] sm:$0xff] }
 0x1bd   : > { %6870 = vrot.lane.b32.xlu0 %v6869_v1, %s7023_s16  ;;  %5091 = vmatprep.mubr.f32.mxu1 %v4860_v18  ;;  %v6572_v34 = vunpack.i.l.bf16 %v6571_v48  ;;  %v1107_v49 = vcombine.high %v9541_v29, %v9541_v29  ;;  %v6577_v42 = vunpack.i.l.bf16 %v8628_v26  ;;  %v4764_v58 = vsel %vm4756_vm9, %v4731_v51, %v6568_v21  ;;  %v9543_v51 = vld [vmem:[#allocation11_spill] sm:$0xff] }
 0x1be   : > { %6860 = vrot.lane.b32.xlu1 %v6859_v44, %s7022_s15  ;;  %v8665_v13 = vsel %vm3894_vm5, %v4347_v56, %v4348_v36  ;;  %v6586_v0 = vpop.permute.xlu1 %6585  ;;  %v1108_v18 = vcombine.high %v331_v31, %v331_v31  ;;  %v6578_v1 = vunpack.i.h.bf16 %v8628_v26  ;;  %v6583_v12 = vunpack.i.h.bf16 %v6581_v11  ;;  %v9542_v26 = vld [vmem:[#allocation21_spill] sm:$0xff] }
 0x1bf   : > { %9540 = vst [vmem:[#allocation15_spill] sm:$0xff] %v8665_v13  ;;  %v6596_v44 = vpop.permute.xlu0 %6595  ;;  %v1115_v48 = vrot.slane %v331_v31, %v7090_v7  ;;  %v4384_v56 = vrot.slane %v8561_v2, 2  ;;  %v6582_v29 = vunpack.i.l.bf16 %v6581_v11  ;;  %v6587_v46 = vunpack.i.l.bf16 %v6586_v0 }
 0x1c0   : > { %5092 = vmatmul.mubr.f32.gmra.mrb[8].mxu1 %v4764_v58  ;;  %v1122_v33 = vrot.slane %v1108_v18, %v7090_v7  ;;  %v4385_v21 = vrot.slane %v8570_v25, 2  ;;  %v4699_v31 = vsel %vm4690_vm7, %v9543_v51, %v6573_v60  ;;  %v6588_v11 = vunpack.i.h.bf16 %v6586_v0  ;;  %v9544_v18 = vld [vmem:[#allocation20_spill] sm:$0xff] }
 0x1c1   : > { %6875 = vrot.lane.b32.xlu0 %v6874_v3, %s7024_s17  ;;  %v4797_v3 = vsel %vm4690_vm7, %v9542_v26, %v6572_v34  ;;  %v1123_v58 = vcombine.high %v1115_v48, %v1115_v48  ;;  %v1812_v35 = vcombine.low %v1107_v49, %v1115_v48  ;;  %v6597_v20 = vunpack.i.l.bf16 %v6596_v44  ;;  %v5919_v26 = vld.sshfl [vmem:[%s7087_s8 + $0x1a8] sm:$0x3 pattern:$0x76325410] }
 0x1c2   : > { %6865 = vrot.lane.b32.xlu1 %v6864_v38, %s7023_s16  ;;  %v6591_v32 = vpop.permute.xlu1 %6590  ;;  %v4798_v45 = vsel %vm4690_vm7, %v9544_v18, %v6577_v42  ;;  %v8689_v55 = vsel %vm4071_vm6, %v4384_v56, %v4385_v21  ;;  %v4829_v49 = vsel %vm4723_vm8, %v4797_v3, %v6582_v29  ;;  %v4732_v0 = vsel %vm4723_vm8, %v4699_v31, %v6583_v12  ;;  %v9548_v12 = vld [vmem:[#allocation10_spill] sm:$0xff] }
 0x1c3   : > { %v6593_v19 = vunpack.i.h.bf16 %v6591_v32  ;;  %v6592_v38 = vunpack.i.l.bf16 %v6591_v32  ;;  %v8692_v28 = vpop.permute.xlu0 %6605  ;;  %v1813_v34 = vcombine.low %v1123_v58, %v1122_v33  ;;  %v1820_v60 = vrot.slane %v1812_v35, %v7090_v7 }
 0x1c4   : > { %v4830_v48 = vsel %vm4723_vm8, %v4798_v45, %v6587_v46  ;;  %v1124_v42 = vcombine.high %v1122_v33, %v1122_v33  ;;  %v9546_v51 = vrot.slane %v8543_v57, 1  ;;  %v6598_v3 = vunpack.i.h.bf16 %v6596_v44 }
 0x1c5   : > { %6885 = vrot.lane.b32.xlu0 %v6884_v10, %s7022_s15  ;;  %v4861_v56 = vsel %vm4756_vm9, %v4829_v49, %v6592_v38  ;;  %v4765_v32 = vsel %vm4756_vm9, %v4732_v0, %v6593_v19  ;;  %v9545_v10 = vrot.slane %v8434_v39, 1  ;;  %v1827_v29 = vrot.slane %v1813_v34, %v7090_v7 }
 0x1c6   : > { %6880 = vrot.lane.b32.xlu1 %v6879_v9, %s7024_s17  ;;  %5096 = vmatprep.mubr.f32.mxu1 %v4861_v56  ;;  %v4700_v45 = vsel %vm4690_vm7, %v9548_v12, %v6578_v1  ;;  %v1829_v33 = vcombine.low %v1124_v42, %v5919_v26  ;;  %v8713_v9 = vsel %vm3894_vm5, %v4348_v36, %v4350_v5  ;;  %v8715_v46 = vpop.permute.xlu1 %6600  ;;  %v4917_v36 = vld [vmem:[%s9367_s3 + $0x100] sm:$0xff]  ;;  %v4918_v5 = vld [vmem:[%s9367_s3 + $0x108] sm:$0xff]  ;;  %v3973_v1 = vrot.slane %v8549_v30, 1 }
 0x1c7   : > { %v8707_v35 = vsel %vm3894_vm5, %v9546_v51, %v9545_v10  ;;  %9549 = vst [vmem:[#allocation2_spill] sm:$0xff] %v8713_v9  ;;  %v9550_v19 = vpack.i.bf16 %v8586_v63, %v8434_v39  ;;  %5097 = vmatmul.mubr.f32.gmra.mrb[10].mxu1 %v4765_v32  ;;  %v4862_v31 = vsel %vm4756_vm9, %v4830_v48, %v6597_v20  ;;  %v8722_v58 = vpop.permute.xlu0 %6620  ;;  %v9552_v34 = vrot.slane %v8643_v15, 2 }
 0x1c8   : > { %9547 = vst [vmem:[#allocation5_spill] sm:$0xff] %v8707_v35  ;;  %v4733_v44 = vsel %vm4723_vm8, %v4700_v45, %v6588_v11  ;;  %v1828_v18 = vcombine.low %v1820_v60, %v1827_v29  ;;  %5101 = vmatprep.mubr.f32.mxu1 %v4862_v31  ;;  %v9551_v20 = vpack.i.bf16 %v8579_v16, %v8636_v22  ;;  %v9553_v49 = vrot.slane %v8434_v39, 2 }
 0x1c9   : > { %6900 = vrot.lane.b32.xlu0 %v9550_v19, %s7023_s16  ;;  %v6904_v11 = vpack.i.bf16 %v8478_v6, %v8707_v35  ;;  %v1836_v38 = vrot.slane %v1829_v33, %v7090_v7  ;;  %v8743_v60 = vsel %vm4071_vm6, %v4385_v21, %v9552_v34  ;;  %v4766_v26 = vsel %vm4756_vm9, %v4733_v44, %v6598_v3 }
 0x1ca   : > { %6890 = vrot.lane.b32.xlu1 %v9551_v20, %s7022_s15  ;;  %6265 = vmatmul.mubr.msk.f32.gmra.mrb[78].mxu0 %vm1892_vm2, %v1828_v18  ;;  %v9554_v0 = vrot.slane %v8543_v57, 2  ;;  %v9555_v42 = vmov 0.0   ;;  %v8755_v56 = vpack.c.bf16 %v4918_v5, %v4917_v36  ;;  %v8757_v7 = vpop.permute.xlu1 %6610  ;;  %v6894_v15 = vpack.i.bf16 %v8568_v53, %v8543_v57 }
 0x1cb   : > { %6267 = vmatprep.mubr.msk.f32.mxu0 %vm7019_vm1, %v9555_v42  ;;  %5102 = vmatmul.mubr.f32.gmra.mrb[12].mxu1 %v4766_v26  ;;  %v9556_v21 = vmov %v9545_v10  ;;  %v4150_v10 = vrot.slane %v8549_v30, 2  ;;  %v9557_v30 = vmov %v9553_v49  ;;  %v6934_v19 = vpack.i.bf16 %v8636_v22, %v8570_v25 }
 0x1cc   : > { %v8751_v48 = vsel %vm4071_vm6, %v9554_v0, %v9553_v49  ;;  %v8765_v32 = vsel %vm3894_vm5, %v9556_v21, %v3973_v1  ;;  %6431 = vmatprep.subr.bf16.mxu0 %v8755_v56  ;;  %v6602_v18 = vunpack.i.l.bf16 %v8715_v46  ;;  %v6939_v5 = vpack.i.bf16 %v8543_v57, %v8665_v13  ;;  %v9558_v49 = vld [vmem:[#allocation30_spill] sm:$0xff] }
 0x1cd   : > { %6905 = vrot.lane.b32.xlu0 %v6904_v11, %s7024_s17  ;;  %v8769_v51 = vpop.permute.xlu0 %6640  ;;  %v6914_v29 = vpack.i.bf16 %v8616_v40, %v8751_v48  ;;  %v6909_v12 = vpack.i.bf16 %v8373_v59, %v8765_v32  ;;  %v8783_v45 = vsel %vm4071_vm6, %v9557_v30, %v4150_v10  ;;  %v6607_v1 = vunpack.i.l.bf16 %v8692_v28  ;;  %v9559_v30 = vld [vmem:[#allocation26_spill] sm:$0xff] }
 0x1ce   : > { %6895 = vrot.lane.b32.xlu1 %v6894_v15, %s7023_s16  ;;  %6268 = vmatmul.mubr.msk.f32.gmra.mrb[80].mxu0 %vm1892_vm2, %v1836_v38  ;;  %v6919_v44 = vpack.i.bf16 %v8624_v8, %v8783_v45  ;;  %v6603_v20 = vunpack.i.h.bf16 %v8715_v46  ;;  %v6622_v11 = vunpack.i.l.bf16 %v8722_v58  ;;  %v6924_v34 = vpack.i.bf16 %v8619_v27, %v8561_v2 }
 0x1cf   : > { %v8775_v3 = vpop.permute.xlu1 %6615  ;;  %v6929_v26 = vpack.i.bf16 %v8751_v48, %v9555_v42  ;;  %v4799_v0 = vsel %vm4690_vm7, %v9558_v49, %v6602_v18  ;;  %v6608_v15 = vunpack.i.h.bf16 %v8692_v28  ;;  %v6623_v21 = vunpack.i.h.bf16 %v8722_v58 }
 0x1d0   : > { %v6612_v58 = vunpack.i.l.bf16 %v8757_v7  ;;  %v6944_v13 = vpack.i.bf16 %v8434_v39, %v8713_v9 }
 0x1d1   : > { %6915 = vrot.lane.b32.xlu0 %v6914_v29, %s7022_s15  ;;  %v6949_v29 = vpack.i.bf16 %v8707_v35, %v8689_v55  ;;  %v9562_v35 = vld [vmem:[#allocation43_spill] sm:$0xff] }
 0x1d2   : > { %6910 = vrot.lane.b32.xlu1 %v6909_v12, %s7024_s17  ;;  %v4691_v40 = vsel %vm4690_vm7, 0.0, %v6612_v58  ;;  %v6643_v58 = vunpack.i.h.bf16 %v8769_v51 }
 0x1d3   : > { %v8785_v33 = vpop.permute.xlu0 %6650  ;;  %v6626_v31 = vpop.permute.xlu1 %6625 }
 0x1d4   : > { %v6627_v46 = vunpack.i.l.bf16 %v6626_v31  ;;  %v6652_v12 = vunpack.i.l.bf16 %v8785_v33  ;;  %v6628_v59 = vunpack.i.h.bf16 %v6626_v31 }
 0x1d5   : > { %6935 = vrot.lane.b32.xlu0 %v6934_v19, %s7023_s16  ;;  %v6954_v19 = vpack.i.bf16 %v8561_v2, %v9559_v30  ;;  %v6617_v2 = vunpack.i.l.bf16 %v8775_v3 }
 0x1d6   : > { %6920 = vrot.lane.b32.xlu1 %v6919_v44, %s7022_s15  ;;  %v9560_v44 = vld [vmem:[#allocation19_spill] sm:$0xff]  ;;  %v4789_v8 = vsel %vm4690_vm7, %v9562_v35, %v6652_v12 }
 0x1d7   : > { %v8794_v36 = vpop.permute.xlu0 %6675  ;;  %v8802_v38 = vpop.permute.xlu1 %6630  ;;  %v4701_v18 = vsel %vm4690_vm7, %v9560_v44, %v6603_v20  ;;  %v4920_v44 = vld [vmem:[%s9367_s3 + $0x118] sm:$0xff] }
 0x1d8   : > { %v4734_v31 = vsel %vm4723_vm8, %v4701_v18, %v6623_v21  ;;  %v9563_v21 = vld [vmem:[#allocation14_spill] sm:$0xff] }
 0x1d9   : > { %6940 = vrot.lane.b32.xlu0 %v6939_v5, %s7024_s17  ;;  %v9561_v5 = vld [vmem:[#allocation29_spill] sm:$0xff] }
 0x1da   : > { %6925 = vrot.lane.b32.xlu1 %v6924_v34, %s7023_s16  ;;  %v4800_v28 = vsel %vm4690_vm7, %v9561_v5, %v6607_v1  ;;  %v4831_v34 = vsel %vm4723_vm8, %v4799_v0, %v6622_v11  ;;  %v4919_v1 = vld [vmem:[%s9367_s3 + $0x110] sm:$0xff]  ;;  %v6632_v11 = vunpack.i.l.bf16 %v8802_v38 }
 0x1db   : > { %v8813_v10 = vpop.permute.xlu0 %6685  ;;  %v6636_v57 = vpop.permute.xlu1 %6635  ;;  %v6434_v18 = vpack.c.bf16 %v4920_v44, %v4919_v1 }
 0x1dc   : > { %v6687_v49 = vunpack.i.l.bf16 %v8813_v10  ;;  %v6638_v6 = vunpack.i.h.bf16 %v6636_v57  ;;  %v6637_v20 = vunpack.i.l.bf16 %v6636_v57  ;;  %v4832_v57 = vsel %vm4723_vm8, %v4800_v28, %v6627_v46 }
 0x1dd   : > { %6950 = vrot.lane.b32.xlu0 %v6949_v29, %s7022_s15  ;;  %v6642_v29 = vunpack.i.l.bf16 %v8769_v51  ;;  %v4702_v46 = vsel %vm4690_vm7, %v9563_v21, %v6608_v15  ;;  %v4724_v28 = vsel %vm4723_vm8, %v4691_v40, %v6617_v2  ;;  %v6964_v15 = vpack.i.bf16 %v8783_v45, %v9555_v42 }
 0x1de   : > { %6930 = vrot.lane.b32.xlu1 %v6929_v26, %s7023_s16  ;;  %v4863_v39 = vsel %vm4756_vm9, %v4831_v34, %v6637_v20  ;;  %v4767_v9 = vsel %vm4756_vm9, %v4734_v31, %v6638_v6  ;;  %v4821_v26 = vsel %vm4723_vm8, %v4789_v8, %v6687_v49  ;;  %v4735_v12 = vsel %vm4723_vm8, %v4702_v46, %v6628_v59 }
 0x1df   : > { %v8840_v0 = vpop.permute.xlu0 %6700  ;;  %v8851_v16 = vpop.permute.xlu1 %6645  ;;  %5106 = vmatprep.mubr.f32.mxu1 %v4863_v39  ;;  %v4864_v6 = vsel %vm4756_vm9, %v4832_v57, %v6642_v29  ;;  %v4757_v8 = vsel %vm4756_vm9, %v4724_v28, %v6632_v11  ;;  %v4768_v59 = vsel %vm4756_vm9, %v4735_v12, %v6643_v58  ;;  %v9564_v11 = vld [vmem:[#allocation3_spill] sm:$0xff] }
 0x1e0   : > { %v6702_v5 = vunpack.i.l.bf16 %v8840_v0  ;;  %5107 = vmatmul.mubr.f32.gmra.mrb[14].mxu1 %v4767_v9  ;;  %v6959_v9 = vpack.i.bf16 %v8765_v32, %v8743_v60 }
 0x1e1   : > { %6955 = vrot.lane.b32.xlu0 %v6954_v19, %s7024_s17  ;;  %5111 = vmatprep.mubr.f32.mxu1 %v4864_v6  ;;  %v6648_v6 = vunpack.i.h.bf16 %v8851_v16 }
 0x1e2   : > { %v4853_v35 = vsel %vm4756_vm9, %v4821_v26, %v6702_v5  ;;  %6945 = vrot.lane.b32.xlu1 %v6944_v13, %s7024_s17  ;;  %v6969_v13 = vpack.i.bf16 %v8570_v25, %v9559_v30 }
 0x1e3   : > { %v8862_v39 = vpop.permute.xlu0 %6705  ;;  %5056 = vmatprep.mubr.f32.mxu0 %v4853_v35  ;;  %v8868_v40 = vpop.permute.xlu1 %6655 }
 0x1e4   : > { %5057 = vmatmul.mubr.f32.vlgmr.msra.gmra.mrb[82].mxu0 %v4757_v8  ;;  %5112 = vmatmul.mubr.f32.gmra.mrb[16].mxu1 %v4768_v59  ;;  %v6707_v34 = vunpack.i.l.bf16 %v8862_v39  ;;  %v6657_v1 = vunpack.i.l.bf16 %v8868_v40  ;;  %v6647_v8 = vunpack.i.l.bf16 %v8851_v16 }
 0x1e5   : > { %6965 = vrot.lane.b32.xlu0 %v6964_v15, %s7023_s16  ;;  %6433 = vmatpush3.bf16.msra.mxu0 %v8755_v56 }
 0x1e6   : > { %6435 = vmatprep.subr.bf16.mxu0 %v6434_v18  ;;  %6960 = vrot.lane.b32.xlu1 %v6959_v9, %s7022_s15  ;;  %v4790_v31 = vsel %vm4690_vm7, %v9564_v11, %v6707_v34  ;;  %v4692_v21 = vsel %vm4690_vm7, 0.0, %v6657_v1  ;;  %v9565_v9 = vld [vmem:[#allocation7_spill] sm:$0xff]  ;;  %v9566_v11 = vld [vmem:[#allocation28_spill] sm:$0xff] }
 0x1e7   : > { %v8875_v51 = vpop.permute.xlu0 %6710  ;;  %v8878_v42 = vpop.permute.xlu1 %6660 }
 0x1e8   : > { %v6662_v44 = vunpack.i.l.bf16 %v8878_v42  ;;  %v6712_v25 = vunpack.i.l.bf16 %v8875_v51 }
 0x1e9   : > { %6437 = vmatpush3.bf16.msra.mxu0 %v6434_v18 }
 0x1ea   : > { %6970 = vrot.lane.b32.xlu1 %v6969_v13, %s7024_s17  ;;  %v4725_v58 = vsel %vm4723_vm8, %v4692_v21, %v6662_v44  ;;  %v4791_v13 = vsel %vm4690_vm7, %v9565_v9, %v6712_v25  ;;  %v9567_v21 = vld [vmem:[#allocation40_spill] sm:$0xff] }
 0x1eb   : > { %v8882_v19 = vpop.permute.xlu0 %6715  ;;  %v8885_v56 = vpop.permute.xlu1 %6665 }
 0x1ec   : > { %v6717_v2 = vunpack.i.l.bf16 %v8882_v19  ;;  %v6667_v46 = vunpack.i.l.bf16 %v8885_v56 }
 0x1ee   : > { %v4822_v26 = vsel %vm4723_vm8, %v4790_v31, %v6717_v2  ;;  %v4693_v44 = vsel %vm4690_vm7, %v9566_v11, %v6667_v46  ;;  %v6688_v46 = vunpack.i.h.bf16 %v8813_v10  ;;  %v6708_v10 = vunpack.i.h.bf16 %v8862_v39  ;;  %v9570_v11 = vld [vmem:[#allocation35_spill] sm:$0xff] }
 0x1ef   : > { %v8887_v49 = vpop.permute.xlu0 %6720  ;;  %v8891_v20 = vpop.permute.xlu1 %6670 }
 0x1f0   : > { %v6722_v57 = vunpack.i.l.bf16 %v8887_v49  ;;  %v6672_v35 = vunpack.i.l.bf16 %v8891_v20 }
 0x1f2   : > { %v4823_v2 = vsel %vm4723_vm8, %v4791_v13, %v6722_v57  ;;  %v4726_v31 = vsel %vm4723_vm8, %v4693_v44, %v6672_v35  ;;  %v9568_v57 = vld [vmem:[#allocation25_spill] sm:$0xff]  ;;  %v6703_v35 = vunpack.i.h.bf16 %v8840_v0  ;;  %v9569_v13 = vld [vmem:[#allocation12_spill] sm:$0xff] }
 0x1f3   : > { %v8895_v29 = vpop.permute.xlu0 %6725  ;;  %v8902_v5 = vpop.permute.xlu1 %6680 }
 0x1f4   : > { %v6727_v30 = vunpack.i.l.bf16 %v8895_v29  ;;  %v6682_v18 = vunpack.i.l.bf16 %v8902_v5  ;;  %v6728_v39 = vunpack.i.h.bf16 %v8895_v29 }
 0x1f6   : > { %v4854_v28 = vsel %vm4756_vm9, %v4822_v26, %v6727_v30  ;;  %v4758_v59 = vsel %vm4756_vm9, %v4725_v58, %v6682_v18  ;;  %v6653_v26 = vunpack.i.h.bf16 %v8785_v33  ;;  %v4801_v18 = vsel %vm4690_vm7, %v9567_v21, %v6647_v8 }
 0x1f7   : > { %5061 = vmatprep.mubr.f32.mxu0 %v4854_v28  ;;  %v8911_v12 = vpop.permute.xlu0 %6730  ;;  %v8919_v34 = vpop.permute.xlu1 %6690  ;;  %v4703_v28 = vsel %vm4690_vm7, %v9568_v57, %v6648_v6  ;;  %v6678_v58 = vunpack.i.h.bf16 %v8794_v36  ;;  %v6613_v8 = vunpack.i.h.bf16 %v8757_v7  ;;  %v6718_v7 = vunpack.i.h.bf16 %v8882_v19  ;;  %v9573_v57 = vld [vmem:[#allocation17_spill] sm:$0xff] }
 0x1f8   : > { %v6732_v15 = vunpack.i.l.bf16 %v8911_v12  ;;  %5062 = vmatmul.mubr.f32.gmra.mrb[84].mxu0 %v4758_v59  ;;  %v6692_v1 = vunpack.i.l.bf16 %v8919_v34  ;;  %v4802_v44 = vsel %vm4690_vm7, %v9570_v11, %v6653_v26 }
 0x1f9   : > { %v4834_v21 = vsel %vm4723_vm8, %v4802_v44, %v6688_v46  ;;  %v4803_v46 = vsel %vm4690_vm7, %v8228_v41, %v6708_v10 }
 0x1fa   : > { %v4855_v30 = vsel %vm4756_vm9, %v4823_v2, %v6732_v15  ;;  %v4759_v25 = vsel %vm4756_vm9, %v4726_v31, %v6692_v1  ;;  %v6677_v15 = vunpack.i.l.bf16 %v8794_v36  ;;  %v6618_v2 = vunpack.i.h.bf16 %v8775_v3 }
 0x1fb   : > { %v8926_v16 = vpop.permute.xlu0 %6735  ;;  %5066 = vmatprep.mubr.f32.mxu0 %v4855_v30  ;;  %v6696_v59 = vpop.permute.xlu1 %6695  ;;  %v4736_v36 = vsel %vm4723_vm8, %v4703_v28, %v6678_v58  ;;  %v6633_v31 = vunpack.i.h.bf16 %v8802_v38  ;;  %v4866_v26 = vsel %vm4756_vm9, %v4834_v21, %v6703_v35  ;;  %v6658_v38 = vunpack.i.h.bf16 %v8868_v40  ;;  %v9574_v40 = vld [vmem:[#allocation8_spill] sm:$0xff] }
 0x1fc   : > { %5067 = vmatmul.mubr.f32.gmra.mrb[86].mxu0 %v4759_v25  ;;  %v6698_v9 = vunpack.i.h.bf16 %v6696_v59  ;;  %v6697_v33 = vunpack.i.l.bf16 %v6696_v59  ;;  %v4833_v1 = vsel %vm4723_vm8, %v4801_v18, %v6677_v15  ;;  %v9571_v25 = vld [vmem:[#allocation4_spill] sm:$0xff]  ;;  %v9572_v18 = vld [vmem:[#allocation9_spill] sm:$0xff]  ;;  %v4704_v28 = vsel %vm4690_vm7, %v9573_v57, %v6613_v8  ;;  %v9575_v8 = vld [vmem:[#allocation18_spill] sm:$0xff] }
 0x1fd   : > { %6278 = vmatprep.mubr.msk.f32.mxu0 %vm4690_vm7, %v9569_v13  ;;  %v6713_v58 = vunpack.i.h.bf16 %v8875_v51  ;;  %v6663_v15 = vunpack.i.h.bf16 %v8878_v42  ;;  %v4737_v29 = vsel %vm4723_vm8, %v4704_v28, %v6618_v2  ;;  %v6723_v59 = vunpack.i.h.bf16 %v8887_v49  ;;  %v5474_v49 = vld [vmem:[%s9369_s5] sm:$0xff] }
 0x1fe   : > { %v4865_v30 = vsel %vm4756_vm9, %v4833_v1, %v6697_v33  ;;  %v4769_v0 = vsel %vm4756_vm9, %v4736_v36, %v6698_v9  ;;  %v6683_v35 = vunpack.i.h.bf16 %v8902_v5  ;;  %v4770_v33 = vsel %vm4756_vm9, %v4737_v29, %v6633_v31  ;;  %v5475_v5 = vld [vmem:[%s9369_s5 + $0x8] sm:$0xff]  ;;  %v9576_v36 = vld [vmem:[#allocation32_spill] sm:$0xff] }
 0x1ff   : > { %v8943_v6 = vpop.permute.xlu0 %6750  ;;  %5116 = vmatprep.mubr.f32.mxu1 %v4865_v30  ;;  %v8954_v3 = vpop.permute.xlu1 %6740  ;;  %v4835_v13 = vsel %vm4723_vm8, %v4803_v46, %v6718_v7  ;;  %v6733_v51 = vunpack.i.h.bf16 %v8911_v12  ;;  %v6737_v42 = vunpack.i.l.bf16 %v8926_v16  ;;  %v6668_v2 = vunpack.i.h.bf16 %v8885_v56  ;;  %v9577_v56 = vld [vmem:[#allocation16_spill] sm:$0xff]  ;;  %v9580_v46 = vld [vmem:[#allocation22_spill] sm:$0xff] }
 0x200   : > { %6279 = vmatmul.mubr.msk.f32.vlgmr.msra.gmra.mrb[88].mxu0 %vm4690_vm7, %v9571_v25  ;;  %5117 = vmatmul.mubr.f32.gmra.mrb[18].mxu1 %v4769_v0  ;;  %v4867_v41 = vsel %vm4756_vm9, %v4835_v13, %v6728_v39  ;;  %v4705_v10 = vsel %vm4690_vm7, %v9576_v36, %v6658_v38  ;;  %v6438_v30 = vpack.c.bf16 %v5475_v5, %v5474_v49  ;;  %v6673_v0 = vunpack.i.h.bf16 %v8891_v20  ;;  %v9579_v38 = vld [vmem:[#allocation24_spill] sm:$0xff] }
 0x201   : > { %6281 = vmatprep.mubr.msk.f32.mxu0 %vm4690_vm7, %v9572_v18  ;;  %5121 = vmatprep.mubr.f32.mxu1 %v4866_v26  ;;  %v4738_v11 = vsel %vm4723_vm8, %v4705_v10, %v6663_v15  ;;  %v4804_v44 = vsel %vm4690_vm7, %v8047_v52, %v6713_v58  ;;  %v6693_v31 = vunpack.i.h.bf16 %v8919_v34  ;;  %v6738_v7 = vunpack.i.h.bf16 %v8926_v16  ;;  %v9578_v26 = vld [vmem:[#allocation23_spill] sm:$0xff] }
 0x202   : > { %v4771_v21 = vsel %vm4756_vm9, %v4738_v11, %v6683_v35  ;;  %v4836_v39 = vsel %vm4723_vm8, %v4804_v44, %v6723_v59  ;;  %6439 = vmatprep.subr.bf16.mxu1 %v6438_v30  ;;  %v6742_v20 = vunpack.i.l.bf16 %v8954_v3  ;;  %v4805_v34 = vsel %vm4690_vm7, %v8151_v23, %v6737_v42  ;;  %v9581_v35 = vld [vmem:[#allocation38_spill] sm:$0xff] }
 0x203   : > { %v8964_v19 = vpop.permute.xlu0 %6755  ;;  %v6746_v9 = vpop.permute.xlu1 %6745  ;;  %v4868_v52 = vsel %vm4756_vm9, %v4836_v39, %v6733_v51  ;;  %v4706_v57 = vsel %vm4690_vm7, %v9579_v38, %v6668_v2  ;;  %6441 = vmatpush3.bf16.msra.mxu1 %v6438_v30  ;;  %v6743_v58 = vunpack.i.h.bf16 %v8954_v3  ;;  %v6752_v42 = vunpack.i.l.bf16 %v8943_v6  ;;  %v9583_v2 = vld [vmem:[#allocation37_spill] sm:$0xff]  ;;  %v9584_v30 = vld [vmem:[#allocation31_spill] sm:$0xff] }
 0x204   : > { %6282 = vmatmul.mubr.msk.f32.gmra.mrb[90].mxu0 %vm4690_vm7, %v9574_v40  ;;  %5122 = vmatmul.mubr.f32.gmra.mrb[20].mxu1 %v4770_v33  ;;  %v6747_v1 = vunpack.i.l.bf16 %v6746_v9  ;;  %v6748_v18 = vunpack.i.h.bf16 %v6746_v9  ;;  %v6757_v15 = vunpack.i.l.bf16 %v8964_v19  ;;  %v4739_v29 = vsel %vm4723_vm8, %v4706_v57, %v6673_v0  ;;  %v9582_v33 = vld [vmem:[#allocation33_spill] sm:$0xff] }
 0x205   : > { %6284 = vmatprep.mubr.msk.f32.mxu0 %vm4690_vm7, %v9575_v8  ;;  %5126 = vmatprep.mubr.f32.mxu1 %v4867_v41  ;;  %v4772_v23 = vsel %vm4756_vm9, %v4739_v29, %v6693_v31  ;;  %v4707_v40 = vsel %vm4690_vm7, %v9581_v35, %v6738_v7  ;;  %v4806_v51 = vsel %vm4690_vm7, %v8158_v54, %v6742_v20  ;;  %v6758_v8 = vunpack.i.h.bf16 %v8964_v19  ;;  %v9585_v7 = vld [vmem:[#allocation41_spill] sm:$0xff]  ;;  %v9589_v35 = vld [vmem:[#allocation46_spill] sm:$0xff] }
 0x206   : > { %v4837_v28 = vsel %vm4723_vm8, %v4805_v34, %v6747_v1  ;;  %v4740_v13 = vsel %vm4723_vm8, %v4707_v40, %v6748_v18  ;;  %v6753_v5 = vunpack.i.h.bf16 %v8943_v6  ;;  %v4708_v1 = vsel %vm4690_vm7, %v9583_v2, %v6743_v58  ;;  %v9586_v18 = vld [vmem:[#allocation36_spill] sm:$0xff]  ;;  %v9588_v58 = vld [vmem:[#allocation54_spill] sm:$0xff] }
 0x207   : > { %v8991_v12 = vpop.permute.xlu0 %6765  ;;  %v4869_v3 = vsel %vm4756_vm9, %v4837_v28, %v6757_v15  ;;  %v4773_v0 = vsel %vm4756_vm9, %v4740_v13, %v6758_v8  ;;  %v4838_v19 = vsel %vm4723_vm8, %v4806_v51, %v6752_v42  ;;  %v9587_v28 = vld [vmem:[#allocation42_spill] sm:$0xff]  ;;  %v9591_v51 = vld [vmem:[#allocation48_spill] sm:$0xff] }
 0x208   : > { %6285 = vmatmul.mubr.msk.f32.gmra.mrb[92].mxu0 %vm4690_vm7, %v9577_v56  ;;  %v6761_v25 = vpop.permute.xlu1 %6760  ;;  %5127 = vmatmul.mubr.f32.gmra.mrb[22].mxu1 %v4771_v21  ;;  %v6767_v41 = vunpack.i.l.bf16 %v8991_v12  ;;  %v6768_v36 = vunpack.i.h.bf16 %v8991_v12  ;;  %v4741_v21 = vsel %vm4723_vm8, %v4708_v1, %v6753_v5  ;;  %v9592_v1 = vld [vmem:[#allocation50_spill] sm:$0xff] }
 0x209   : > { %6287 = vmatprep.mubr.msk.f32.mxu0 %vm4690_vm7, %v9578_v26  ;;  %5131 = vmatprep.mubr.f32.mxu1 %v4868_v52  ;;  %v6762_v9 = vunpack.i.l.bf16 %v6761_v25  ;;  %v6763_v10 = vunpack.i.h.bf16 %v6761_v25 }
 0x20a   : > { %v4807_v25 = vsel %vm4690_vm7, %v8288_v50, %v6767_v41  ;;  %v4709_v38 = vsel %vm4690_vm7, %v8122_v61, %v6768_v36 }
 0x20b   : > { %v9011_v16 = vpop.permute.xlu0 %6780  ;;  %v4870_v6 = vsel %vm4756_vm9, %v4838_v19, %v6762_v9  ;;  %v4774_v52 = vsel %vm4756_vm9, %v4741_v21, %v6763_v10 }
 0x20c   : > { %6288 = vmatmul.mubr.msk.f32.gmra.mrb[94].mxu0 %vm4690_vm7, %v9580_v46  ;;  %v6771_v59 = vpop.permute.xlu1 %6770  ;;  %5132 = vmatmul.mubr.f32.gmra.mrb[24].mxu1 %v4772_v23  ;;  %v6782_v29 = vunpack.i.l.bf16 %v9011_v16  ;;  %v6783_v13 = vunpack.i.h.bf16 %v9011_v16 }
 0x20d   : > { %6290 = vmatprep.mubr.msk.f32.mxu0 %vm4690_vm7, %v9582_v33  ;;  %5136 = vmatprep.mubr.f32.mxu1 %v4869_v3  ;;  %v6772_v11 = vunpack.i.l.bf16 %v6771_v59  ;;  %v6773_v20 = vunpack.i.h.bf16 %v6771_v59  ;;  %v9590_v33 = vld [vmem:[#allocation34_spill] sm:$0xff] }
 0x20f   : > { %v6786_v49 = vpop.permute.xlu0 %6785  ;;  %v4808_v15 = vsel %vm4690_vm7, %v9588_v58, %v6772_v11  ;;  %v4710_v3 = vsel %vm4690_vm7, %v9590_v33, %v6773_v20  ;;  %v9596_v20 = vld [vmem:[#allocation55_spill] sm:$0xff] }
 0x210   : > { %6291 = vmatmul.mubr.msk.f32.gmra.mrb[96].mxu0 %vm4690_vm7, %v9584_v30  ;;  %v6776_v54 = vpop.permute.xlu1 %6775  ;;  %5137 = vmatmul.mubr.f32.gmra.mrb[26].mxu1 %v4773_v0  ;;  %v6787_v56 = vunpack.i.l.bf16 %v6786_v49  ;;  %v6788_v46 = vunpack.i.h.bf16 %v6786_v49  ;;  %v4840_v9 = vsel %vm4723_vm8, %v4808_v15, %v6782_v29  ;;  %v4743_v2 = vsel %vm4723_vm8, %v4710_v3, %v6783_v13  ;;  %v9593_v0 = vld [vmem:[#allocation51_spill] sm:$0xff] }
 0x211   : > { %v6778_v44 = vunpack.i.h.bf16 %v6776_v54  ;;  %v6777_v31 = vunpack.i.l.bf16 %v6776_v54  ;;  %6293 = vmatprep.mubr.msk.f32.mxu0 %vm4690_vm7, %v9585_v7  ;;  %5141 = vmatprep.mubr.f32.mxu1 %v4870_v6  ;;  %v9595_v6 = vld [vmem:[#allocation44_spill] sm:$0xff] }
 0x213   : > { %v6796_v12 = vpop.permute.xlu0 %6795  ;;  %v4839_v39 = vsel %vm4723_vm8, %v4807_v25, %v6777_v31  ;;  %v4742_v50 = vsel %vm4723_vm8, %v4709_v38, %v6778_v44  ;;  %v9594_v31 = vld [vmem:[#allocation57_spill] sm:$0xff] }
 0x214   : > { %6294 = vmatmul.mubr.msk.f32.gmra.mrb[98].mxu0 %vm4690_vm7, %v9586_v18  ;;  %v6791_v26 = vpop.permute.xlu1 %6790  ;;  %v4871_v34 = vsel %vm4756_vm9, %v4839_v39, %v6787_v56  ;;  %5142 = vmatmul.mubr.f32.gmra.mrb[28].mxu1 %v4774_v52  ;;  %v4775_v40 = vsel %vm4756_vm9, %v4742_v50, %v6788_v46  ;;  %v6798_v8 = vunpack.i.h.bf16 %v6796_v12  ;;  %v6797_v41 = vunpack.i.l.bf16 %v6796_v12 }
 0x215   : > { %v6792_v57 = vunpack.i.l.bf16 %v6791_v26  ;;  %6296 = vmatprep.mubr.msk.f32.mxu0 %vm4690_vm7, %v9587_v28  ;;  %5146 = vmatprep.mubr.f32.mxu1 %v4871_v34  ;;  %v6793_v23 = vunpack.i.h.bf16 %v6791_v26 }
 0x216   : > { %v4809_v7 = vsel %vm4690_vm7, %v9594_v31, %v6797_v41  ;;  %v4711_v56 = vsel %vm4690_vm7, %v9595_v6, %v6798_v8 }
 0x217   : > { %v6811_v59 = vpop.permute.xlu0 %6810  ;;  %v4872_v42 = vsel %vm4756_vm9, %v4840_v9, %v6792_v57  ;;  %v4776_v10 = vsel %vm4756_vm9, %v4743_v2, %v6793_v23  ;;  %v9597_v57 = vld [vmem:[#allocation39_spill] sm:$0xff] }
 0x218   : > { %6297 = vmatmul.mubr.msk.f32.gmra.mrb[100].mxu0 %vm4690_vm7, %v9589_v35  ;;  %v6801_v61 = vpop.permute.xlu1 %6800  ;;  %5147 = vmatmul.mubr.f32.gmra.mrb[30].mxu1 %v4775_v40  ;;  %v6812_v39 = vunpack.i.l.bf16 %v6811_v59  ;;  %v6813_v50 = vunpack.i.h.bf16 %v6811_v59 }
 0x219   : > { %6299 = vmatprep.mubr.msk.f32.mxu0 %vm4690_vm7, %v9591_v51  ;;  %5151 = vmatprep.mubr.f32.mxu1 %v4872_v42  ;;  %v6802_v5 = vunpack.i.l.bf16 %v6801_v61  ;;  %v6803_v16 = vunpack.i.h.bf16 %v6801_v61  ;;  %v9598_v42 = vld [vmem:[#allocation47_spill] sm:$0xff] }
 0x21b   : > { %v6816_v49 = vpop.permute.xlu0 %6815  ;;  %v4810_v21 = vsel %vm4690_vm7, %v8449_v37, %v6802_v5  ;;  %v4712_v28 = vsel %vm4690_vm7, %v9597_v57, %v6803_v16 }
 0x21c   : > { %6300 = vmatmul.mubr.msk.f32.gmra.mrb[102].mxu0 %vm4690_vm7, %v9592_v1  ;;  %v6806_v36 = vpop.permute.xlu1 %6805  ;;  %5152 = vmatmul.mubr.f32.gmra.mrb[32].mxu1 %v4776_v10  ;;  %v6818_v19 = vunpack.i.h.bf16 %v6816_v49  ;;  %v6817_v11 = vunpack.i.l.bf16 %v6816_v49  ;;  %v4842_v58 = vsel %vm4723_vm8, %v4810_v21, %v6812_v39  ;;  %v4745_v46 = vsel %vm4723_vm8, %v4712_v28, %v6813_v50  ;;  %v9599_v10 = vld [vmem:[#allocation45_spill] sm:$0xff] }
 0x21d   : > { %v6808_v30 = vunpack.i.h.bf16 %v6806_v36  ;;  %v6807_v54 = vunpack.i.l.bf16 %v6806_v36  ;;  %6302 = vmatprep.mubr.msk.f32.mxu0 %vm4690_vm7, %v9593_v0 }
 0x21f   : > { %v6826_v44 = vpop.permute.xlu0 %6825  ;;  %v4841_v12 = vsel %vm4723_vm8, %v4809_v7, %v6807_v54  ;;  %v4744_v25 = vsel %vm4723_vm8, %v4711_v56, %v6808_v30 }
 0x220   : > { %6303 = vmatmul.mubr.msk.f32.gmra.mrb[104].mxu0 %vm4690_vm7, %v9596_v20  ;;  %v6821_v18 = vpop.permute.xlu1 %6820  ;;  %v4873_v26 = vsel %vm4756_vm9, %v4841_v12, %v6817_v11  ;;  %v4777_v52 = vsel %vm4756_vm9, %v4744_v25, %v6818_v19  ;;  %v6828_v23 = vunpack.i.h.bf16 %v6826_v44  ;;  %v6827_v59 = vunpack.i.l.bf16 %v6826_v44  ;;  %v9600_v20 = vld [vmem:[#allocation52_spill] sm:$0xff] }
 0x221   : > { %v6823_v34 = vunpack.i.h.bf16 %v6821_v18  ;;  %v6822_v38 = vunpack.i.l.bf16 %v6821_v18  ;;  %5156 = vmatprep.mubr.f32.mxu1 %v4873_v26  ;;  %6305 = vmatprep.mubr.msk.f32.mxu0 %vm4690_vm7, %v8404_v24 }
 0x222   : > { %5157 = vmatmul.mubr.f32.gmra.mrb[34].mxu1 %v4777_v52  ;;  %v4811_v51 = vsel %vm4690_vm7, %v8467_v47, %v6827_v59  ;;  %v4713_v8 = vsel %vm4690_vm7, %v9598_v42, %v6828_v23 }
 0x223   : > { %v6841_v37 = vpop.permute.xlu0 %6840  ;;  %v4874_v15 = vsel %vm4756_vm9, %v4842_v58, %v6822_v38  ;;  %v4778_v24 = vsel %vm4756_vm9, %v4745_v46, %v6823_v34 }
 0x224   : > { %6306 = vmatmul.mubr.msk.f32.gmra.mrb[106].mxu0 %vm4690_vm7, %v8464_v4  ;;  %v6831_v29 = vpop.permute.xlu1 %6830  ;;  %5161 = vmatprep.mubr.f32.mxu1 %v4874_v15  ;;  %v6842_v5 = vunpack.i.l.bf16 %v6841_v37  ;;  %v6843_v30 = vunpack.i.h.bf16 %v6841_v37  ;;  %v9602_v37 = vld [vmem:[#allocation53_spill] sm:$0xff]  ;;  %v9603_v15 = vld [vmem:[#allocation27_spill] sm:$0xff] }
 0x225   : > { %6308 = vmatprep.mubr.msk.f32.mxu0 %vm4690_vm7, %v8493_v43  ;;  %v6832_v61 = vunpack.i.l.bf16 %v6831_v29  ;;  %v6833_v9 = vunpack.i.h.bf16 %v6831_v29  ;;  %v5476_v29 = vld [vmem:[%s9369_s5 + $0x10] sm:$0xff] }
 0x226   : > { %5162 = vmatmul.mubr.f32.gmra.mrb[36].mxu1 %v4778_v24 }
 0x227   : > { %v6846_v35 = vpop.permute.xlu0 %6845  ;;  %v4812_v49 = vsel %vm4690_vm7, %v8498_v14, %v6832_v61  ;;  %v4714_v16 = vsel %vm4690_vm7, %v9599_v10, %v6833_v9  ;;  %v9606_v10 = vld [vmem:[#allocation6_spill] sm:$0xff] }
 0x228   : > { %6309 = vmatmul.mubr.msk.f32.gmra.mrb[108].mxu0 %vm4690_vm7, %v8522_v17  ;;  %v6836_v40 = vpop.permute.xlu1 %6835  ;;  %v6848_v3 = vunpack.i.h.bf16 %v6846_v35  ;;  %v6847_v13 = vunpack.i.l.bf16 %v6846_v35  ;;  %v4844_v54 = vsel %vm4723_vm8, %v4812_v49, %v6842_v5  ;;  %v4747_v19 = vsel %vm4723_vm8, %v4714_v16, %v6843_v30  ;;  %v9604_v5 = vld [vmem:[#allocation13_spill] sm:$0xff] }
 0x229   : > { %v6838_v4 = vunpack.i.h.bf16 %v6836_v40  ;;  %v6837_v33 = vunpack.i.l.bf16 %v6836_v40  ;;  %6311 = vmatprep.mubr.msk.f32.mxu0 %vm4690_vm7, %v8568_v53 }
 0x22b   : > { %v6856_v43 = vpop.permute.xlu0 %6855  ;;  %v4843_v41 = vsel %vm4723_vm8, %v4811_v51, %v6837_v33  ;;  %v4746_v17 = vsel %vm4723_vm8, %v4713_v8, %v6838_v4 }
 0x22c   : > { %6312 = vmatmul.mubr.msk.f32.gmra.mrb[110].mxu0 %vm4690_vm7, %v8586_v63  ;;  %v6851_v53 = vpop.permute.xlu1 %6850  ;;  %v4875_v2 = vsel %vm4756_vm9, %v4843_v41, %v6847_v13  ;;  %v4779_v1 = vsel %vm4756_vm9, %v4746_v17, %v6848_v3  ;;  %v6858_v11 = vunpack.i.h.bf16 %v6856_v43  ;;  %v6857_v44 = vunpack.i.l.bf16 %v6856_v43 }
 0x22d   : > { %v6853_v47 = vunpack.i.h.bf16 %v6851_v53  ;;  %v6852_v36 = vunpack.i.l.bf16 %v6851_v53  ;;  %5166 = vmatprep.mubr.f32.mxu1 %v4875_v2  ;;  %6314 = vmatprep.mubr.msk.f32.mxu0 %vm4690_vm7, %v8619_v27  ;;  %v9605_v2 = vld [vmem:[#allocation59_spill] sm:$0xff] }
 0x22e   : > { %5167 = vmatmul.mubr.f32.gmra.mrb[38].mxu1 %v4779_v1  ;;  %v4813_v39 = vsel %vm4690_vm7, %v8555_v62, %v6857_v44  ;;  %v4715_v18 = vsel %vm4690_vm7, %v9600_v20, %v6858_v11 }
 0x22f   : > { %v6871_v14 = vpop.permute.xlu0 %6870  ;;  %v4876_v63 = vsel %vm4756_vm9, %v4844_v54, %v6852_v36  ;;  %v4780_v27 = vsel %vm4756_vm9, %v4747_v19, %v6853_v47 }
 0x230   : > { %v6861_v0 = vpop.permute.xlu1 %6860  ;;  %5171 = vmatprep.mubr.f32.mxu1 %v4876_v63  ;;  %6315 = vmatmul.mubr.msk.f32.gmra.mrb[112].mxu0 %vm4690_vm7, %v8636_v22  ;;  %v6872_v38 = vunpack.i.l.bf16 %v6871_v14  ;;  %v6873_v46 = vunpack.i.h.bf16 %v6871_v14 }
 0x231   : > { %6317 = vmatprep.mubr.msk.f32.mxu0 %vm4690_vm7, %v8751_v48  ;;  %v6862_v7 = vunpack.i.l.bf16 %v6861_v0  ;;  %v6863_v56 = vunpack.i.h.bf16 %v6861_v0 }
 0x232   : > { %5172 = vmatmul.mubr.f32.gmra.mrb[40].mxu1 %v4780_v27  ;;  %v9607_v27 = vld [vmem:[#allocation49_spill] sm:$0xff] }
 0x233   : > { %v6876_v31 = vpop.permute.xlu0 %6875  ;;  %v4716_v58 = vsel %vm4690_vm7, %v9602_v37, %v6863_v56 }
 0x234   : > { %v6866_v6 = vpop.permute.xlu1 %6865  ;;  %6318 = vmatmul.mubr.msk.f32.gmra.mrb[114].mxu0 %vm4690_vm7, %v8783_v45  ;;  %v6878_v22 = vunpack.i.h.bf16 %v6876_v31  ;;  %v6877_v21 = vunpack.i.l.bf16 %v6876_v31  ;;  %v9601_v45 = vld [vmem:[#allocation62_spill] sm:$0xff]  ;;  %v4749_v40 = vsel %vm4723_vm8, %v4716_v58, %v6873_v46 }
 0x235   : > { %v6868_v12 = vunpack.i.h.bf16 %v6866_v6  ;;  %v6867_v25 = vunpack.i.l.bf16 %v6866_v6  ;;  %6320 = vmatprep.mubr.msk.f32.mxu0 %vm4690_vm7, %v8689_v55  ;;  %v4814_v34 = vsel %vm4690_vm7, %v9601_v45, %v6862_v7 }
 0x236   : > { %v4846_v23 = vsel %vm4723_vm8, %v4814_v34, %v6872_v38  ;;  %v9608_v34 = vld [vmem:[#allocation5_spill] sm:$0xff] }
 0x237   : > { %v6886_v48 = vpop.permute.xlu0 %6885  ;;  %v4845_v26 = vsel %vm4723_vm8, %v4813_v39, %v6867_v25  ;;  %v4748_v52 = vsel %vm4723_vm8, %v4715_v18, %v6868_v12 }
 0x238   : > { %v6881_v57 = vpop.permute.xlu1 %6880  ;;  %6321 = vmatmul.mubr.msk.f32.gmra.mrb[116].mxu0 %vm4690_vm7, %v8743_v60  ;;  %v4877_v55 = vsel %vm4756_vm9, %v4845_v26, %v6877_v21  ;;  %v4781_v28 = vsel %vm4756_vm9, %v4748_v52, %v6878_v22  ;;  %v5477_v60 = vld [vmem:[%s9369_s5 + $0x18] sm:$0xff]  ;;  %v6888_v4 = vunpack.i.h.bf16 %v6886_v48  ;;  %v6887_v33 = vunpack.i.l.bf16 %v6886_v48 }
 0x239   : > { %v6883_v62 = vunpack.i.h.bf16 %v6881_v57  ;;  %v6882_v50 = vunpack.i.l.bf16 %v6881_v57  ;;  %5176 = vmatprep.mubr.f32.mxu1 %v4877_v55  ;;  %6323 = vmatprep.mubr.msk.f32.mxu0 %vm4690_vm7, %v9603_v15  ;;  %v6442_v59 = vpack.c.bf16 %v5477_v60, %v5476_v29  ;;  %v9609_v57 = vld [vmem:[#allocation60_spill] sm:$0xff] }
 0x23a   : > { %5177 = vmatmul.mubr.f32.gmra.mrb[42].mxu1 %v4781_v28  ;;  %v4815_v53 = vsel %vm4690_vm7, %v9604_v5, %v6887_v33  ;;  %v4717_v1 = vsel %vm4690_vm7, %v9605_v2, %v6888_v4 }
 0x23b   : > { %v6901_v24 = vpop.permute.xlu0 %6900  ;;  %v4878_v35 = vsel %vm4756_vm9, %v4846_v23, %v6882_v50  ;;  %v4782_v9 = vsel %vm4756_vm9, %v4749_v40, %v6883_v62  ;;  %6443 = vmatprep.subr.bf16.mxu1 %v6442_v59  ;;  %v9611_v40 = vld [vmem:[#allocation15_spill] sm:$0xff] }
 0x23c   : > { %v6891_v61 = vpop.permute.xlu1 %6890  ;;  %5181 = vmatprep.mubr.f32.mxu1 %v4878_v35  ;;  %6324 = vmatmul.mubr.msk.f32.gmra.mrb[118].mxu0 %vm4690_vm7, %v9603_v15  ;;  %v6902_v30 = vunpack.i.l.bf16 %v6901_v24  ;;  %v6903_v44 = vunpack.i.h.bf16 %v6901_v24  ;;  %v9610_v35 = vld [vmem:[#allocation56_spill] sm:$0xff] }
 0x23d   : > { %v6892_v13 = vunpack.i.l.bf16 %v6891_v61  ;;  %6445 = vmatpush3.bf16.msra.mxu1 %v6442_v59  ;;  %v6893_v51 = vunpack.i.h.bf16 %v6891_v61 }
 0x23e   : > { %5182 = vmatmul.mubr.f32.gmra.mrb[44].mxu1 %v4782_v9 }
 0x23f   : > { %v6906_v3 = vpop.permute.xlu0 %6905  ;;  %v4816_v16 = vsel %vm4690_vm7, %v9606_v10, %v6892_v13  ;;  %v4718_v11 = vsel %vm4690_vm7, %v9607_v27, %v6893_v51 }
 0x240   : > { %v6896_v43 = vpop.permute.xlu1 %6895  ;;  %v6908_v41 = vunpack.i.h.bf16 %v6906_v3  ;;  %v6907_v17 = vunpack.i.l.bf16 %v6906_v3  ;;  %v4848_v7 = vsel %vm4723_vm8, %v4816_v16, %v6902_v30  ;;  %v4751_v12 = vsel %vm4723_vm8, %v4718_v11, %v6903_v44 }
 0x241   : > { %v6898_v42 = vunpack.i.h.bf16 %v6896_v43  ;;  %v6897_v8 = vunpack.i.l.bf16 %v6896_v43 }
 0x243   : > { %v6916_v49 = vpop.permute.xlu0 %6915  ;;  %v4847_v47 = vsel %vm4723_vm8, %v4815_v53, %v6897_v8  ;;  %v4750_v36 = vsel %vm4723_vm8, %v4717_v1, %v6898_v42 }
 0x244   : > { %v6911_v14 = vpop.permute.xlu1 %6910  ;;  %v4879_v54 = vsel %vm4756_vm9, %v4847_v47, %v6907_v17  ;;  %v4783_v63 = vsel %vm4756_vm9, %v4750_v36, %v6908_v41  ;;  %v6918_v22 = vunpack.i.h.bf16 %v6916_v49  ;;  %v6917_v21 = vunpack.i.l.bf16 %v6916_v49 }
 0x245   : > { %v6913_v0 = vunpack.i.h.bf16 %v6911_v14  ;;  %v6912_v19 = vunpack.i.l.bf16 %v6911_v14  ;;  %5186 = vmatprep.mubr.f32.mxu1 %v4879_v54  ;;  %v9613_v14 = vld [vmem:[#allocation2_spill] sm:$0xff] }
 0x246   : > { %5187 = vmatmul.mubr.f32.gmra.mrb[46].mxu1 %v4783_v63  ;;  %v4817_v38 = vsel %vm4690_vm7, %v9608_v34, %v6917_v21  ;;  %v4719_v55 = vsel %vm4690_vm7, %v9609_v57, %v6918_v22  ;;  %v9614_v63 = vld [vmem:[#allocation58_spill] sm:$0xff] }
 0x247   : > { %v6936_v31 = vpop.permute.xlu0 %6935  ;;  %v4880_v6 = vsel %vm4756_vm9, %v4848_v7, %v6912_v19  ;;  %v4784_v25 = vsel %vm4756_vm9, %v4751_v12, %v6913_v0 }
 0x248   : > { %v6921_v56 = vpop.permute.xlu1 %6920  ;;  %5191 = vmatprep.mubr.f32.mxu1 %v4880_v6  ;;  %v6938_v4 = vunpack.i.h.bf16 %v6936_v31  ;;  %v6937_v33 = vunpack.i.l.bf16 %v6936_v31 }
 0x249   : > { %v6923_v28 = vunpack.i.h.bf16 %v6921_v56  ;;  %v6922_v37 = vunpack.i.l.bf16 %v6921_v56 }
 0x24a   : > { %5192 = vmatmul.mubr.f32.gmra.mrb[48].mxu1 %v4784_v25 }
 0x24b   : > { %v6941_v48 = vpop.permute.xlu0 %6940  ;;  %v4818_v59 = vsel %vm4690_vm7, %v8765_v32, %v6922_v37  ;;  %v4720_v61 = vsel %vm4690_vm7, %v9610_v35, %v6923_v28  ;;  %v9612_v32 = vld [vmem:[#allocation61_spill] sm:$0xff] }
 0x24c   : > { %v6926_v39 = vpop.permute.xlu1 %6925  ;;  %v6943_v26 = vunpack.i.h.bf16 %v6941_v48  ;;  %v6942_v52 = vunpack.i.l.bf16 %v6941_v48  ;;  %v4850_v8 = vsel %vm4723_vm8, %v4818_v59, %v6937_v33  ;;  %v4753_v41 = vsel %vm4723_vm8, %v4720_v61, %v6938_v4 }
 0x24d   : > { %v6928_v20 = vunpack.i.h.bf16 %v6926_v39  ;;  %v6927_v18 = vunpack.i.l.bf16 %v6926_v39 }
 0x24f   : > { %v6951_v45 = vpop.permute.xlu0 %6950  ;;  %v4849_v62 = vsel %vm4723_vm8, %v4817_v38, %v6927_v18  ;;  %v4752_v50 = vsel %vm4723_vm8, %v4719_v55, %v6928_v20 }
 0x250   : > { %v6952_v58 = vunpack.i.l.bf16 %v6951_v45  ;;  %v6931_v15 = vpop.permute.xlu1 %6930  ;;  %v4881_v29 = vsel %vm4756_vm9, %v4849_v62, %v6942_v52  ;;  %v4785_v60 = vsel %vm4756_vm9, %v4752_v50, %v6943_v26  ;;  %v6953_v46 = vunpack.i.h.bf16 %v6951_v45 }
 0x251   : > { %5196 = vmatprep.mubr.f32.mxu1 %v4881_v29  ;;  %v6932_v24 = vunpack.i.l.bf16 %v6931_v15  ;;  %v6933_v13 = vunpack.i.h.bf16 %v6931_v15 }
 0x252   : > { %5197 = vmatmul.mubr.f32.gmra.mrb[50].mxu1 %v4785_v60  ;;  %v4819_v9 = vsel %vm4690_vm7, %v9611_v40, %v6952_v58  ;;  %v4721_v49 = vsel %vm4690_vm7, %v9612_v32, %v6953_v46 }
 0x253   : > { %v6956_v23 = vpop.permute.xlu0 %6955  ;;  %v4851_v17 = vsel %vm4723_vm8, %v4819_v9, %v6932_v24  ;;  %v4754_v30 = vsel %vm4723_vm8, %v4721_v49, %v6933_v13  ;;  %v9215_v9 = vld [vmem:[%s9368_s4] ss:$0 sm:$0xff] }
 0x254   : > { %v6946_v3 = vpop.permute.xlu1 %6945  ;;  %v6957_v43 = vunpack.i.l.bf16 %v6956_v23  ;;  %v6958_v2 = vunpack.i.h.bf16 %v6956_v23 }
 0x255   : > { %v6948_v51 = vunpack.i.h.bf16 %v6946_v3  ;;  %v6947_v42 = vunpack.i.l.bf16 %v6946_v3 }
 0x256   : > { %v4883_v16 = vsel %vm4756_vm9, %v4851_v17, %v6957_v43  ;;  %v4787_v44 = vsel %vm4756_vm9, %v4754_v30, %v6958_v2 }
 0x257   : > { %v4882_v5 = vsel %vm4756_vm9, %v4850_v8, %v6947_v42  ;;  %v4786_v53 = vsel %vm4756_vm9, %v4753_v41, %v6948_v51  ;;  %v6966_v47 = vpop.permute.xlu0 %6965 }
 0x258   : > { %v6961_v1 = vpop.permute.xlu1 %6960  ;;  %5201 = vmatprep.mubr.f32.mxu1 %v4882_v5  ;;  %v6968_v19 = vunpack.i.h.bf16 %v6966_v47  ;;  %v6967_v27 = vunpack.i.l.bf16 %v6966_v47 }
 0x259   : > { %v6963_v36 = vunpack.i.h.bf16 %v6961_v1  ;;  %v6962_v10 = vunpack.i.l.bf16 %v6961_v1  ;;  %5202 = vmatmul.mubr.f32.gmra.mrb[52].mxu1 %v4786_v53 }
 0x25a   : > { %5206 = vmatprep.mubr.f32.mxu1 %v4883_v16 }
 0x25b   : > { %v4820_v54 = vsel %vm4690_vm7, %v9613_v14, %v6962_v10  ;;  %v4722_v0 = vsel %vm4690_vm7, %v9614_v63, %v6963_v36 }
 0x25c   : > { %v6971_v11 = vpop.permute.xlu1 %6970  ;;  %v4852_v6 = vsel %vm4723_vm8, %v4820_v54, %v6967_v27  ;;  %v4755_v56 = vsel %vm4723_vm8, %v4722_v0, %v6968_v19 }
 0x25d   : > { %v6973_v31 = vunpack.i.h.bf16 %v6971_v11  ;;  %v6972_v7 = vunpack.i.l.bf16 %v6971_v11  ;;  %5207 = vmatmul.mubr.f32.gmra.mrb[54].mxu1 %v4787_v44 }
 0x25f   : > { %v4884_v12 = vsel %vm4756_vm9, %v4852_v6, %v6972_v7  ;;  %v4788_v25 = vsel %vm4756_vm9, %v4755_v56, %v6973_v31 }
 0x260   : > { %5211 = vmatprep.mubr.f32.mxu1 %v4884_v12 }
 0x261   : > { %5212 = vmatmul.mubr.f32.gmra.mrb[56].mxu1 %v4788_v25 }
 0x271   : > { %v5073_v22 = vpop.f32.mrb[0].mxu1 }
 0x272   : > { %v5075_v21 = vpop.f32.mrb[1].mxu1  ;;  %v5074_v41 = vadd.f32 %v9215_v9, %v5073_v22 }
 0x27f   : > { %v5078_v48 = vpop.f32.mrb[2].mxu1 }
 0x280   : > { %v5080_v39 = vpop.f32.mrb[3].mxu1  ;;  %v5079_v16 = vadd.f32 %v9215_v9, %v5078_v48 }
 0x284   : > { %v5083_v20 = vpop.f32.mrb[4].mxu1 }
 0x285   : > { %v5085_v18 = vpop.f32.mrb[5].mxu1  ;;  %v5084_v10 = vadd.f32 %v9215_v9, %v5083_v20 }
 0x28f   : > { %v5088_v26 = vpop.f32.mrb[6].mxu1 }
 0x290   : > { %v5090_v52 = vpop.f32.mrb[7].mxu1  ;;  %v5089_v31 = vadd.f32 %v9215_v9, %v5088_v26 }
 0x293   : > { %v5093_v45 = vpop.f32.mrb[8].mxu1 }
 0x294   : > { %v5095_v34 = vpop.f32.mrb[9].mxu1  ;;  %v5094_v44 = vadd.f32 %v9215_v9, %v5093_v45 }
 0x29a   : > { %v9208_v38 = vpop.f32.mrb[10].mxu1 }
 0x29b   : > { %v5100_v57 = vpop.f32.mrb[11].mxu1  ;;  %v5099_v20 = vadd.f32 %v9215_v9, %v9208_v38 }
 0x29d   : > { %v2240_v55 = vpop.f32.mrb[78].mxu0 }
 0x29e   : > { %v6266_v28 = vpop.f32.mrb[79].mxu0  ;;  %v5103_v62 = vpop.f32.mrb[12].mxu1 }
 0x29f   : > { %v5105_v50 = vpop.f32.mrb[13].mxu1  ;;  %v5104_v39 = vadd.f32 %v9215_v9, %v5103_v62 }
 0x2a1   : > { %v2245_v37 = vpop.f32.mrb[80].mxu0 }
 0x2a2   : > { %v6269_v58 = vpop.f32.mrb[81].mxu0 }
 0x2b3   : > { %v9210_v15 = vpop.f32.mrb[14].mxu1 }
 0x2b4   : > { %v5110_v29 = vpop.f32.mrb[15].mxu1  ;;  %v5109_v62 = vadd.f32 %v9215_v9, %v9210_v15 }
 0x2b7   : > { %v5058_v60 = vpop.f32.mrb[82].mxu0  ;;  %v5113_v24 = vpop.f32.mrb[16].mxu1 }
 0x2b8   : > { %v5060_v46 = vpop.f32.mrb[83].mxu0  ;;  %v5115_v23 = vpop.f32.mrb[17].mxu1  ;;  %v5059_v33 = vadd.f32 %v9215_v9, %v5058_v60  ;;  %v5114_v50 = vadd.f32 %v9215_v9, %v5113_v24 }
 0x2cb   : > { %v5063_v59 = vpop.f32.mrb[84].mxu0 }
 0x2cc   : > { %v5065_v35 = vpop.f32.mrb[85].mxu0  ;;  %v5064_v4 = vadd.f32 %v9215_v9, %v5063_v59 }
 0x2cf   : > { %v5068_v61 = vpop.f32.mrb[86].mxu0 }
 0x2d0   : > { %v5070_v40 = vpop.f32.mrb[87].mxu0  ;;  %v5069_v17 = vadd.f32 %v9215_v9, %v5068_v61 }
 0x2d3   : > { %v6280_v3 = vpop.f32.mrb[88].mxu0  ;;  %v9219_v43 = vpop.f32.mrb[18].mxu1 }
 0x2d4   : > { %v5289_v13 = vadd.f32 %v6280_v3, %v5064_v4  ;;  %v5283_v51 = vpop.f32.mrb[89].mxu0  ;;  %v5120_v8 = vpop.f32.mrb[19].mxu1  ;;  %v5119_v24 = vadd.f32 %v9215_v9, %v9219_v43 }
 0x2d5   : > { %v5284_v42 = vadd.f32 %v5283_v51, %v5059_v33 }
 0x2d6   : > { %v5443_v5 = vmax.f32 %v5289_v13, 0.0 }
 0x2d7   : > { %v5442_v32 = vmax.f32 %v5284_v42, 0.0  ;;  %v6283_v49 = vpop.f32.mrb[90].mxu0  ;;  %v5123_v2 = vpop.f32.mrb[20].mxu1 }
 0x2d8   : > { %v5299_v53 = vadd.f32 %v6283_v49, %v5074_v41  ;;  %v5293_v1 = vpop.f32.mrb[91].mxu0  ;;  %v5125_v36 = vpop.f32.mrb[21].mxu1  ;;  %v5124_v35 = vadd.f32 %v9215_v9, %v5123_v2 }
 0x2d9   : > { %v5294_v47 = vadd.f32 %v5293_v1, %v5069_v17  ;;  %6334 = vmatprep.mubr.msk.f32.mxu1 %vm4690_vm7, %v5442_v32 }
 0x2da   : > { %6335 = vmatmul.mubr.msk.f32.vlgmr.msra.gmra.mrb[58].mxu1 %vm4690_vm7, %v5443_v5  ;;  %v5445_v54 = vmax.f32 %v5299_v53, 0.0 }
 0x2db   : > { %v5444_v30 = vmax.f32 %v5294_v47, 0.0  ;;  %v6286_v14 = vpop.f32.mrb[92].mxu0  ;;  %v5128_v0 = vpop.f32.mrb[22].mxu1 }
 0x2dc   : > { %v5309_v63 = vadd.f32 %v6286_v14, %v5084_v10  ;;  %v5303_v19 = vpop.f32.mrb[93].mxu0  ;;  %v5130_v11 = vpop.f32.mrb[23].mxu1  ;;  %v5129_v8 = vadd.f32 %v9215_v9, %v5128_v0 }
 0x2dd   : > { %v5304_v27 = vadd.f32 %v5303_v19, %v5079_v16  ;;  %6337 = vmatprep.mubr.msk.f32.mxu1 %vm4690_vm7, %v5444_v30 }
 0x2de   : > { %6338 = vmatmul.mubr.msk.f32.gmra.mrb[60].mxu1 %vm4690_vm7, %v5445_v54  ;;  %v5447_v56 = vmax.f32 %v5309_v63, 0.0 }
 0x2df   : > { %v5446_v7 = vmax.f32 %v5304_v27, 0.0  ;;  %v6289_v6 = vpop.f32.mrb[94].mxu0  ;;  %v5133_v25 = vpop.f32.mrb[24].mxu1 }
 0x2e0   : > { %v5319_v12 = vadd.f32 %v6289_v6, %v5094_v44  ;;  %v5313_v22 = vpop.f32.mrb[95].mxu0  ;;  %v5135_v48 = vpop.f32.mrb[25].mxu1  ;;  %v5134_v42 = vadd.f32 %v9215_v9, %v5133_v25 }
 0x2e1   : > { %v5314_v21 = vadd.f32 %v5313_v22, %v5089_v31  ;;  %6340 = vmatprep.mubr.msk.f32.mxu1 %vm4690_vm7, %v5446_v7 }
 0x2e2   : > { %6341 = vmatmul.mubr.msk.f32.gmra.mrb[62].mxu1 %vm4690_vm7, %v5447_v56  ;;  %v5449_v26 = vmax.f32 %v5319_v12, 0.0 }
 0x2e3   : > { %v5448_v18 = vmax.f32 %v5314_v21, 0.0  ;;  %v6292_v52 = vpop.f32.mrb[96].mxu0  ;;  %v5138_v34 = vpop.f32.mrb[26].mxu1 }
 0x2e4   : > { %v5329_v45 = vadd.f32 %v6292_v52, %v5104_v39  ;;  %v5323_v57 = vpop.f32.mrb[97].mxu0  ;;  %v5140_v28 = vpop.f32.mrb[27].mxu1  ;;  %v5139_v47 = vadd.f32 %v9215_v9, %v5138_v34 }
 0x2e5   : > { %v5324_v55 = vadd.f32 %v5323_v57, %v5099_v20  ;;  %6343 = vmatprep.mubr.msk.f32.mxu1 %vm4690_vm7, %v5448_v18 }
 0x2e6   : > { %6344 = vmatmul.mubr.msk.f32.gmra.mrb[64].mxu1 %vm4690_vm7, %v5449_v26  ;;  %v5451_v38 = vmax.f32 %v5329_v45, 0.0 }
 0x2e7   : > { %v5450_v37 = vmax.f32 %v5324_v55, 0.0  ;;  %v6295_v58 = vpop.f32.mrb[98].mxu0  ;;  %v5143_v60 = vpop.f32.mrb[28].mxu1 }
 0x2e8   : > { %v5339_v29 = vadd.f32 %v6295_v58, %v5114_v50  ;;  %v5333_v46 = vpop.f32.mrb[99].mxu0  ;;  %v5145_v59 = vpop.f32.mrb[29].mxu1  ;;  %v5144_v1 = vadd.f32 %v9215_v9, %v5143_v60 }
 0x2e9   : > { %v5334_v23 = vadd.f32 %v5333_v46, %v5109_v62  ;;  %6346 = vmatprep.mubr.msk.f32.mxu1 %vm4690_vm7, %v5450_v37 }
 0x2ea   : > { %6347 = vmatmul.mubr.msk.f32.gmra.mrb[66].mxu1 %vm4690_vm7, %v5451_v38  ;;  %v5453_v15 = vmax.f32 %v5339_v29, 0.0 }
 0x2eb   : > { %v5452_v61 = vmax.f32 %v5334_v23, 0.0  ;;  %v6298_v40 = vpop.f32.mrb[100].mxu0  ;;  %v5148_v33 = vpop.f32.mrb[30].mxu1 }
 0x2ec   : > { %v5349_v4 = vadd.f32 %v6298_v40, %v5124_v35  ;;  %v5343_v3 = vpop.f32.mrb[101].mxu0  ;;  %v5150_v51 = vpop.f32.mrb[31].mxu1  ;;  %v5149_v27 = vadd.f32 %v9215_v9, %v5148_v33 }
 0x2ed   : > { %v5344_v13 = vadd.f32 %v5343_v3, %v5119_v24  ;;  %6349 = vmatprep.mubr.msk.f32.mxu1 %vm4690_vm7, %v5452_v61 }
 0x2ee   : > { %6350 = vmatmul.mubr.msk.f32.gmra.mrb[68].mxu1 %vm4690_vm7, %v5453_v15  ;;  %v5455_v32 = vmax.f32 %v5349_v4, 0.0 }
 0x2ef   : > { %v5454_v41 = vmax.f32 %v5344_v13, 0.0  ;;  %v6301_v17 = vpop.f32.mrb[102].mxu0  ;;  %v5153_v49 = vpop.f32.mrb[32].mxu1 }
 0x2f0   : > { %v5359_v43 = vadd.f32 %v6301_v17, %v5134_v42  ;;  %v5353_v5 = vpop.f32.mrb[103].mxu0  ;;  %v5155_v2 = vpop.f32.mrb[33].mxu1  ;;  %v5154_v0 = vadd.f32 %v9215_v9, %v5153_v49 }
 0x2f1   : > { %v5354_v53 = vadd.f32 %v5353_v5, %v5129_v8  ;;  %6352 = vmatprep.mubr.msk.f32.mxu1 %vm4690_vm7, %v5454_v41 }
 0x2f2   : > { %6353 = vmatmul.mubr.msk.f32.gmra.mrb[70].mxu1 %vm4690_vm7, %v5455_v32  ;;  %v5457_v16 = vmax.f32 %v5359_v43, 0.0 }
 0x2f3   : > { %v5456_v36 = vmax.f32 %v5354_v53, 0.0  ;;  %v6304_v10 = vpop.f32.mrb[104].mxu0 }
 0x2f4   : > { %v5369_v30 = vadd.f32 %v6304_v10, %v5144_v1  ;;  %v5363_v14 = vpop.f32.mrb[105].mxu0 }
 0x2f5   : > { %v5364_v54 = vadd.f32 %v5363_v14, %v5139_v47  ;;  %v5158_v63 = vpop.f32.mrb[34].mxu1  ;;  %6355 = vmatprep.mubr.msk.f32.mxu1 %vm4690_vm7, %v5456_v36 }
 0x2f6   : > { %v5160_v19 = vpop.f32.mrb[35].mxu1  ;;  %6356 = vmatmul.mubr.msk.f32.gmra.mrb[72].mxu1 %vm4690_vm7, %v5457_v16  ;;  %v5459_v31 = vmax.f32 %v5369_v30, 0.0  ;;  %v5159_v21 = vadd.f32 %v9215_v9, %v5158_v63 }
 0x2f7   : > { %v5458_v11 = vmax.f32 %v5364_v54, 0.0  ;;  %v6307_v44 = vpop.f32.mrb[106].mxu0 }
 0x2f8   : > { %v5379_v7 = vadd.f32 %v6307_v44, %v5154_v0  ;;  %v5373_v6 = vpop.f32.mrb[107].mxu0 }
 0x2f9   : > { %v5374_v56 = vadd.f32 %v5373_v6, %v5149_v27  ;;  %v5163_v12 = vpop.f32.mrb[36].mxu1  ;;  %6358 = vmatprep.mubr.msk.f32.mxu1 %vm4690_vm7, %v5458_v11 }
 0x2fa   : > { %v5164_v25 = vadd.f32 %v9215_v9, %v5163_v12  ;;  %v5165_v22 = vpop.f32.mrb[37].mxu1  ;;  %6359 = vmatmul.mubr.msk.f32.gmra.mrb[74].mxu1 %vm4690_vm7, %v5459_v31  ;;  %v5461_v20 = vmax.f32 %v5379_v7, 0.0 }
 0x2fb   : > { %v5460_v48 = vmax.f32 %v5374_v56, 0.0  ;;  %v6310_v39 = vpop.f32.mrb[108].mxu0 }
 0x2fc   : > { %v5389_v18 = vadd.f32 %v6310_v39, %v5164_v25  ;;  %v5383_v52 = vpop.f32.mrb[109].mxu0 }
 0x2fd   : > { %v5384_v26 = vadd.f32 %v5383_v52, %v5159_v21  ;;  %6361 = vmatprep.mubr.msk.f32.mxu1 %vm4690_vm7, %v5460_v48 }
 0x2fe   : > { %6362 = vmatmul.mubr.msk.f32.gmra.mrb[76].mxu1 %vm4690_vm7, %v5461_v20  ;;  %v5463_v57 = vmax.f32 %v5389_v18, 0.0 }
 0x2ff   : > { %v5462_v45 = vmax.f32 %v5384_v26, 0.0  ;;  %v6313_v34 = vpop.f32.mrb[110].mxu0  ;;  %v9290_v26 = vld [vmem:[%s9370_s6] ss:$0 sm:$0xff] }
 0x300   : > { %v5393_v55 = vpop.f32.mrb[111].mxu0 }
 0x301   : > { %v5168_v28 = vpop.f32.mrb[38].mxu1  ;;  %6364 = vmatprep.mubr.msk.f32.mxu1 %vm4690_vm7, %v5462_v45 }
 0x302   : > { %v5169_v50 = vadd.f32 %v9215_v9, %v5168_v28  ;;  %v5170_v62 = vpop.f32.mrb[39].mxu1  ;;  %6365 = vmatmul.mubr.msk.f32.gmra.mrb[78].mxu1 %vm4690_vm7, %v5463_v57 }
 0x303   : > { %v6316_v37 = vpop.f32.mrb[112].mxu0 }
 0x304   : > { %v5394_v58 = vadd.f32 %v5393_v55, %v5169_v50  ;;  %v5403_v38 = vpop.f32.mrb[113].mxu0 }
 0x305   : > { %v5173_v29 = vpop.f32.mrb[40].mxu1 }
 0x306   : > { %v5464_v60 = vmax.f32 %v5394_v58, 0.0  ;;  %v5174_v46 = vadd.f32 %v9215_v9, %v5173_v29  ;;  %v5175_v23 = vpop.f32.mrb[41].mxu1 }
 0x307   : > { %v6319_v59 = vpop.f32.mrb[114].mxu0 }
 0x308   : > { %v5399_v35 = vadd.f32 %v6313_v34, %v5174_v46  ;;  %v5413_v24 = vpop.f32.mrb[115].mxu0  ;;  %6367 = vmatprep.mubr.msk.f32.mxu1 %vm4690_vm7, %v5464_v60 }
 0x30a   : > { %v5465_v61 = vmax.f32 %v5399_v35, 0.0 }
 0x30b   : > { %v6322_v40 = vpop.f32.mrb[116].mxu0 }
 0x30c   : > { %v5423_v15 = vpop.f32.mrb[117].mxu0  ;;  %6368 = vmatmul.mubr.msk.f32.gmra.mrb[80].mxu1 %vm4690_vm7, %v5465_v61 }
 0x30d   : > { %v5178_v4 = vpop.f32.mrb[42].mxu1 }
 0x30e   : > { %v5179_v33 = vadd.f32 %v9215_v9, %v5178_v4  ;;  %v5180_v3 = vpop.f32.mrb[43].mxu1 }
 0x30f   : > { %v6325_v13 = vpop.f32.mrb[118].mxu0 }
 0x310   : > { %v5404_v51 = vadd.f32 %v5403_v38, %v5179_v33  ;;  %v5433_v42 = vpop.f32.mrb[119].mxu0 }
 0x311   : > { %v5183_v8 = vpop.f32.mrb[44].mxu1 }
 0x312   : > { %v5466_v41 = vmax.f32 %v5404_v51, 0.0  ;;  %v5184_v17 = vadd.f32 %v9215_v9, %v5183_v8  ;;  %v5185_v32 = vpop.f32.mrb[45].mxu1 }
 0x314   : > { %v5409_v43 = vadd.f32 %v6316_v37, %v5184_v17  ;;  %6370 = vmatprep.mubr.msk.f32.mxu1 %vm4690_vm7, %v5466_v41 }
 0x316   : > { %v5467_v49 = vmax.f32 %v5409_v43, 0.0 }
 0x318   : > { %6371 = vmatmul.mubr.msk.f32.gmra.mrb[82].mxu1 %vm4690_vm7, %v5467_v49 }
 0x319   : > { %v5188_v5 = vpop.f32.mrb[46].mxu1 }
 0x31a   : > { %v5189_v53 = vadd.f32 %v9215_v9, %v5188_v5  ;;  %v5190_v2 = vpop.f32.mrb[47].mxu1 }
 0x31c   : > { %v5414_v1 = vadd.f32 %v5413_v24, %v5189_v53 }
 0x31d   : > { %v5193_v47 = vpop.f32.mrb[48].mxu1 }
 0x31e   : > { %v5468_v36 = vmax.f32 %v5414_v1, 0.0  ;;  %v5194_v10 = vadd.f32 %v9215_v9, %v5193_v47  ;;  %v5195_v16 = vpop.f32.mrb[49].mxu1 }
 0x320   : > { %v5419_v30 = vadd.f32 %v6319_v59, %v5194_v10  ;;  %6373 = vmatprep.mubr.msk.f32.mxu1 %vm4690_vm7, %v5468_v36 }
 0x322   : > { %v5469_v14 = vmax.f32 %v5419_v30, 0.0 }
 0x324   : > { %6374 = vmatmul.mubr.msk.f32.gmra.mrb[84].mxu1 %vm4690_vm7, %v5469_v14 }
 0x325   : > { %v5198_v54 = vpop.f32.mrb[50].mxu1 }
 0x326   : > { %v5199_v63 = vadd.f32 %v9215_v9, %v5198_v54  ;;  %v5200_v0 = vpop.f32.mrb[51].mxu1 }
 0x328   : > { %v5424_v19 = vadd.f32 %v5423_v15, %v5199_v63 }
 0x32a   : > { %v5470_v27 = vmax.f32 %v5424_v19, 0.0 }
 0x32c   : > { %6376 = vmatprep.mubr.msk.f32.mxu1 %vm4690_vm7, %v5470_v27  ;;  %v5203_v11 = vpop.f32.mrb[52].mxu1 }
 0x32d   : > { %v5204_v44 = vadd.f32 %v9215_v9, %v5203_v11  ;;  %v5205_v31 = vpop.f32.mrb[53].mxu1 }
 0x32f   : > { %v5429_v7 = vadd.f32 %v6322_v40, %v5204_v44 }
 0x330   : > { %v5208_v6 = vpop.f32.mrb[54].mxu1 }
 0x331   : > { %v5471_v56 = vmax.f32 %v5429_v7, 0.0  ;;  %v5209_v12 = vadd.f32 %v9215_v9, %v5208_v6  ;;  %v5210_v25 = vpop.f32.mrb[55].mxu1 }
 0x333   : > { %v5434_v22 = vadd.f32 %v5433_v42, %v5209_v12  ;;  %6377 = vmatmul.mubr.msk.f32.gmra.mrb[86].mxu1 %vm4690_vm7, %v5471_v56 }
 0x334   : > { %v5213_v21 = vpop.f32.mrb[56].mxu1 }
 0x335   : > { %v5472_v48 = vmax.f32 %v5434_v22, 0.0  ;;  %v5214_v39 = vadd.f32 %v9215_v9, %v5213_v21  ;;  %v5215_v20 = vpop.f32.mrb[57].mxu1 }
 0x337   : > { %v5439_v18 = vadd.f32 %v6325_v13, %v5214_v39  ;;  %6379 = vmatprep.mubr.msk.f32.mxu1 %vm4690_vm7, %v5472_v48 }
 0x339   : > { %v5473_v52 = vmax.f32 %v5439_v18, 0.0 }
 0x33b   : > { %6380 = vmatmul.mubr.msk.f32.gmra.mrb[88].mxu1 %vm4690_vm7, %v5473_v52 }
 0x3ad   : > { %v6336_v9 = vpop.f32.mrb[58].mxu1 }
 0x3ae   : > { %v5653_v45 = vadd.f32 %v6336_v9, %v9290_v26  ;;  %v5647_v34 = vpop.f32.mrb[59].mxu1 }
 0x3af   : > { %v5648_v57 = vadd.f32 %v9290_v26, %v5647_v34 }
 0x3b0   : > { %5807 = vst [vmem:[%s9295_s22 + $0x8] sm:$0xff] %v5653_v45 }
 0x3b1   : > { %5806 = vst [vmem:[%s9295_s22] sm:$0xff] %v5648_v57  ;;  %v6339_v55 = vpop.f32.mrb[60].mxu1 }
 0x3b2   : > { %v5663_v28 = vadd.f32 %v6339_v55, %v9290_v26  ;;  %v5657_v50 = vpop.f32.mrb[61].mxu1 }
 0x3b3   : > { %v5658_v62 = vadd.f32 %v9290_v26, %v5657_v50 }
 0x3b4   : > { %5809 = vst [vmem:[%s9295_s22 + $0x18] sm:$0xff] %v5663_v28 }
 0x3b5   : > { %5808 = vst [vmem:[%s9295_s22 + $0x10] sm:$0xff] %v5658_v62  ;;  %v6342_v37 = vpop.f32.mrb[62].mxu1 }
 0x3b6   : > { %v5673_v58 = vadd.f32 %v6342_v37, %v9290_v26  ;;  %v5667_v38 = vpop.f32.mrb[63].mxu1 }
 0x3b7   : > { %v5668_v29 = vadd.f32 %v9290_v26, %v5667_v38 }
 0x3b8   : > { %5811 = vst [vmem:[%s9295_s22 + $0x28] sm:$0xff] %v5673_v58 }
 0x3b9   : > { %5810 = vst [vmem:[%s9295_s22 + $0x20] sm:$0xff] %v5668_v29  ;;  %v6345_v60 = vpop.f32.mrb[64].mxu1 }
 0x3ba   : > { %v5683_v46 = vadd.f32 %v6345_v60, %v9290_v26  ;;  %v5677_v23 = vpop.f32.mrb[65].mxu1 }
 0x3bb   : > { %v5678_v59 = vadd.f32 %v9290_v26, %v5677_v23 }
 0x3bc   : > { %5813 = vst [vmem:[%s9295_s22 + $0x38] sm:$0xff] %v5683_v46 }
 0x3bd   : > { %5812 = vst [vmem:[%s9295_s22 + $0x30] sm:$0xff] %v5678_v59  ;;  %v6348_v35 = vpop.f32.mrb[66].mxu1 }
 0x3be   : > { %v5693_v24 = vadd.f32 %v6348_v35, %v9290_v26  ;;  %v5687_v61 = vpop.f32.mrb[67].mxu1 }
 0x3bf   : > { %v5688_v40 = vadd.f32 %v9290_v26, %v5687_v61 }
 0x3c0   : > { %5815 = vst [vmem:[%s9295_s22 + $0x48] sm:$0xff] %v5693_v24 }
 0x3c1   : > { %5814 = vst [vmem:[%s9295_s22 + $0x40] sm:$0xff] %v5688_v40  ;;  %v6351_v15 = vpop.f32.mrb[68].mxu1 }
 0x3c2   : > { %v5703_v4 = vadd.f32 %v6351_v15, %v9290_v26  ;;  %v5697_v33 = vpop.f32.mrb[69].mxu1 }
 0x3c3   : > { %v5698_v3 = vadd.f32 %v9290_v26, %v5697_v33 }
 0x3c4   : > { %5817 = vst [vmem:[%s9295_s22 + $0x58] sm:$0xff] %v5703_v4 }
 0x3c5   : > { %5816 = vst [vmem:[%s9295_s22 + $0x50] sm:$0xff] %v5698_v3  ;;  %v6354_v13 = vpop.f32.mrb[70].mxu1 }
 0x3c6   : > { %v5713_v51 = vadd.f32 %v6354_v13, %v9290_v26  ;;  %v5707_v42 = vpop.f32.mrb[71].mxu1 }
 0x3c7   : > { %v5708_v8 = vadd.f32 %v9290_v26, %v5707_v42 }
 0x3c8   : > { %5819 = vst [vmem:[%s9295_s22 + $0x68] sm:$0xff] %v5713_v51 }
 0x3c9   : > { %5818 = vst [vmem:[%s9295_s22 + $0x60] sm:$0xff] %v5708_v8  ;;  %v6357_v41 = vpop.f32.mrb[72].mxu1 }
 0x3ca   : > { %v5723_v17 = vadd.f32 %v6357_v41, %v9290_v26  ;;  %v5717_v32 = vpop.f32.mrb[73].mxu1 }
 0x3cb   : > { %v5718_v43 = vadd.f32 %v9290_v26, %v5717_v32 }
 0x3cc   : > { %5821 = vst [vmem:[%s9295_s22 + $0x78] sm:$0xff] %v5723_v17 }
 0x3cd   : > { %5820 = vst [vmem:[%s9295_s22 + $0x70] sm:$0xff] %v5718_v43  ;;  %v6360_v49 = vpop.f32.mrb[74].mxu1 }
 0x3ce   : > { %v5733_v5 = vadd.f32 %v6360_v49, %v9290_v26  ;;  %v5727_v53 = vpop.f32.mrb[75].mxu1 }
 0x3cf   : > { %v5728_v2 = vadd.f32 %v9290_v26, %v5727_v53 }
 0x3d0   : > { %5823 = vst [vmem:[%s9295_s22 + $0x88] sm:$0xff] %v5733_v5 }
 0x3d1   : > { %5822 = vst [vmem:[%s9295_s22 + $0x80] sm:$0xff] %v5728_v2  ;;  %v6363_v1 = vpop.f32.mrb[76].mxu1 }
 0x3d2   : > { %v5743_v47 = vadd.f32 %v6363_v1, %v9290_v26  ;;  %v5737_v36 = vpop.f32.mrb[77].mxu1 }
 0x3d3   : > { %v5738_v10 = vadd.f32 %v9290_v26, %v5737_v36 }
 0x3d4   : > { %5825 = vst [vmem:[%s9295_s22 + $0x98] sm:$0xff] %v5743_v47 }
 0x3d5   : > { %5824 = vst [vmem:[%s9295_s22 + $0x90] sm:$0xff] %v5738_v10  ;;  %v6366_v16 = vpop.f32.mrb[78].mxu1 }
 0x3d6   : > { %v5753_v30 = vadd.f32 %v6366_v16, %v9290_v26  ;;  %v5747_v14 = vpop.f32.mrb[79].mxu1 }
 0x3d7   : > { %v5748_v54 = vadd.f32 %v9290_v26, %v5747_v14 }
 0x3d8   : > { %5827 = vst [vmem:[%s9295_s22 + $0xa8] sm:$0xff] %v5753_v30 }
 0x3d9   : > { %5826 = vst [vmem:[%s9295_s22 + $0xa0] sm:$0xff] %v5748_v54 }
 0x3df   : > { %v6369_v63 = vpop.f32.mrb[80].mxu1 }
 0x3e0   : > { %v5763_v0 = vadd.f32 %v6369_v63, %v9290_v26  ;;  %v5757_v19 = vpop.f32.mrb[81].mxu1 }
 0x3e1   : > { %v5758_v27 = vadd.f32 %v9290_v26, %v5757_v19 }
 0x3e2   : > { %5829 = vst [vmem:[%s9295_s22 + $0xb8] sm:$0xff] %v5763_v0 }
 0x3e3   : > { %5828 = vst [vmem:[%s9295_s22 + $0xb0] sm:$0xff] %v5758_v27 }
 0x3eb   : > { %v6372_v11 = vpop.f32.mrb[82].mxu1 }
 0x3ec   : > { %v5773_v44 = vadd.f32 %v6372_v11, %v9290_v26  ;;  %v5767_v31 = vpop.f32.mrb[83].mxu1 }
 0x3ed   : > { %v5768_v7 = vadd.f32 %v9290_v26, %v5767_v31 }
 0x3ee   : > { %5831 = vst [vmem:[%s9295_s22 + $0xc8] sm:$0xff] %v5773_v44 }
 0x3ef   : > { %5830 = vst [vmem:[%s9295_s22 + $0xc0] sm:$0xff] %v5768_v7 }
 0x3f7   : > { %v6375_v6 = vpop.f32.mrb[84].mxu1 }
 0x3f8   : > { %v5783_v56 = vadd.f32 %v6375_v6, %v9290_v26  ;;  %v5777_v12 = vpop.f32.mrb[85].mxu1 }
 0x3f9   : > { %v5778_v25 = vadd.f32 %v9290_v26, %v5777_v12 }
 0x3fa   : > { %5833 = vst [vmem:[%s9295_s22 + $0xd8] sm:$0xff] %v5783_v56 }
 0x3fb   : > { %5832 = vst [vmem:[%s9295_s22 + $0xd0] sm:$0xff] %v5778_v25 }
 0x406   : > { %v6378_v22 = vpop.f32.mrb[86].mxu1 }
 0x407   : > { %v5793_v21 = vadd.f32 %v6378_v22, %v9290_v26  ;;  %v5787_v48 = vpop.f32.mrb[87].mxu1 }
 0x408   : > { %v5788_v39 = vadd.f32 %v9290_v26, %v5787_v48 }
 0x409   : > { %5835 = vst [vmem:[%s9295_s22 + $0xe8] sm:$0xff] %v5793_v21 }
 0x40a   : > { %5834 = vst [vmem:[%s9295_s22 + $0xe0] sm:$0xff] %v5788_v39 }
 0x40e   : > { %v6381_v20 = vpop.f32.mrb[88].mxu1 }
 0x40f   : > { %v5803_v18 = vadd.f32 %v6381_v20, %v9290_v26  ;;  %v5797_v52 = vpop.f32.mrb[89].mxu1 }
 0x410   : > { %v5798_v9 = vadd.f32 %v9290_v26, %v5797_v52 }
 0x411   : > { %5837 = vst [vmem:[%s9295_s22 + $0xf8] sm:$0xff] %v5803_v18 }
 0x412   : > { %5836 = vst [vmem:[%s9295_s22 + $0xf0] sm:$0xff] %v5798_v9 }
 0x413 PF: > { %s17_s24 = sadd.s32 1, %s7016_s24  }
 0x414   : > { %p14_p4 = scmp.ge.s32.totalorder %s17_s24, 4  }
 0x416   :  { %16 = sbr.rel (!%p14_p4) target bundleno = 1 (0x1), region = 78 }

</bundles_post_ra>
